<compile_context>
chip_gen: v6e
topology: v6e:2x2x1
jax: 0.10.0
libtpu: 0.0.40
codegen_flags: <defaults>
</compile_context>

<pallas_src>
import jax
import jax.numpy as jnp
from jax import lax
from jax.experimental import pallas as pl
from jax.experimental.pallas import tpu as pltpu

# ----------------------------- config ---------------------------------------
VOCAB = 50
TYPE_VOCAB = 2
MAXPOS = 16
D = 32            # BERT hidden (scaled from 768)
HEADS = 2
DH = D // HEADS   # 16
FFN = 64
LAYERS = 2
LSTM_H = 16       # per-direction hidden (scaled from 1024 // 2)
HOUT = 2 * LSTM_H # BiLSTM output (scaled from 1024)
NUM_TAG = 5
NUM_POS = 7
B = 2
T = 8
BT = B * T
NEG = -1e9
N_PAD = 128       # CRF tag dim padded to full lane width (lane-dense)


# ----------------------------- in-kernel helpers -----------------------------
def _ln(x, g, b, eps=1e-12):
    mu = jnp.mean(x, axis=-1, keepdims=True)
    var = jnp.mean((x - mu) ** 2, axis=-1, keepdims=True)
    return (x - mu) * lax.rsqrt(var + eps) * g + b


def _sum_all(x):
    """Reduce a 2-D tile to a (1,1) value (lane reduce then sublane reduce)."""
    return jnp.sum(jnp.sum(x, axis=-1, keepdims=True), axis=0, keepdims=True)


# ----------------------------- the fused forward kernel ----------------------
def _entity_forward_kernel(
    # BERT
    x_ref, bias_ref,
    wqkv_ref, bqkv_ref, wo_ref, bo_ref, ln1g_ref, ln1b_ref,
    w1_ref, b1_ref, w2_ref, b2_ref, ln2g_ref, ln2b_ref,
    # BiLSTM
    wih_ref, whh_ref, bx_ref,
    # dropout multipliers + classification heads (padded to 128 lanes)
    dtag_ref, dpos_ref, wt_ref, bt_ref, wp_ref, bp_ref,
    # CRF parameters (padded) + per-token helpers (t-major rows: t*B + b)
    start2_ref, end2_ref, trans_ref,
    mask_tm_ref, isfirst_ref, islast_ref,
    ohtag_ref, ohptag_ref, ohpos_ref, ohppos_ref,
    # output
    out_ref,
):
    f32 = jnp.float32
    scale = 1.0 / (DH ** 0.5)
    H = LSTM_H

    # ---------------- BERT encoder (LAYERS unrolled, all tokens at once) -----
    # Rows of x are t-major (row = t*B + b); attention bias is block-diagonal
    # over "same batch" pairs, so both sequences share one score matmul.
    x = x_ref[...]                                    # (B*T, D)
    attn_bias = bias_ref[...]                         # (B*T, B*T)
    for l in range(LAYERS):
        qkv = jnp.dot(x, wqkv_ref[l], preferred_element_type=f32) + bqkv_ref[l]
        ctx_parts = []
        for h in range(HEADS):
            q = qkv[:, h * DH:(h + 1) * DH]
            k = qkv[:, D + h * DH:D + (h + 1) * DH]
            v = qkv[:, 2 * D + h * DH:2 * D + (h + 1) * DH]
            s = lax.dot_general(q, k, (((1,), (1,)), ((), ())),
                                preferred_element_type=f32) * scale + attn_bias
            m = jnp.max(s, axis=-1, keepdims=True)
            e = jnp.exp(s - m)
            # approximate EUP reciprocal: softmax differs from torch at ~1e-3.
            p = e * pl.reciprocal(jnp.sum(e, axis=-1, keepdims=True),
                                  approx=True)
            ctx_parts.append(jnp.dot(p, v, preferred_element_type=f32))
        ctx = jnp.concatenate(ctx_parts, axis=-1)                 # (B*T, D)
        attn = jnp.dot(ctx, wo_ref[l], preferred_element_type=f32) + bo_ref[l]
        x1 = _ln(x + attn, ln1g_ref[l], ln1b_ref[l])
        # tanh-approx gelu (HF BERT uses erf gelu; ~1e-3 deviation).
        hf = jax.nn.gelu(jnp.dot(x1, w1_ref[l], preferred_element_type=f32)
                         + b1_ref[l], approximate=True)
        ff = jnp.dot(hf, w2_ref[l], preferred_element_type=f32) + b2_ref[l]
        x = _ln(x1 + ff, ln2g_ref[l], ln2b_ref[l])

    # ---------------- BiLSTM: input projection hoisted out of recurrence -----
    # x is t-major, so per-timestep rows [t*B:(t+1)*B] are contiguous slices.
    gx_all = (jnp.dot(x, wih_ref[...], preferred_element_type=f32)
              + bx_ref[...])                          # (B*T, 8H), lane-dense
    whh_wide = whh_ref[...]                           # (H, 8H) fwd|bwd wide
    fwd_rows = lax.broadcasted_iota(jnp.int32, (2 * B, 4 * H), 0) < B

    gx_steps = []
    for t in range(T):                                # fully unrolled (T=8)
        gxf = gx_all[t * B:(t + 1) * B, 0:4 * H]                  # fwd @ t
        gxb = gx_all[(T - 1 - t) * B:(T - t) * B, 4 * H:8 * H]    # bwd @ T-1-t
        gx_steps.append(jnp.concatenate([gxf, gxb], axis=0))      # (2B, 4H)

    h_state = jnp.zeros((2 * B, H), f32)              # rows: [fwd b..., bwd b...]
    c_state = jnp.zeros((2 * B, H), f32)
    h_fwd = [None] * T
    h_bwd = [None] * T
    for t in range(T):                                # serial recurrence, unrolled
        gh_wide = jnp.dot(h_state, whh_wide, preferred_element_type=f32)  # (2B,8H)
        gh = jnp.where(fwd_rows, gh_wide[:, 0:4 * H], gh_wide[:, 4 * H:8 * H])
        gates = gx_steps[t] + gh
        i_g = jax.nn.sigmoid(gates[:, 0:H])
        f_g = jax.nn.sigmoid(gates[:, H:2 * H])
        g_g = jnp.tanh(gates[:, 2 * H:3 * H])         # tanh only on g block
        o_g = jax.nn.sigmoid(gates[:, 3 * H:4 * H])
        c_state = f_g * c_state + i_g * g_g
        h_state = o_g * jnp.tanh(c_state)
        h_fwd[t] = h_state[0:B, :]
        h_bwd[T - 1 - t] = h_state[B:2 * B, :]

    # (T*B, 2H), t-major rows, [fwd | bwd] per token.
    h_all = jnp.concatenate(
        [jnp.concatenate([h_fwd[t], h_bwd[t]], axis=1) for t in range(T)],
        axis=0)

    # ---------------- dropout + heads (lane-dense padded emissions) ----------
    o_tag = h_all * dtag_ref[...]
    o_pos = h_all * dpos_ref[...]
    em_tag = (jnp.dot(o_tag, wt_ref[...], preferred_element_type=f32)
              + bt_ref[...])                          # (T*B, 128), pad lanes = 0
    em_pos = (jnp.dot(o_pos, wp_ref[...], preferred_element_type=f32)
              + bp_ref[...])

    # ---------------- CRF numerator (one-hot formulation, in-kernel) ---------
    mask_tm = mask_tm_ref[...]                        # (T*B, 1)
    isf = isfirst_ref[...]
    isl = islast_ref[...]
    start2 = start2_ref[...]                          # (2B, 128)
    end2 = end2_ref[...]

    def numerator(em, oh, ohp, trans, start_row, end_row):
        em_term = _sum_all(mask_tm * em * oh)
        st_term = _sum_all(isf * oh * start_row)
        en_term = _sum_all(isl * oh * end_row)
        tr = jnp.dot(ohp, trans, preferred_element_type=f32)
        tr_term = _sum_all(mask_tm * tr * oh)
        return em_term + st_term + en_term + tr_term

    num_tag = numerator(em_tag, ohtag_ref[...], ohptag_ref[...], trans_ref[0],
                        start2[0:1, :], end2[0:1, :])
    num_pos = numerator(em_pos, ohpos_ref[...], ohppos_ref[...], trans_ref[1],
                        start2[B:B + 1, :], end2[B:B + 1, :])

    # ---------------- CRF log-partition (both heads stacked on rows) ---------
    # exp-domain matmul form: alpha' = m + log(exp(alpha-m) @ exp(trans)) + em.
    expT_tag = jnp.exp(trans_ref[0])                  # NEG pads underflow to 0
    expT_pos = jnp.exp(trans_ref[1])
    is_tag_row = lax.broadcasted_iota(jnp.int32, (2 * B, N_PAD), 0) < B

    def em_at(t):
        return jnp.concatenate([em_tag[t * B:(t + 1) * B, :],
                                em_pos[t * B:(t + 1) * B, :]], axis=0)

    def mask_at(t):
        mcol = mask_tm[t * B:(t + 1) * B, :]
        return jnp.concatenate([mcol, mcol], axis=0)  # (2B, 1)

    alpha = start2 + em_at(0)                         # (2B, 128)
    for t in range(1, T):                             # unrolled (T-1 steps)
        m = jnp.max(alpha, axis=-1, keepdims=True)
        e = jnp.exp(alpha - m)
        s_tag = jnp.dot(e, expT_tag, preferred_element_type=f32)
        s_pos = jnp.dot(e, expT_pos, preferred_element_type=f32)
        s = jnp.where(is_tag_row, s_tag, s_pos)
        s = jnp.maximum(s, 1e-30)                     # pad lanes: avoid log(0)
        nxt = m + jnp.log(s) + em_at(t)
        alpha = jnp.where(mask_at(t) > 0.5, nxt, alpha)

    a_fin = alpha + end2
    mx = jnp.max(a_fin, axis=-1, keepdims=True)
    logz = mx + jnp.log(jnp.sum(jnp.exp(a_fin - mx), axis=-1, keepdims=True))
    lz_tag = _sum_all(logz[0:B, :])
    lz_pos = _sum_all(logz[B:2 * B, :])

    # ---------------- token_mean losses and final scalar ---------------------
    denom = _sum_all(mask_tm)
    loss_tag = -(num_tag - lz_tag) / denom
    loss_pos = -(num_pos - lz_pos) / denom
    loss = 0.5 * (loss_tag + loss_pos)                # (1, 1)
    out_ref[...] = jnp.broadcast_to(loss, out_ref.shape)   # lane-dense output


# ----------------------------- host-side glue --------------------------------
def layer_norm(x, g, b, eps=1e-12):
    mu = jnp.mean(x, axis=-1, keepdims=True)
    var = jnp.mean((x - mu) ** 2, axis=-1, keepdims=True)
    return (x - mu) * lax.rsqrt(var + eps) * g + b


def _zero_index_map(ndim):
    return lambda i, _n=ndim: (0,) * _n


def entity_model_forward(params, ids, mask, token_type_ids,
                         target_pos, target_tag, dropout_key):
    Bn, Tn = ids.shape
    BTn = Bn * Tn
    H = LSTM_H

    # --- embeddings (gather-based, host side) + LN; flatten t-major ----------
    x = (params["word_emb"][ids]
         + params["pos_emb"][None, :Tn, :]
         + params["type_emb"][token_type_ids])
    x = layer_norm(x, params["emb_ln_g"], params["emb_ln_b"])
    x_emb = x.transpose(1, 0, 2).reshape(BTn, D).astype(jnp.float32)

    mask_f = mask.astype(jnp.float32)                         # (B, T)
    mask_tm = mask_f.T.reshape(BTn, 1)                        # t-major

    # --- block-diagonal attention bias (same batch & key valid) --------------
    tok = jnp.arange(BTn)
    same_batch = (tok[:, None] % Bn) == (tok[None, :] % Bn)
    key_valid = (mask_tm[:, 0] > 0.5)[None, :]
    attn_bias = jnp.where(same_batch & key_valid, 0.0, NEG).astype(jnp.float32)

    # --- stacked BERT layer weights (leading LAYERS axis) ---------------------
    def stk(fn):
        return jnp.stack([fn(lp) for lp in params["layers"]], axis=0)

    wqkv = stk(lambda lp: jnp.concatenate([lp["Wq"], lp["Wk"], lp["Wv"]], axis=1))
    bqkv = stk(lambda lp: jnp.concatenate([lp["bq"], lp["bk"], lp["bv"]])[None, :])
    wo = stk(lambda lp: lp["Wo"])
    bo = stk(lambda lp: lp["bo"][None, :])
    ln1g = stk(lambda lp: lp["ln1_g"][None, :])
    ln1b = stk(lambda lp: lp["ln1_b"][None, :])
    w1 = stk(lambda lp: lp["W1"])
    b1 = stk(lambda lp: lp["b1"][None, :])
    w2 = stk(lambda lp: lp["W2"])
    b2 = stk(lambda lp: lp["b2"][None, :])
    ln2g = stk(lambda lp: lp["ln2_g"][None, :])
    ln2b = stk(lambda lp: lp["ln2_b"][None, :])

    # --- packed BiLSTM weights (fwd | bwd side-by-side, lane-dense) ----------
    lf, lb = params["lstm"]["fwd"], params["lstm"]["bwd"]
    wih_both = jnp.concatenate([lf["W_ih"], lb["W_ih"]], axis=1)   # (D, 8H)
    whh_wide = jnp.concatenate([lf["W_hh"], lb["W_hh"]], axis=1)   # (H, 8H)
    bias_x = jnp.concatenate([lf["b_ih"] + lf["b_hh"],
                              lb["b_ih"] + lb["b_hh"]])[None, :]   # (1, 8H)

    # --- dropout multipliers (t-major rows), nn.Dropout(0.3) semantics -------
    keep = 0.7
    k1, k2 = jax.random.split(dropout_key)
    dtag = jax.random.bernoulli(k1, keep, (BTn, HOUT)).astype(jnp.float32) / keep
    dpos = jax.random.bernoulli(k2, keep, (BTn, HOUT)).astype(jnp.float32) / keep

    # --- classification heads zero-padded to 128 output lanes ----------------
    wt_pad = jnp.zeros((HOUT, N_PAD), jnp.float32).at[:, :NUM_TAG].set(params["Wt"])
    bt_pad = jnp.zeros((1, N_PAD), jnp.float32).at[0, :NUM_TAG].set(params["bt"])
    wp_pad = jnp.zeros((HOUT, N_PAD), jnp.float32).at[:, :NUM_POS].set(params["Wp"])
    bp_pad = jnp.zeros((1, N_PAD), jnp.float32).at[0, :NUM_POS].set(params["bp"])

    # --- CRF params padded (pad lanes NEG: can never win the logsumexp) ------
    def pad_vec(v, n):
        return jnp.full((N_PAD,), NEG, jnp.float32).at[:n].set(v)

    def pad_mat(m, n):
        return jnp.full((N_PAD, N_PAD), NEG, jnp.float32).at[:n, :n].set(m)

    start2 = jnp.concatenate([
        jnp.broadcast_to(pad_vec(params["crf_tag"]["start"], NUM_TAG)[None, :],
                         (Bn, N_PAD)),
        jnp.broadcast_to(pad_vec(params["crf_pos"]["start"], NUM_POS)[None, :],
                         (Bn, N_PAD))], axis=0)
    end2 = jnp.concatenate([
        jnp.broadcast_to(pad_vec(params["crf_tag"]["end"], NUM_TAG)[None, :],
                         (Bn, N_PAD)),
        jnp.broadcast_to(pad_vec(params["crf_pos"]["end"], NUM_POS)[None, :],
                         (Bn, N_PAD))], axis=0)
    trans2 = jnp.stack([pad_mat(params["crf_tag"]["trans"], NUM_TAG),
                        pad_mat(params["crf_pos"]["trans"], NUM_POS)], axis=0)

    # --- per-token helper vectors (t-major) -----------------------------------
    t_grid = jnp.arange(Tn)[:, None]                              # (T, 1)
    lengths = jnp.sum(mask, axis=1)[None, :]                      # (1, B)
    is_first = jnp.broadcast_to(t_grid == 0, (Tn, Bn)).astype(jnp.float32)
    is_first = is_first.reshape(BTn, 1)
    is_last = (t_grid == (lengths - 1)).astype(jnp.float32).reshape(BTn, 1)

    def one_hots(tgt):
        tgt_tm = tgt.T                                            # (T, B)
        oh = jax.nn.one_hot(tgt_tm.reshape(-1), N_PAD, dtype=jnp.float32)
        prev = jnp.concatenate([jnp.zeros((1, Bn), tgt.dtype), tgt_tm[:-1]],
                               axis=0)
        ohp = (jax.nn.one_hot(prev.reshape(-1), N_PAD, dtype=jnp.float32)
               * (1.0 - is_first))
        return oh, ohp

    oh_tag, ohp_tag = one_hots(target_tag)
    oh_pos, ohp_pos = one_hots(target_pos)

    args = (
        x_emb, attn_bias,
        wqkv, bqkv, wo, bo, ln1g, ln1b, w1, b1, w2, b2, ln2g, ln2b,
        wih_both, whh_wide, bias_x,
        dtag, dpos, wt_pad, bt_pad, wp_pad, bp_pad,
        start2, end2, trans2,
        mask_tm, is_first, is_last,
        oh_tag, ohp_tag, oh_pos, ohp_pos,
    )
    in_specs = [pl.BlockSpec(a.shape, _zero_index_map(a.ndim)) for a in args]

    out = pl.pallas_call(
        _entity_forward_kernel,
        out_shape=jax.ShapeDtypeStruct((8, N_PAD), jnp.float32),
        grid=(1,),
        in_specs=in_specs,
        out_specs=pl.BlockSpec((8, N_PAD), lambda i: (0, 0)),
        compiler_params=pltpu.CompilerParams(
            dimension_semantics=("arbitrary",)),
    )(*args)
    return out[0, 0]


# ----------------------------- parameter init --------------------------------
def init_params(key):
    ks = jax.random.split(key, 256)
    ctr = iter(range(256))

    def nxt():
        return ks[next(ctr)]

    def normal(shape, std=0.02):
        return (std * jax.random.normal(nxt(), shape)).astype(jnp.float32)

    def uniform(shape, a):
        return jax.random.uniform(nxt(), shape, jnp.float32, -a, a)

    p = {
        "word_emb": normal((VOCAB, D)),
        "pos_emb": normal((MAXPOS, D)),
        "type_emb": normal((TYPE_VOCAB, D)),
        "emb_ln_g": jnp.ones((D,), jnp.float32),
        "emb_ln_b": jnp.zeros((D,), jnp.float32),
        "layers": [],
    }
    for _ in range(LAYERS):
        p["layers"].append({
            "Wq": normal((D, D)), "bq": jnp.zeros((D,), jnp.float32),
            "Wk": normal((D, D)), "bk": jnp.zeros((D,), jnp.float32),
            "Wv": normal((D, D)), "bv": jnp.zeros((D,), jnp.float32),
            "Wo": normal((D, D)), "bo": jnp.zeros((D,), jnp.float32),
            "ln1_g": jnp.ones((D,), jnp.float32),
            "ln1_b": jnp.zeros((D,), jnp.float32),
            "W1": normal((D, FFN)), "b1": jnp.zeros((FFN,), jnp.float32),
            "W2": normal((FFN, D)), "b2": jnp.zeros((D,), jnp.float32),
            "ln2_g": jnp.ones((D,), jnp.float32),
            "ln2_b": jnp.zeros((D,), jnp.float32),
        })
    bound = 1.0 / (LSTM_H ** 0.5)
    p["lstm"] = {}
    for dname in ("fwd", "bwd"):
        p["lstm"][dname] = {
            "W_ih": uniform((D, 4 * LSTM_H), bound),
            "W_hh": uniform((LSTM_H, 4 * LSTM_H), bound),
            "b_ih": uniform((4 * LSTM_H,), bound),
            "b_hh": uniform((4 * LSTM_H,), bound),
        }
    p["Wt"] = normal((HOUT, NUM_TAG))
    p["bt"] = jnp.zeros((NUM_TAG,), jnp.float32)
    p["Wp"] = normal((HOUT, NUM_POS))
    p["bp"] = jnp.zeros((NUM_POS,), jnp.float32)
    for name, n in (("crf_tag", NUM_TAG), ("crf_pos", NUM_POS)):
        p[name] = {
            "start": uniform((n,), 0.1),
            "end": uniform((n,), 0.1),
            "trans": uniform((n, n), 0.1),
        }
    return p


# ----------------------------- main -------------------------------------------
if __name__ == "__main__":
    root = jax.random.PRNGKey(0)
    pkey, dkey, ikey = jax.random.split(root, 3)
    params = init_params(pkey)

    ids = jax.random.randint(jax.random.fold_in(ikey, 0), (B, T), 0, VOCAB,
                             dtype=jnp.int32)
    token_type_ids = jnp.zeros((B, T), jnp.int32)
    lengths = jnp.array([T, 5], jnp.int32)
    mask = (jnp.arange(T)[None, :] < lengths[:, None]).astype(jnp.int32)
    target_tag = jax.random.randint(jax.random.fold_in(ikey, 1), (B, T), 0,
                                    NUM_TAG, dtype=jnp.int32)
    target_pos = jax.random.randint(jax.random.fold_in(ikey, 2), (B, T), 0,
                                    NUM_POS, dtype=jnp.int32)

    fwd = jax.jit(entity_model_forward)
    loss = fwd(params, ids, mask, token_type_ids, target_pos, target_tag, dkey)
    loss = jax.block_until_ready(loss)
    assert jnp.isfinite(loss), "loss is not finite"
    print("KERNEL_OK")
</pallas_src>

<mosaic_0001>
module attributes {stable_mosaic.version = 11 : i64} {
  func.func @_entity_forward_kernel(%arg0: i32, %arg1: memref<16x32xf32, #tpu.memory_space<vmem>>, %arg2: memref<16x16xf32, #tpu.memory_space<vmem>>, %arg3: memref<2x32x96xf32, #tpu.memory_space<vmem>>, %arg4: memref<2x1x96xf32, #tpu.memory_space<vmem>>, %arg5: memref<2x32x32xf32, #tpu.memory_space<vmem>>, %arg6: memref<2x1x32xf32, #tpu.memory_space<vmem>>, %arg7: memref<2x1x32xf32, #tpu.memory_space<vmem>>, %arg8: memref<2x1x32xf32, #tpu.memory_space<vmem>>, %arg9: memref<2x32x64xf32, #tpu.memory_space<vmem>>, %arg10: memref<2x1x64xf32, #tpu.memory_space<vmem>>, %arg11: memref<2x64x32xf32, #tpu.memory_space<vmem>>, %arg12: memref<2x1x32xf32, #tpu.memory_space<vmem>>, %arg13: memref<2x1x32xf32, #tpu.memory_space<vmem>>, %arg14: memref<2x1x32xf32, #tpu.memory_space<vmem>>, %arg15: memref<32x128xf32, #tpu.memory_space<vmem>>, %arg16: memref<16x128xf32, #tpu.memory_space<vmem>>, %arg17: memref<1x128xf32, #tpu.memory_space<vmem>>, %arg18: memref<16x32xf32, #tpu.memory_space<vmem>>, %arg19: memref<16x32xf32, #tpu.memory_space<vmem>>, %arg20: memref<32x128xf32, #tpu.memory_space<vmem>>, %arg21: memref<1x128xf32, #tpu.memory_space<vmem>>, %arg22: memref<32x128xf32, #tpu.memory_space<vmem>>, %arg23: memref<1x128xf32, #tpu.memory_space<vmem>>, %arg24: memref<4x128xf32, #tpu.memory_space<vmem>>, %arg25: memref<4x128xf32, #tpu.memory_space<vmem>>, %arg26: memref<2x128x128xf32, #tpu.memory_space<vmem>>, %arg27: memref<16x1xf32, #tpu.memory_space<vmem>>, %arg28: memref<16x1xf32, #tpu.memory_space<vmem>>, %arg29: memref<16x1xf32, #tpu.memory_space<vmem>>, %arg30: memref<16x128xf32, #tpu.memory_space<vmem>>, %arg31: memref<16x128xf32, #tpu.memory_space<vmem>>, %arg32: memref<16x128xf32, #tpu.memory_space<vmem>>, %arg33: memref<16x128xf32, #tpu.memory_space<vmem>>, %arg34: memref<8x128xf32, #tpu.memory_space<vmem>>) attributes {dimension_semantics = [#tpu.dimension_semantics<arbitrary>], iteration_bounds = array<i64: 1>, scalar_prefetch = 0 : i64, scratch_operands = 0 : i64, tpu.core_type = #tpu.core_type<tc>, window_params = [{pipeline_mode = #tpu.pipeline_mode<synchronous>, transform_indices = @transform_0, window_bounds = array<i64: 16, 32>}, {pipeline_mode = #tpu.pipeline_mode<synchronous>, transform_indices = @transform_1, window_bounds = array<i64: 16, 16>}, {pipeline_mode = #tpu.pipeline_mode<synchronous>, transform_indices = @transform_2, window_bounds = array<i64: 2, 32, 96>}, {pipeline_mode = #tpu.pipeline_mode<synchronous>, transform_indices = @transform_3, window_bounds = array<i64: 2, 1, 96>}, {pipeline_mode = #tpu.pipeline_mode<synchronous>, transform_indices = @transform_4, window_bounds = array<i64: 2, 32, 32>}, {pipeline_mode = #tpu.pipeline_mode<synchronous>, transform_indices = @transform_5, window_bounds = array<i64: 2, 1, 32>}, {pipeline_mode = #tpu.pipeline_mode<synchronous>, transform_indices = @transform_6, window_bounds = array<i64: 2, 1, 32>}, {pipeline_mode = #tpu.pipeline_mode<synchronous>, transform_indices = @transform_7, window_bounds = array<i64: 2, 1, 32>}, {pipeline_mode = #tpu.pipeline_mode<synchronous>, transform_indices = @transform_8, window_bounds = array<i64: 2, 32, 64>}, {pipeline_mode = #tpu.pipeline_mode<synchronous>, transform_indices = @transform_9, window_bounds = array<i64: 2, 1, 64>}, {pipeline_mode = #tpu.pipeline_mode<synchronous>, transform_indices = @transform_10, window_bounds = array<i64: 2, 64, 32>}, {pipeline_mode = #tpu.pipeline_mode<synchronous>, transform_indices = @transform_11, window_bounds = array<i64: 2, 1, 32>}, {pipeline_mode = #tpu.pipeline_mode<synchronous>, transform_indices = @transform_12, window_bounds = array<i64: 2, 1, 32>}, {pipeline_mode = #tpu.pipeline_mode<synchronous>, transform_indices = @transform_13, window_bounds = array<i64: 2, 1, 32>}, {pipeline_mode = #tpu.pipeline_mode<synchronous>, transform_indices = @transform_14, window_bounds = array<i64: 32, 128>}, {pipeline_mode = #tpu.pipeline_mode<synchronous>, transform_indices = @transform_15, window_bounds = array<i64: 16, 128>}, {pipeline_mode = #tpu.pipeline_mode<synchronous>, transform_indices = @transform_16, window_bounds = array<i64: 1, 128>}, {pipeline_mode = #tpu.pipeline_mode<synchronous>, transform_indices = @transform_17, window_bounds = array<i64: 16, 32>}, {pipeline_mode = #tpu.pipeline_mode<synchronous>, transform_indices = @transform_18, window_bounds = array<i64: 16, 32>}, {pipeline_mode = #tpu.pipeline_mode<synchronous>, transform_indices = @transform_19, window_bounds = array<i64: 32, 128>}, {pipeline_mode = #tpu.pipeline_mode<synchronous>, transform_indices = @transform_20, window_bounds = array<i64: 1, 128>}, {pipeline_mode = #tpu.pipeline_mode<synchronous>, transform_indices = @transform_21, window_bounds = array<i64: 32, 128>}, {pipeline_mode = #tpu.pipeline_mode<synchronous>, transform_indices = @transform_22, window_bounds = array<i64: 1, 128>}, {pipeline_mode = #tpu.pipeline_mode<synchronous>, transform_indices = @transform_23, window_bounds = array<i64: 4, 128>}, {pipeline_mode = #tpu.pipeline_mode<synchronous>, transform_indices = @transform_24, window_bounds = array<i64: 4, 128>}, {pipeline_mode = #tpu.pipeline_mode<synchronous>, transform_indices = @transform_25, window_bounds = array<i64: 2, 128, 128>}, {pipeline_mode = #tpu.pipeline_mode<synchronous>, transform_indices = @transform_26, window_bounds = array<i64: 16, 1>}, {pipeline_mode = #tpu.pipeline_mode<synchronous>, transform_indices = @transform_27, window_bounds = array<i64: 16, 1>}, {pipeline_mode = #tpu.pipeline_mode<synchronous>, transform_indices = @transform_28, window_bounds = array<i64: 16, 1>}, {pipeline_mode = #tpu.pipeline_mode<synchronous>, transform_indices = @transform_29, window_bounds = array<i64: 16, 128>}, {pipeline_mode = #tpu.pipeline_mode<synchronous>, transform_indices = @transform_30, window_bounds = array<i64: 16, 128>}, {pipeline_mode = #tpu.pipeline_mode<synchronous>, transform_indices = @transform_31, window_bounds = array<i64: 16, 128>}, {pipeline_mode = #tpu.pipeline_mode<synchronous>, transform_indices = @transform_32, window_bounds = array<i64: 16, 128>}, {pipeline_mode = #tpu.pipeline_mode<synchronous>, transform_indices = @transform_33, window_bounds = array<i64: 8, 128>}]} {
    %c0 = arith.constant 0 : index
    %c0_0 = arith.constant 0 : index
    %0 = vector.load %arg1[%c0, %c0_0] : memref<16x32xf32, #tpu.memory_space<vmem>>, vector<16x32xf32>
    %c0_1 = arith.constant 0 : index
    %c0_2 = arith.constant 0 : index
    %1 = vector.load %arg2[%c0_1, %c0_2] : memref<16x16xf32, #tpu.memory_space<vmem>>, vector<16x16xf32>
    %c0_3 = arith.constant 0 : index
    %c0_4 = arith.constant 0 : index
    %c0_5 = arith.constant 0 : index
    %2 = vector.load %arg3[%c0_3, %c0_4, %c0_5] : memref<2x32x96xf32, #tpu.memory_space<vmem>>, vector<1x32x96xf32>
    %3 = vector.shape_cast %2 : vector<1x32x96xf32> to vector<32x96xf32>
    %cst = arith.constant dense<0.000000e+00> : vector<16x96xf32>
    %4 = tpu.matmul %0, %3, %cst {dimension_numbers = #tpu.dot_dimension_numbers<[1], [0], [0], [1], [0, 0, 1, 1], [], []>} : vector<16x32xf32>, vector<32x96xf32>, vector<16x96xf32> -> vector<16x96xf32>
    %c0_6 = arith.constant 0 : index
    %c0_7 = arith.constant 0 : index
    %c0_8 = arith.constant 0 : index
    %5 = vector.load %arg4[%c0_6, %c0_7, %c0_8] : memref<2x1x96xf32, #tpu.memory_space<vmem>>, vector<1x1x96xf32>
    %6 = vector.shape_cast %5 : vector<1x1x96xf32> to vector<1x96xf32>
    %7 = vector.broadcast %6 : vector<1x96xf32> to vector<16x96xf32>
    %8 = arith.addf %4, %7 : vector<16x96xf32>
    %9 = vector.extract_strided_slice %8 {offsets = [0, 0], sizes = [16, 16], strides = [1, 1]} : vector<16x96xf32> to vector<16x16xf32>
    %10 = vector.extract_strided_slice %8 {offsets = [0, 32], sizes = [16, 16], strides = [1, 1]} : vector<16x96xf32> to vector<16x16xf32>
    %11 = vector.extract_strided_slice %8 {offsets = [0, 64], sizes = [16, 16], strides = [1, 1]} : vector<16x96xf32> to vector<16x16xf32>
    %cst_9 = arith.constant dense<0.000000e+00> : vector<16x16xf32>
    %12 = tpu.matmul %9, %10, %cst_9 {dimension_numbers = #tpu.dot_dimension_numbers<[1], [1], [0], [0], [0, 0, 1, 0], [], []>} : vector<16x16xf32>, vector<16x16xf32>, vector<16x16xf32> -> vector<16x16xf32>
    %cst_10 = arith.constant 2.500000e-01 : f32
    %13 = vector.broadcast %cst_10 : f32 to vector<16x16xf32>
    %14 = arith.mulf %12, %13 : vector<16x16xf32>
    %15 = arith.addf %14, %1 : vector<16x16xf32>
    %cst_11 = arith.constant dense<0xFF800000> : vector<16xf32>
    %16 = vector.multi_reduction <maximumf>, %15, %cst_11 [1] : vector<16x16xf32> to vector<16xf32>
    %17 = vector.shape_cast %16 : vector<16xf32> to vector<16x1xf32>
    %18 = vector.broadcast %17 : vector<16x1xf32> to vector<16x16xf32>
    %19 = arith.subf %15, %18 : vector<16x16xf32>
    %20 = math.exp %19 : vector<16x16xf32>
    %cst_12 = arith.constant dense<0.000000e+00> : vector<16xf32>
    %21 = vector.multi_reduction <add>, %20, %cst_12 [1] : vector<16x16xf32> to vector<16xf32>
    %22 = vector.shape_cast %21 : vector<16xf32> to vector<16x1xf32>
    %23 = tpu.reciprocal %22 {approx = true} : vector<16x1xf32> -> vector<16x1xf32>
    %24 = vector.broadcast %23 : vector<16x1xf32> to vector<16x16xf32>
    %25 = arith.mulf %20, %24 : vector<16x16xf32>
    %cst_13 = arith.constant dense<0.000000e+00> : vector<16x16xf32>
    %26 = tpu.matmul %25, %11, %cst_13 {dimension_numbers = #tpu.dot_dimension_numbers<[1], [0], [0], [1], [0, 0, 1, 1], [], []>} : vector<16x16xf32>, vector<16x16xf32>, vector<16x16xf32> -> vector<16x16xf32>
    %27 = vector.extract_strided_slice %8 {offsets = [0, 16], sizes = [16, 16], strides = [1, 1]} : vector<16x96xf32> to vector<16x16xf32>
    %28 = vector.extract_strided_slice %8 {offsets = [0, 48], sizes = [16, 16], strides = [1, 1]} : vector<16x96xf32> to vector<16x16xf32>
    %29 = vector.extract_strided_slice %8 {offsets = [0, 80], sizes = [16, 16], strides = [1, 1]} : vector<16x96xf32> to vector<16x16xf32>
    %cst_14 = arith.constant dense<0.000000e+00> : vector<16x16xf32>
    %30 = tpu.matmul %27, %28, %cst_14 {dimension_numbers = #tpu.dot_dimension_numbers<[1], [1], [0], [0], [0, 0, 1, 0], [], []>} : vector<16x16xf32>, vector<16x16xf32>, vector<16x16xf32> -> vector<16x16xf32>
    %cst_15 = arith.constant 2.500000e-01 : f32
    %31 = vector.broadcast %cst_15 : f32 to vector<16x16xf32>
    %32 = arith.mulf %30, %31 : vector<16x16xf32>
    %33 = arith.addf %32, %1 : vector<16x16xf32>
    %cst_16 = arith.constant dense<0xFF800000> : vector<16xf32>
    %34 = vector.multi_reduction <maximumf>, %33, %cst_16 [1] : vector<16x16xf32> to vector<16xf32>
    %35 = vector.shape_cast %34 : vector<16xf32> to vector<16x1xf32>
    %36 = vector.broadcast %35 : vector<16x1xf32> to vector<16x16xf32>
    %37 = arith.subf %33, %36 : vector<16x16xf32>
    %38 = math.exp %37 : vector<16x16xf32>
    %cst_17 = arith.constant dense<0.000000e+00> : vector<16xf32>
    %39 = vector.multi_reduction <add>, %38, %cst_17 [1] : vector<16x16xf32> to vector<16xf32>
    %40 = vector.shape_cast %39 : vector<16xf32> to vector<16x1xf32>
    %41 = tpu.reciprocal %40 {approx = true} : vector<16x1xf32> -> vector<16x1xf32>
    %42 = vector.broadcast %41 : vector<16x1xf32> to vector<16x16xf32>
    %43 = arith.mulf %38, %42 : vector<16x16xf32>
    %cst_18 = arith.constant dense<0.000000e+00> : vector<16x16xf32>
    %44 = tpu.matmul %43, %29, %cst_18 {dimension_numbers = #tpu.dot_dimension_numbers<[1], [0], [0], [1], [0, 0, 1, 1], [], []>} : vector<16x16xf32>, vector<16x16xf32>, vector<16x16xf32> -> vector<16x16xf32>
    %45 = tpu.concatenate %26, %44 in 1 : vector<16x16xf32>, vector<16x16xf32> -> vector<16x32xf32>
    %c0_19 = arith.constant 0 : index
    %c0_20 = arith.constant 0 : index
    %c0_21 = arith.constant 0 : index
    %46 = vector.load %arg5[%c0_19, %c0_20, %c0_21] : memref<2x32x32xf32, #tpu.memory_space<vmem>>, vector<1x32x32xf32>
    %47 = vector.shape_cast %46 : vector<1x32x32xf32> to vector<32x32xf32>
    %cst_22 = arith.constant dense<0.000000e+00> : vector<16x32xf32>
    %48 = tpu.matmul %45, %47, %cst_22 {dimension_numbers = #tpu.dot_dimension_numbers<[1], [0], [0], [1], [0, 0, 1, 1], [], []>} : vector<16x32xf32>, vector<32x32xf32>, vector<16x32xf32> -> vector<16x32xf32>
    %c0_23 = arith.constant 0 : index
    %c0_24 = arith.constant 0 : index
    %c0_25 = arith.constant 0 : index
    %49 = vector.load %arg6[%c0_23, %c0_24, %c0_25] : memref<2x1x32xf32, #tpu.memory_space<vmem>>, vector<1x1x32xf32>
    %50 = vector.shape_cast %49 : vector<1x1x32xf32> to vector<1x32xf32>
    %51 = vector.broadcast %50 : vector<1x32xf32> to vector<16x32xf32>
    %52 = arith.addf %48, %51 : vector<16x32xf32>
    %53 = arith.addf %0, %52 : vector<16x32xf32>
    %c0_26 = arith.constant 0 : index
    %c0_27 = arith.constant 0 : index
    %c0_28 = arith.constant 0 : index
    %54 = vector.load %arg7[%c0_26, %c0_27, %c0_28] : memref<2x1x32xf32, #tpu.memory_space<vmem>>, vector<1x1x32xf32>
    %55 = vector.shape_cast %54 : vector<1x1x32xf32> to vector<1x32xf32>
    %c0_29 = arith.constant 0 : index
    %c0_30 = arith.constant 0 : index
    %c0_31 = arith.constant 0 : index
    %56 = vector.load %arg8[%c0_29, %c0_30, %c0_31] : memref<2x1x32xf32, #tpu.memory_space<vmem>>, vector<1x1x32xf32>
    %57 = vector.shape_cast %56 : vector<1x1x32xf32> to vector<1x32xf32>
    %cst_32 = arith.constant dense<0.000000e+00> : vector<16xf32>
    %58 = vector.multi_reduction <add>, %53, %cst_32 [1] : vector<16x32xf32> to vector<16xf32>
    %59 = vector.shape_cast %58 : vector<16xf32> to vector<16x1xf32>
    %cst_33 = arith.constant 3.200000e+01 : f32
    %60 = vector.broadcast %cst_33 : f32 to vector<16x1xf32>
    %61 = arith.divf %59, %60 : vector<16x1xf32>
    %62 = vector.broadcast %61 : vector<16x1xf32> to vector<16x32xf32>
    %63 = arith.subf %53, %62 : vector<16x32xf32>
    %64 = arith.mulf %63, %63 : vector<16x32xf32>
    %cst_34 = arith.constant dense<0.000000e+00> : vector<16xf32>
    %65 = vector.multi_reduction <add>, %64, %cst_34 [1] : vector<16x32xf32> to vector<16xf32>
    %66 = vector.shape_cast %65 : vector<16xf32> to vector<16x1xf32>
    %cst_35 = arith.constant 3.200000e+01 : f32
    %67 = vector.broadcast %cst_35 : f32 to vector<16x1xf32>
    %68 = arith.divf %66, %67 : vector<16x1xf32>
    %69 = vector.broadcast %61 : vector<16x1xf32> to vector<16x32xf32>
    %70 = arith.subf %53, %69 : vector<16x32xf32>
    %cst_36 = arith.constant 9.99999996E-13 : f32
    %71 = vector.broadcast %cst_36 : f32 to vector<16x1xf32>
    %72 = arith.addf %68, %71 : vector<16x1xf32>
    %73 = math.rsqrt %72 : vector<16x1xf32>
    %74 = vector.broadcast %73 : vector<16x1xf32> to vector<16x32xf32>
    %75 = arith.mulf %70, %74 : vector<16x32xf32>
    %76 = vector.broadcast %55 : vector<1x32xf32> to vector<16x32xf32>
    %77 = arith.mulf %75, %76 : vector<16x32xf32>
    %78 = vector.broadcast %57 : vector<1x32xf32> to vector<16x32xf32>
    %79 = arith.addf %77, %78 : vector<16x32xf32>
    %c0_37 = arith.constant 0 : index
    %c0_38 = arith.constant 0 : index
    %c0_39 = arith.constant 0 : index
    %80 = vector.load %arg9[%c0_37, %c0_38, %c0_39] : memref<2x32x64xf32, #tpu.memory_space<vmem>>, vector<1x32x64xf32>
    %81 = vector.shape_cast %80 : vector<1x32x64xf32> to vector<32x64xf32>
    %cst_40 = arith.constant dense<0.000000e+00> : vector<16x64xf32>
    %82 = tpu.matmul %79, %81, %cst_40 {dimension_numbers = #tpu.dot_dimension_numbers<[1], [0], [0], [1], [0, 0, 1, 1], [], []>} : vector<16x32xf32>, vector<32x64xf32>, vector<16x64xf32> -> vector<16x64xf32>
    %c0_41 = arith.constant 0 : index
    %c0_42 = arith.constant 0 : index
    %c0_43 = arith.constant 0 : index
    %83 = vector.load %arg10[%c0_41, %c0_42, %c0_43] : memref<2x1x64xf32, #tpu.memory_space<vmem>>, vector<1x1x64xf32>
    %84 = vector.shape_cast %83 : vector<1x1x64xf32> to vector<1x64xf32>
    %85 = vector.broadcast %84 : vector<1x64xf32> to vector<16x64xf32>
    %86 = arith.addf %82, %85 : vector<16x64xf32>
    %87 = arith.mulf %86, %86 : vector<16x64xf32>
    %88 = arith.mulf %86, %87 : vector<16x64xf32>
    %cst_44 = arith.constant 4.471500e-02 : f32
    %89 = vector.broadcast %cst_44 : f32 to vector<16x64xf32>
    %90 = arith.mulf %89, %88 : vector<16x64xf32>
    %91 = arith.addf %86, %90 : vector<16x64xf32>
    %cst_45 = arith.constant 0.797884583 : f32
    %92 = vector.broadcast %cst_45 : f32 to vector<16x64xf32>
    %93 = arith.mulf %92, %91 : vector<16x64xf32>
    %94 = math.tanh %93 : vector<16x64xf32>
    %cst_46 = arith.constant 1.000000e+00 : f32
    %95 = vector.broadcast %cst_46 : f32 to vector<16x64xf32>
    %96 = arith.addf %95, %94 : vector<16x64xf32>
    %cst_47 = arith.constant 5.000000e-01 : f32
    %97 = vector.broadcast %cst_47 : f32 to vector<16x64xf32>
    %98 = arith.mulf %97, %96 : vector<16x64xf32>
    %99 = arith.mulf %86, %98 : vector<16x64xf32>
    %c0_48 = arith.constant 0 : index
    %c0_49 = arith.constant 0 : index
    %c0_50 = arith.constant 0 : index
    %100 = vector.load %arg11[%c0_48, %c0_49, %c0_50] : memref<2x64x32xf32, #tpu.memory_space<vmem>>, vector<1x64x32xf32>
    %101 = vector.shape_cast %100 : vector<1x64x32xf32> to vector<64x32xf32>
    %cst_51 = arith.constant dense<0.000000e+00> : vector<16x32xf32>
    %102 = tpu.matmul %99, %101, %cst_51 {dimension_numbers = #tpu.dot_dimension_numbers<[1], [0], [0], [1], [0, 0, 1, 1], [], []>} : vector<16x64xf32>, vector<64x32xf32>, vector<16x32xf32> -> vector<16x32xf32>
    %c0_52 = arith.constant 0 : index
    %c0_53 = arith.constant 0 : index
    %c0_54 = arith.constant 0 : index
    %103 = vector.load %arg12[%c0_52, %c0_53, %c0_54] : memref<2x1x32xf32, #tpu.memory_space<vmem>>, vector<1x1x32xf32>
    %104 = vector.shape_cast %103 : vector<1x1x32xf32> to vector<1x32xf32>
    %105 = vector.broadcast %104 : vector<1x32xf32> to vector<16x32xf32>
    %106 = arith.addf %102, %105 : vector<16x32xf32>
    %107 = arith.addf %79, %106 : vector<16x32xf32>
    %c0_55 = arith.constant 0 : index
    %c0_56 = arith.constant 0 : index
    %c0_57 = arith.constant 0 : index
    %108 = vector.load %arg13[%c0_55, %c0_56, %c0_57] : memref<2x1x32xf32, #tpu.memory_space<vmem>>, vector<1x1x32xf32>
    %109 = vector.shape_cast %108 : vector<1x1x32xf32> to vector<1x32xf32>
    %c0_58 = arith.constant 0 : index
    %c0_59 = arith.constant 0 : index
    %c0_60 = arith.constant 0 : index
    %110 = vector.load %arg14[%c0_58, %c0_59, %c0_60] : memref<2x1x32xf32, #tpu.memory_space<vmem>>, vector<1x1x32xf32>
    %111 = vector.shape_cast %110 : vector<1x1x32xf32> to vector<1x32xf32>
    %cst_61 = arith.constant dense<0.000000e+00> : vector<16xf32>
    %112 = vector.multi_reduction <add>, %107, %cst_61 [1] : vector<16x32xf32> to vector<16xf32>
    %113 = vector.shape_cast %112 : vector<16xf32> to vector<16x1xf32>
    %cst_62 = arith.constant 3.200000e+01 : f32
    %114 = vector.broadcast %cst_62 : f32 to vector<16x1xf32>
    %115 = arith.divf %113, %114 : vector<16x1xf32>
    %116 = vector.broadcast %115 : vector<16x1xf32> to vector<16x32xf32>
    %117 = arith.subf %107, %116 : vector<16x32xf32>
    %118 = arith.mulf %117, %117 : vector<16x32xf32>
    %cst_63 = arith.constant dense<0.000000e+00> : vector<16xf32>
    %119 = vector.multi_reduction <add>, %118, %cst_63 [1] : vector<16x32xf32> to vector<16xf32>
    %120 = vector.shape_cast %119 : vector<16xf32> to vector<16x1xf32>
    %cst_64 = arith.constant 3.200000e+01 : f32
    %121 = vector.broadcast %cst_64 : f32 to vector<16x1xf32>
    %122 = arith.divf %120, %121 : vector<16x1xf32>
    %123 = vector.broadcast %115 : vector<16x1xf32> to vector<16x32xf32>
    %124 = arith.subf %107, %123 : vector<16x32xf32>
    %cst_65 = arith.constant 9.99999996E-13 : f32
    %125 = vector.broadcast %cst_65 : f32 to vector<16x1xf32>
    %126 = arith.addf %122, %125 : vector<16x1xf32>
    %127 = math.rsqrt %126 : vector<16x1xf32>
    %128 = vector.broadcast %127 : vector<16x1xf32> to vector<16x32xf32>
    %129 = arith.mulf %124, %128 : vector<16x32xf32>
    %130 = vector.broadcast %109 : vector<1x32xf32> to vector<16x32xf32>
    %131 = arith.mulf %129, %130 : vector<16x32xf32>
    %132 = vector.broadcast %111 : vector<1x32xf32> to vector<16x32xf32>
    %133 = arith.addf %131, %132 : vector<16x32xf32>
    %c1 = arith.constant 1 : index
    %c0_66 = arith.constant 0 : index
    %c0_67 = arith.constant 0 : index
    %134 = vector.load %arg3[%c1, %c0_66, %c0_67] : memref<2x32x96xf32, #tpu.memory_space<vmem>>, vector<1x32x96xf32>
    %135 = vector.shape_cast %134 : vector<1x32x96xf32> to vector<32x96xf32>
    %cst_68 = arith.constant dense<0.000000e+00> : vector<16x96xf32>
    %136 = tpu.matmul %133, %135, %cst_68 {dimension_numbers = #tpu.dot_dimension_numbers<[1], [0], [0], [1], [0, 0, 1, 1], [], []>} : vector<16x32xf32>, vector<32x96xf32>, vector<16x96xf32> -> vector<16x96xf32>
    %c1_69 = arith.constant 1 : index
    %c0_70 = arith.constant 0 : index
    %c0_71 = arith.constant 0 : index
    %137 = vector.load %arg4[%c1_69, %c0_70, %c0_71] : memref<2x1x96xf32, #tpu.memory_space<vmem>>, vector<1x1x96xf32>
    %138 = vector.shape_cast %137 : vector<1x1x96xf32> to vector<1x96xf32>
    %139 = vector.broadcast %138 : vector<1x96xf32> to vector<16x96xf32>
    %140 = arith.addf %136, %139 : vector<16x96xf32>
    %141 = vector.extract_strided_slice %140 {offsets = [0, 0], sizes = [16, 16], strides = [1, 1]} : vector<16x96xf32> to vector<16x16xf32>
    %142 = vector.extract_strided_slice %140 {offsets = [0, 32], sizes = [16, 16], strides = [1, 1]} : vector<16x96xf32> to vector<16x16xf32>
    %143 = vector.extract_strided_slice %140 {offsets = [0, 64], sizes = [16, 16], strides = [1, 1]} : vector<16x96xf32> to vector<16x16xf32>
    %cst_72 = arith.constant dense<0.000000e+00> : vector<16x16xf32>
    %144 = tpu.matmul %141, %142, %cst_72 {dimension_numbers = #tpu.dot_dimension_numbers<[1], [1], [0], [0], [0, 0, 1, 0], [], []>} : vector<16x16xf32>, vector<16x16xf32>, vector<16x16xf32> -> vector<16x16xf32>
    %cst_73 = arith.constant 2.500000e-01 : f32
    %145 = vector.broadcast %cst_73 : f32 to vector<16x16xf32>
    %146 = arith.mulf %144, %145 : vector<16x16xf32>
    %147 = arith.addf %146, %1 : vector<16x16xf32>
    %cst_74 = arith.constant dense<0xFF800000> : vector<16xf32>
    %148 = vector.multi_reduction <maximumf>, %147, %cst_74 [1] : vector<16x16xf32> to vector<16xf32>
    %149 = vector.shape_cast %148 : vector<16xf32> to vector<16x1xf32>
    %150 = vector.broadcast %149 : vector<16x1xf32> to vector<16x16xf32>
    %151 = arith.subf %147, %150 : vector<16x16xf32>
    %152 = math.exp %151 : vector<16x16xf32>
    %cst_75 = arith.constant dense<0.000000e+00> : vector<16xf32>
    %153 = vector.multi_reduction <add>, %152, %cst_75 [1] : vector<16x16xf32> to vector<16xf32>
    %154 = vector.shape_cast %153 : vector<16xf32> to vector<16x1xf32>
    %155 = tpu.reciprocal %154 {approx = true} : vector<16x1xf32> -> vector<16x1xf32>
    %156 = vector.broadcast %155 : vector<16x1xf32> to vector<16x16xf32>
    %157 = arith.mulf %152, %156 : vector<16x16xf32>
    %cst_76 = arith.constant dense<0.000000e+00> : vector<16x16xf32>
    %158 = tpu.matmul %157, %143, %cst_76 {dimension_numbers = #tpu.dot_dimension_numbers<[1], [0], [0], [1], [0, 0, 1, 1], [], []>} : vector<16x16xf32>, vector<16x16xf32>, vector<16x16xf32> -> vector<16x16xf32>
    %159 = vector.extract_strided_slice %140 {offsets = [0, 16], sizes = [16, 16], strides = [1, 1]} : vector<16x96xf32> to vector<16x16xf32>
    %160 = vector.extract_strided_slice %140 {offsets = [0, 48], sizes = [16, 16], strides = [1, 1]} : vector<16x96xf32> to vector<16x16xf32>
    %161 = vector.extract_strided_slice %140 {offsets = [0, 80], sizes = [16, 16], strides = [1, 1]} : vector<16x96xf32> to vector<16x16xf32>
    %cst_77 = arith.constant dense<0.000000e+00> : vector<16x16xf32>
    %162 = tpu.matmul %159, %160, %cst_77 {dimension_numbers = #tpu.dot_dimension_numbers<[1], [1], [0], [0], [0, 0, 1, 0], [], []>} : vector<16x16xf32>, vector<16x16xf32>, vector<16x16xf32> -> vector<16x16xf32>
    %cst_78 = arith.constant 2.500000e-01 : f32
    %163 = vector.broadcast %cst_78 : f32 to vector<16x16xf32>
    %164 = arith.mulf %162, %163 : vector<16x16xf32>
    %165 = arith.addf %164, %1 : vector<16x16xf32>
    %cst_79 = arith.constant dense<0xFF800000> : vector<16xf32>
    %166 = vector.multi_reduction <maximumf>, %165, %cst_79 [1] : vector<16x16xf32> to vector<16xf32>
    %167 = vector.shape_cast %166 : vector<16xf32> to vector<16x1xf32>
    %168 = vector.broadcast %167 : vector<16x1xf32> to vector<16x16xf32>
    %169 = arith.subf %165, %168 : vector<16x16xf32>
    %170 = math.exp %169 : vector<16x16xf32>
    %cst_80 = arith.constant dense<0.000000e+00> : vector<16xf32>
    %171 = vector.multi_reduction <add>, %170, %cst_80 [1] : vector<16x16xf32> to vector<16xf32>
    %172 = vector.shape_cast %171 : vector<16xf32> to vector<16x1xf32>
    %173 = tpu.reciprocal %172 {approx = true} : vector<16x1xf32> -> vector<16x1xf32>
    %174 = vector.broadcast %173 : vector<16x1xf32> to vector<16x16xf32>
    %175 = arith.mulf %170, %174 : vector<16x16xf32>
    %cst_81 = arith.constant dense<0.000000e+00> : vector<16x16xf32>
    %176 = tpu.matmul %175, %161, %cst_81 {dimension_numbers = #tpu.dot_dimension_numbers<[1], [0], [0], [1], [0, 0, 1, 1], [], []>} : vector<16x16xf32>, vector<16x16xf32>, vector<16x16xf32> -> vector<16x16xf32>
    %177 = tpu.concatenate %158, %176 in 1 : vector<16x16xf32>, vector<16x16xf32> -> vector<16x32xf32>
    %c1_82 = arith.constant 1 : index
    %c0_83 = arith.constant 0 : index
    %c0_84 = arith.constant 0 : index
    %178 = vector.load %arg5[%c1_82, %c0_83, %c0_84] : memref<2x32x32xf32, #tpu.memory_space<vmem>>, vector<1x32x32xf32>
    %179 = vector.shape_cast %178 : vector<1x32x32xf32> to vector<32x32xf32>
    %cst_85 = arith.constant dense<0.000000e+00> : vector<16x32xf32>
    %180 = tpu.matmul %177, %179, %cst_85 {dimension_numbers = #tpu.dot_dimension_numbers<[1], [0], [0], [1], [0, 0, 1, 1], [], []>} : vector<16x32xf32>, vector<32x32xf32>, vector<16x32xf32> -> vector<16x32xf32>
    %c1_86 = arith.constant 1 : index
    %c0_87 = arith.constant 0 : index
    %c0_88 = arith.constant 0 : index
    %181 = vector.load %arg6[%c1_86, %c0_87, %c0_88] : memref<2x1x32xf32, #tpu.memory_space<vmem>>, vector<1x1x32xf32>
    %182 = vector.shape_cast %181 : vector<1x1x32xf32> to vector<1x32xf32>
    %183 = vector.broadcast %182 : vector<1x32xf32> to vector<16x32xf32>
    %184 = arith.addf %180, %183 : vector<16x32xf32>
    %185 = arith.addf %133, %184 : vector<16x32xf32>
    %c1_89 = arith.constant 1 : index
    %c0_90 = arith.constant 0 : index
    %c0_91 = arith.constant 0 : index
    %186 = vector.load %arg7[%c1_89, %c0_90, %c0_91] : memref<2x1x32xf32, #tpu.memory_space<vmem>>, vector<1x1x32xf32>
    %187 = vector.shape_cast %186 : vector<1x1x32xf32> to vector<1x32xf32>
    %c1_92 = arith.constant 1 : index
    %c0_93 = arith.constant 0 : index
    %c0_94 = arith.constant 0 : index
    %188 = vector.load %arg8[%c1_92, %c0_93, %c0_94] : memref<2x1x32xf32, #tpu.memory_space<vmem>>, vector<1x1x32xf32>
    %189 = vector.shape_cast %188 : vector<1x1x32xf32> to vector<1x32xf32>
    %cst_95 = arith.constant dense<0.000000e+00> : vector<16xf32>
    %190 = vector.multi_reduction <add>, %185, %cst_95 [1] : vector<16x32xf32> to vector<16xf32>
    %191 = vector.shape_cast %190 : vector<16xf32> to vector<16x1xf32>
    %cst_96 = arith.constant 3.200000e+01 : f32
    %192 = vector.broadcast %cst_96 : f32 to vector<16x1xf32>
    %193 = arith.divf %191, %192 : vector<16x1xf32>
    %194 = vector.broadcast %193 : vector<16x1xf32> to vector<16x32xf32>
    %195 = arith.subf %185, %194 : vector<16x32xf32>
    %196 = arith.mulf %195, %195 : vector<16x32xf32>
    %cst_97 = arith.constant dense<0.000000e+00> : vector<16xf32>
    %197 = vector.multi_reduction <add>, %196, %cst_97 [1] : vector<16x32xf32> to vector<16xf32>
    %198 = vector.shape_cast %197 : vector<16xf32> to vector<16x1xf32>
    %cst_98 = arith.constant 3.200000e+01 : f32
    %199 = vector.broadcast %cst_98 : f32 to vector<16x1xf32>
    %200 = arith.divf %198, %199 : vector<16x1xf32>
    %201 = vector.broadcast %193 : vector<16x1xf32> to vector<16x32xf32>
    %202 = arith.subf %185, %201 : vector<16x32xf32>
    %cst_99 = arith.constant 9.99999996E-13 : f32
    %203 = vector.broadcast %cst_99 : f32 to vector<16x1xf32>
    %204 = arith.addf %200, %203 : vector<16x1xf32>
    %205 = math.rsqrt %204 : vector<16x1xf32>
    %206 = vector.broadcast %205 : vector<16x1xf32> to vector<16x32xf32>
    %207 = arith.mulf %202, %206 : vector<16x32xf32>
    %208 = vector.broadcast %187 : vector<1x32xf32> to vector<16x32xf32>
    %209 = arith.mulf %207, %208 : vector<16x32xf32>
    %210 = vector.broadcast %189 : vector<1x32xf32> to vector<16x32xf32>
    %211 = arith.addf %209, %210 : vector<16x32xf32>
    %c1_100 = arith.constant 1 : index
    %c0_101 = arith.constant 0 : index
    %c0_102 = arith.constant 0 : index
    %212 = vector.load %arg9[%c1_100, %c0_101, %c0_102] : memref<2x32x64xf32, #tpu.memory_space<vmem>>, vector<1x32x64xf32>
    %213 = vector.shape_cast %212 : vector<1x32x64xf32> to vector<32x64xf32>
    %cst_103 = arith.constant dense<0.000000e+00> : vector<16x64xf32>
    %214 = tpu.matmul %211, %213, %cst_103 {dimension_numbers = #tpu.dot_dimension_numbers<[1], [0], [0], [1], [0, 0, 1, 1], [], []>} : vector<16x32xf32>, vector<32x64xf32>, vector<16x64xf32> -> vector<16x64xf32>
    %c1_104 = arith.constant 1 : index
    %c0_105 = arith.constant 0 : index
    %c0_106 = arith.constant 0 : index
    %215 = vector.load %arg10[%c1_104, %c0_105, %c0_106] : memref<2x1x64xf32, #tpu.memory_space<vmem>>, vector<1x1x64xf32>
    %216 = vector.shape_cast %215 : vector<1x1x64xf32> to vector<1x64xf32>
    %217 = vector.broadcast %216 : vector<1x64xf32> to vector<16x64xf32>
    %218 = arith.addf %214, %217 : vector<16x64xf32>
    %219 = arith.mulf %218, %218 : vector<16x64xf32>
    %220 = arith.mulf %218, %219 : vector<16x64xf32>
    %cst_107 = arith.constant 4.471500e-02 : f32
    %221 = vector.broadcast %cst_107 : f32 to vector<16x64xf32>
    %222 = arith.mulf %221, %220 : vector<16x64xf32>
    %223 = arith.addf %218, %222 : vector<16x64xf32>
    %cst_108 = arith.constant 0.797884583 : f32
    %224 = vector.broadcast %cst_108 : f32 to vector<16x64xf32>
    %225 = arith.mulf %224, %223 : vector<16x64xf32>
    %226 = math.tanh %225 : vector<16x64xf32>
    %cst_109 = arith.constant 1.000000e+00 : f32
    %227 = vector.broadcast %cst_109 : f32 to vector<16x64xf32>
    %228 = arith.addf %227, %226 : vector<16x64xf32>
    %cst_110 = arith.constant 5.000000e-01 : f32
    %229 = vector.broadcast %cst_110 : f32 to vector<16x64xf32>
    %230 = arith.mulf %229, %228 : vector<16x64xf32>
    %231 = arith.mulf %218, %230 : vector<16x64xf32>
    %c1_111 = arith.constant 1 : index
    %c0_112 = arith.constant 0 : index
    %c0_113 = arith.constant 0 : index
    %232 = vector.load %arg11[%c1_111, %c0_112, %c0_113] : memref<2x64x32xf32, #tpu.memory_space<vmem>>, vector<1x64x32xf32>
    %233 = vector.shape_cast %232 : vector<1x64x32xf32> to vector<64x32xf32>
    %cst_114 = arith.constant dense<0.000000e+00> : vector<16x32xf32>
    %234 = tpu.matmul %231, %233, %cst_114 {dimension_numbers = #tpu.dot_dimension_numbers<[1], [0], [0], [1], [0, 0, 1, 1], [], []>} : vector<16x64xf32>, vector<64x32xf32>, vector<16x32xf32> -> vector<16x32xf32>
    %c1_115 = arith.constant 1 : index
    %c0_116 = arith.constant 0 : index
    %c0_117 = arith.constant 0 : index
    %235 = vector.load %arg12[%c1_115, %c0_116, %c0_117] : memref<2x1x32xf32, #tpu.memory_space<vmem>>, vector<1x1x32xf32>
    %236 = vector.shape_cast %235 : vector<1x1x32xf32> to vector<1x32xf32>
    %237 = vector.broadcast %236 : vector<1x32xf32> to vector<16x32xf32>
    %238 = arith.addf %234, %237 : vector<16x32xf32>
    %239 = arith.addf %211, %238 : vector<16x32xf32>
    %c1_118 = arith.constant 1 : index
    %c0_119 = arith.constant 0 : index
    %c0_120 = arith.constant 0 : index
    %240 = vector.load %arg13[%c1_118, %c0_119, %c0_120] : memref<2x1x32xf32, #tpu.memory_space<vmem>>, vector<1x1x32xf32>
    %241 = vector.shape_cast %240 : vector<1x1x32xf32> to vector<1x32xf32>
    %c1_121 = arith.constant 1 : index
    %c0_122 = arith.constant 0 : index
    %c0_123 = arith.constant 0 : index
    %242 = vector.load %arg14[%c1_121, %c0_122, %c0_123] : memref<2x1x32xf32, #tpu.memory_space<vmem>>, vector<1x1x32xf32>
    %243 = vector.shape_cast %242 : vector<1x1x32xf32> to vector<1x32xf32>
    %cst_124 = arith.constant dense<0.000000e+00> : vector<16xf32>
    %244 = vector.multi_reduction <add>, %239, %cst_124 [1] : vector<16x32xf32> to vector<16xf32>
    %245 = vector.shape_cast %244 : vector<16xf32> to vector<16x1xf32>
    %cst_125 = arith.constant 3.200000e+01 : f32
    %246 = vector.broadcast %cst_125 : f32 to vector<16x1xf32>
    %247 = arith.divf %245, %246 : vector<16x1xf32>
    %248 = vector.broadcast %247 : vector<16x1xf32> to vector<16x32xf32>
    %249 = arith.subf %239, %248 : vector<16x32xf32>
    %250 = arith.mulf %249, %249 : vector<16x32xf32>
    %cst_126 = arith.constant dense<0.000000e+00> : vector<16xf32>
    %251 = vector.multi_reduction <add>, %250, %cst_126 [1] : vector<16x32xf32> to vector<16xf32>
    %252 = vector.shape_cast %251 : vector<16xf32> to vector<16x1xf32>
    %cst_127 = arith.constant 3.200000e+01 : f32
    %253 = vector.broadcast %cst_127 : f32 to vector<16x1xf32>
    %254 = arith.divf %252, %253 : vector<16x1xf32>
    %255 = vector.broadcast %247 : vector<16x1xf32> to vector<16x32xf32>
    %256 = arith.subf %239, %255 : vector<16x32xf32>
    %cst_128 = arith.constant 9.99999996E-13 : f32
    %257 = vector.broadcast %cst_128 : f32 to vector<16x1xf32>
    %258 = arith.addf %254, %257 : vector<16x1xf32>
    %259 = math.rsqrt %258 : vector<16x1xf32>
    %260 = vector.broadcast %259 : vector<16x1xf32> to vector<16x32xf32>
    %261 = arith.mulf %256, %260 : vector<16x32xf32>
    %262 = vector.broadcast %241 : vector<1x32xf32> to vector<16x32xf32>
    %263 = arith.mulf %261, %262 : vector<16x32xf32>
    %264 = vector.broadcast %243 : vector<1x32xf32> to vector<16x32xf32>
    %265 = arith.addf %263, %264 : vector<16x32xf32>
    %c0_129 = arith.constant 0 : index
    %c0_130 = arith.constant 0 : index
    %266 = vector.load %arg15[%c0_129, %c0_130] : memref<32x128xf32, #tpu.memory_space<vmem>>, vector<32x128xf32>
    %cst_131 = arith.constant dense<0.000000e+00> : vector<16x128xf32>
    %267 = tpu.matmul %265, %266, %cst_131 {dimension_numbers = #tpu.dot_dimension_numbers<[1], [0], [0], [1], [0, 0, 1, 1], [], []>} : vector<16x32xf32>, vector<32x128xf32>, vector<16x128xf32> -> vector<16x128xf32>
    %c0_132 = arith.constant 0 : index
    %c0_133 = arith.constant 0 : index
    %268 = vector.load %arg17[%c0_132, %c0_133] : memref<1x128xf32, #tpu.memory_space<vmem>>, vector<1x128xf32>
    %269 = vector.broadcast %268 : vector<1x128xf32> to vector<16x128xf32>
    %270 = arith.addf %267, %269 : vector<16x128xf32>
    %c0_134 = arith.constant 0 : index
    %c0_135 = arith.constant 0 : index
    %271 = vector.load %arg16[%c0_134, %c0_135] : memref<16x128xf32, #tpu.memory_space<vmem>>, vector<16x128xf32>
    %272 = tpu.iota {dimensions = array<i32: 0>} : vector<4x64xi32>
    %c2_i32 = arith.constant 2 : i32
    %273 = vector.broadcast %c2_i32 : i32 to vector<4x64xi32>
    %274 = arith.cmpi slt, %272, %273 : vector<4x64xi32>
    %275 = vector.extract_strided_slice %270 {offsets = [0, 0], sizes = [2, 64], strides = [1, 1]} : vector<16x128xf32> to vector<2x64xf32>
    %276 = vector.extract_strided_slice %270 {offsets = [14, 64], sizes = [2, 64], strides = [1, 1]} : vector<16x128xf32> to vector<2x64xf32>
    %277 = tpu.concatenate %275, %276 in 0 : vector<2x64xf32>, vector<2x64xf32> -> vector<4x64xf32>
    %278 = vector.extract_strided_slice %270 {offsets = [2, 0], sizes = [2, 64], strides = [1, 1]} : vector<16x128xf32> to vector<2x64xf32>
    %279 = vector.extract_strided_slice %270 {offsets = [12, 64], sizes = [2, 64], strides = [1, 1]} : vector<16x128xf32> to vector<2x64xf32>
    %280 = tpu.concatenate %278, %279 in 0 : vector<2x64xf32>, vector<2x64xf32> -> vector<4x64xf32>
    %281 = vector.extract_strided_slice %270 {offsets = [4, 0], sizes = [2, 64], strides = [1, 1]} : vector<16x128xf32> to vector<2x64xf32>
    %282 = vector.extract_strided_slice %270 {offsets = [10, 64], sizes = [2, 64], strides = [1, 1]} : vector<16x128xf32> to vector<2x64xf32>
    %283 = tpu.concatenate %281, %282 in 0 : vector<2x64xf32>, vector<2x64xf32> -> vector<4x64xf32>
    %284 = vector.extract_strided_slice %270 {offsets = [6, 0], sizes = [2, 64], strides = [1, 1]} : vector<16x128xf32> to vector<2x64xf32>
    %285 = vector.extract_strided_slice %270 {offsets = [8, 64], sizes = [2, 64], strides = [1, 1]} : vector<16x128xf32> to vector<2x64xf32>
    %286 = tpu.concatenate %284, %285 in 0 : vector<2x64xf32>, vector<2x64xf32> -> vector<4x64xf32>
    %287 = vector.extract_strided_slice %270 {offsets = [8, 0], sizes = [2, 64], strides = [1, 1]} : vector<16x128xf32> to vector<2x64xf32>
    %288 = vector.extract_strided_slice %270 {offsets = [6, 64], sizes = [2, 64], strides = [1, 1]} : vector<16x128xf32> to vector<2x64xf32>
    %289 = tpu.concatenate %287, %288 in 0 : vector<2x64xf32>, vector<2x64xf32> -> vector<4x64xf32>
    %290 = vector.extract_strided_slice %270 {offsets = [10, 0], sizes = [2, 64], strides = [1, 1]} : vector<16x128xf32> to vector<2x64xf32>
    %291 = vector.extract_strided_slice %270 {offsets = [4, 64], sizes = [2, 64], strides = [1, 1]} : vector<16x128xf32> to vector<2x64xf32>
    %292 = tpu.concatenate %290, %291 in 0 : vector<2x64xf32>, vector<2x64xf32> -> vector<4x64xf32>
    %293 = vector.extract_strided_slice %270 {offsets = [12, 0], sizes = [2, 64], strides = [1, 1]} : vector<16x128xf32> to vector<2x64xf32>
    %294 = vector.extract_strided_slice %270 {offsets = [2, 64], sizes = [2, 64], strides = [1, 1]} : vector<16x128xf32> to vector<2x64xf32>
    %295 = tpu.concatenate %293, %294 in 0 : vector<2x64xf32>, vector<2x64xf32> -> vector<4x64xf32>
    %296 = vector.extract_strided_slice %270 {offsets = [14, 0], sizes = [2, 64], strides = [1, 1]} : vector<16x128xf32> to vector<2x64xf32>
    %297 = vector.extract_strided_slice %270 {offsets = [0, 64], sizes = [2, 64], strides = [1, 1]} : vector<16x128xf32> to vector<2x64xf32>
    %298 = tpu.concatenate %296, %297 in 0 : vector<2x64xf32>, vector<2x64xf32> -> vector<4x64xf32>
    %cst_136 = arith.constant 0.000000e+00 : f32
    %299 = vector.broadcast %cst_136 : f32 to vector<4x16xf32>
    %cst_137 = arith.constant 0.000000e+00 : f32
    %300 = vector.broadcast %cst_137 : f32 to vector<4x16xf32>
    %cst_138 = arith.constant dense<0.000000e+00> : vector<4x128xf32>
    %301 = tpu.matmul %299, %271, %cst_138 {dimension_numbers = #tpu.dot_dimension_numbers<[1], [0], [0], [1], [0, 0, 1, 1], [], []>} : vector<4x16xf32>, vector<16x128xf32>, vector<4x128xf32> -> vector<4x128xf32>
    %302 = vector.extract_strided_slice %301 {offsets = [0, 0], sizes = [4, 64], strides = [1, 1]} : vector<4x128xf32> to vector<4x64xf32>
    %303 = vector.extract_strided_slice %301 {offsets = [0, 64], sizes = [4, 64], strides = [1, 1]} : vector<4x128xf32> to vector<4x64xf32>
    %304 = arith.select %274, %302, %303 : vector<4x64xi1>, vector<4x64xf32>
    %305 = arith.addf %277, %304 : vector<4x64xf32>
    %306 = vector.extract_strided_slice %305 {offsets = [0, 0], sizes = [4, 16], strides = [1, 1]} : vector<4x64xf32> to vector<4x16xf32>
    %307 = arith.negf %306 : vector<4x16xf32>
    %308 = math.exp %307 : vector<4x16xf32>
    %cst_139 = arith.constant 1.000000e+00 : f32
    %309 = vector.broadcast %cst_139 : f32 to vector<4x16xf32>
    %310 = arith.addf %309, %308 : vector<4x16xf32>
    %311 = arith.divf %309, %310 : vector<4x16xf32>
    %312 = vector.extract_strided_slice %305 {offsets = [0, 16], sizes = [4, 16], strides = [1, 1]} : vector<4x64xf32> to vector<4x16xf32>
    %313 = arith.negf %312 : vector<4x16xf32>
    %314 = math.exp %313 : vector<4x16xf32>
    %cst_140 = arith.constant 1.000000e+00 : f32
    %315 = vector.broadcast %cst_140 : f32 to vector<4x16xf32>
    %316 = arith.addf %315, %314 : vector<4x16xf32>
    %317 = arith.divf %315, %316 : vector<4x16xf32>
    %318 = vector.extract_strided_slice %305 {offsets = [0, 32], sizes = [4, 16], strides = [1, 1]} : vector<4x64xf32> to vector<4x16xf32>
    %319 = math.tanh %318 : vector<4x16xf32>
    %320 = vector.extract_strided_slice %305 {offsets = [0, 48], sizes = [4, 16], strides = [1, 1]} : vector<4x64xf32> to vector<4x16xf32>
    %321 = arith.negf %320 : vector<4x16xf32>
    %322 = math.exp %321 : vector<4x16xf32>
    %cst_141 = arith.constant 1.000000e+00 : f32
    %323 = vector.broadcast %cst_141 : f32 to vector<4x16xf32>
    %324 = arith.addf %323, %322 : vector<4x16xf32>
    %325 = arith.divf %323, %324 : vector<4x16xf32>
    %326 = arith.mulf %317, %300 : vector<4x16xf32>
    %327 = arith.mulf %311, %319 : vector<4x16xf32>
    %328 = arith.addf %326, %327 : vector<4x16xf32>
    %329 = math.tanh %328 : vector<4x16xf32>
    %330 = arith.mulf %325, %329 : vector<4x16xf32>
    %331 = vector.extract_strided_slice %330 {offsets = [0, 0], sizes = [2, 16], strides = [1, 1]} : vector<4x16xf32> to vector<2x16xf32>
    %332 = vector.extract_strided_slice %330 {offsets = [2, 0], sizes = [2, 16], strides = [1, 1]} : vector<4x16xf32> to vector<2x16xf32>
    %cst_142 = arith.constant dense<0.000000e+00> : vector<4x128xf32>
    %333 = tpu.matmul %330, %271, %cst_142 {dimension_numbers = #tpu.dot_dimension_numbers<[1], [0], [0], [1], [0, 0, 1, 1], [], []>} : vector<4x16xf32>, vector<16x128xf32>, vector<4x128xf32> -> vector<4x128xf32>
    %334 = vector.extract_strided_slice %333 {offsets = [0, 0], sizes = [4, 64], strides = [1, 1]} : vector<4x128xf32> to vector<4x64xf32>
    %335 = vector.extract_strided_slice %333 {offsets = [0, 64], sizes = [4, 64], strides = [1, 1]} : vector<4x128xf32> to vector<4x64xf32>
    %336 = arith.select %274, %334, %335 : vector<4x64xi1>, vector<4x64xf32>
    %337 = arith.addf %280, %336 : vector<4x64xf32>
    %338 = vector.extract_strided_slice %337 {offsets = [0, 0], sizes = [4, 16], strides = [1, 1]} : vector<4x64xf32> to vector<4x16xf32>
    %339 = arith.negf %338 : vector<4x16xf32>
    %340 = math.exp %339 : vector<4x16xf32>
    %cst_143 = arith.constant 1.000000e+00 : f32
    %341 = vector.broadcast %cst_143 : f32 to vector<4x16xf32>
    %342 = arith.addf %341, %340 : vector<4x16xf32>
    %343 = arith.divf %341, %342 : vector<4x16xf32>
    %344 = vector.extract_strided_slice %337 {offsets = [0, 16], sizes = [4, 16], strides = [1, 1]} : vector<4x64xf32> to vector<4x16xf32>
    %345 = arith.negf %344 : vector<4x16xf32>
    %346 = math.exp %345 : vector<4x16xf32>
    %cst_144 = arith.constant 1.000000e+00 : f32
    %347 = vector.broadcast %cst_144 : f32 to vector<4x16xf32>
    %348 = arith.addf %347, %346 : vector<4x16xf32>
    %349 = arith.divf %347, %348 : vector<4x16xf32>
    %350 = vector.extract_strided_slice %337 {offsets = [0, 32], sizes = [4, 16], strides = [1, 1]} : vector<4x64xf32> to vector<4x16xf32>
    %351 = math.tanh %350 : vector<4x16xf32>
    %352 = vector.extract_strided_slice %337 {offsets = [0, 48], sizes = [4, 16], strides = [1, 1]} : vector<4x64xf32> to vector<4x16xf32>
    %353 = arith.negf %352 : vector<4x16xf32>
    %354 = math.exp %353 : vector<4x16xf32>
    %cst_145 = arith.constant 1.000000e+00 : f32
    %355 = vector.broadcast %cst_145 : f32 to vector<4x16xf32>
    %356 = arith.addf %355, %354 : vector<4x16xf32>
    %357 = arith.divf %355, %356 : vector<4x16xf32>
    %358 = arith.mulf %349, %328 : vector<4x16xf32>
    %359 = arith.mulf %343, %351 : vector<4x16xf32>
    %360 = arith.addf %358, %359 : vector<4x16xf32>
    %361 = math.tanh %360 : vector<4x16xf32>
    %362 = arith.mulf %357, %361 : vector<4x16xf32>
    %363 = vector.extract_strided_slice %362 {offsets = [0, 0], sizes = [2, 16], strides = [1, 1]} : vector<4x16xf32> to vector<2x16xf32>
    %364 = vector.extract_strided_slice %362 {offsets = [2, 0], sizes = [2, 16], strides = [1, 1]} : vector<4x16xf32> to vector<2x16xf32>
    %cst_146 = arith.constant dense<0.000000e+00> : vector<4x128xf32>
    %365 = tpu.matmul %362, %271, %cst_146 {dimension_numbers = #tpu.dot_dimension_numbers<[1], [0], [0], [1], [0, 0, 1, 1], [], []>} : vector<4x16xf32>, vector<16x128xf32>, vector<4x128xf32> -> vector<4x128xf32>
    %366 = vector.extract_strided_slice %365 {offsets = [0, 0], sizes = [4, 64], strides = [1, 1]} : vector<4x128xf32> to vector<4x64xf32>
    %367 = vector.extract_strided_slice %365 {offsets = [0, 64], sizes = [4, 64], strides = [1, 1]} : vector<4x128xf32> to vector<4x64xf32>
    %368 = arith.select %274, %366, %367 : vector<4x64xi1>, vector<4x64xf32>
    %369 = arith.addf %283, %368 : vector<4x64xf32>
    %370 = vector.extract_strided_slice %369 {offsets = [0, 0], sizes = [4, 16], strides = [1, 1]} : vector<4x64xf32> to vector<4x16xf32>
    %371 = arith.negf %370 : vector<4x16xf32>
    %372 = math.exp %371 : vector<4x16xf32>
    %cst_147 = arith.constant 1.000000e+00 : f32
    %373 = vector.broadcast %cst_147 : f32 to vector<4x16xf32>
    %374 = arith.addf %373, %372 : vector<4x16xf32>
    %375 = arith.divf %373, %374 : vector<4x16xf32>
    %376 = vector.extract_strided_slice %369 {offsets = [0, 16], sizes = [4, 16], strides = [1, 1]} : vector<4x64xf32> to vector<4x16xf32>
    %377 = arith.negf %376 : vector<4x16xf32>
    %378 = math.exp %377 : vector<4x16xf32>
    %cst_148 = arith.constant 1.000000e+00 : f32
    %379 = vector.broadcast %cst_148 : f32 to vector<4x16xf32>
    %380 = arith.addf %379, %378 : vector<4x16xf32>
    %381 = arith.divf %379, %380 : vector<4x16xf32>
    %382 = vector.extract_strided_slice %369 {offsets = [0, 32], sizes = [4, 16], strides = [1, 1]} : vector<4x64xf32> to vector<4x16xf32>
    %383 = math.tanh %382 : vector<4x16xf32>
    %384 = vector.extract_strided_slice %369 {offsets = [0, 48], sizes = [4, 16], strides = [1, 1]} : vector<4x64xf32> to vector<4x16xf32>
    %385 = arith.negf %384 : vector<4x16xf32>
    %386 = math.exp %385 : vector<4x16xf32>
    %cst_149 = arith.constant 1.000000e+00 : f32
    %387 = vector.broadcast %cst_149 : f32 to vector<4x16xf32>
    %388 = arith.addf %387, %386 : vector<4x16xf32>
    %389 = arith.divf %387, %388 : vector<4x16xf32>
    %390 = arith.mulf %381, %360 : vector<4x16xf32>
    %391 = arith.mulf %375, %383 : vector<4x16xf32>
    %392 = arith.addf %390, %391 : vector<4x16xf32>
    %393 = math.tanh %392 : vector<4x16xf32>
    %394 = arith.mulf %389, %393 : vector<4x16xf32>
    %395 = vector.extract_strided_slice %394 {offsets = [0, 0], sizes = [2, 16], strides = [1, 1]} : vector<4x16xf32> to vector<2x16xf32>
    %396 = vector.extract_strided_slice %394 {offsets = [2, 0], sizes = [2, 16], strides = [1, 1]} : vector<4x16xf32> to vector<2x16xf32>
    %cst_150 = arith.constant dense<0.000000e+00> : vector<4x128xf32>
    %397 = tpu.matmul %394, %271, %cst_150 {dimension_numbers = #tpu.dot_dimension_numbers<[1], [0], [0], [1], [0, 0, 1, 1], [], []>} : vector<4x16xf32>, vector<16x128xf32>, vector<4x128xf32> -> vector<4x128xf32>
    %398 = vector.extract_strided_slice %397 {offsets = [0, 0], sizes = [4, 64], strides = [1, 1]} : vector<4x128xf32> to vector<4x64xf32>
    %399 = vector.extract_strided_slice %397 {offsets = [0, 64], sizes = [4, 64], strides = [1, 1]} : vector<4x128xf32> to vector<4x64xf32>
    %400 = arith.select %274, %398, %399 : vector<4x64xi1>, vector<4x64xf32>
    %401 = arith.addf %286, %400 : vector<4x64xf32>
    %402 = vector.extract_strided_slice %401 {offsets = [0, 0], sizes = [4, 16], strides = [1, 1]} : vector<4x64xf32> to vector<4x16xf32>
    %403 = arith.negf %402 : vector<4x16xf32>
    %404 = math.exp %403 : vector<4x16xf32>
    %cst_151 = arith.constant 1.000000e+00 : f32
    %405 = vector.broadcast %cst_151 : f32 to vector<4x16xf32>
    %406 = arith.addf %405, %404 : vector<4x16xf32>
    %407 = arith.divf %405, %406 : vector<4x16xf32>
    %408 = vector.extract_strided_slice %401 {offsets = [0, 16], sizes = [4, 16], strides = [1, 1]} : vector<4x64xf32> to vector<4x16xf32>
    %409 = arith.negf %408 : vector<4x16xf32>
    %410 = math.exp %409 : vector<4x16xf32>
    %cst_152 = arith.constant 1.000000e+00 : f32
    %411 = vector.broadcast %cst_152 : f32 to vector<4x16xf32>
    %412 = arith.addf %411, %410 : vector<4x16xf32>
    %413 = arith.divf %411, %412 : vector<4x16xf32>
    %414 = vector.extract_strided_slice %401 {offsets = [0, 32], sizes = [4, 16], strides = [1, 1]} : vector<4x64xf32> to vector<4x16xf32>
    %415 = math.tanh %414 : vector<4x16xf32>
    %416 = vector.extract_strided_slice %401 {offsets = [0, 48], sizes = [4, 16], strides = [1, 1]} : vector<4x64xf32> to vector<4x16xf32>
    %417 = arith.negf %416 : vector<4x16xf32>
    %418 = math.exp %417 : vector<4x16xf32>
    %cst_153 = arith.constant 1.000000e+00 : f32
    %419 = vector.broadcast %cst_153 : f32 to vector<4x16xf32>
    %420 = arith.addf %419, %418 : vector<4x16xf32>
    %421 = arith.divf %419, %420 : vector<4x16xf32>
    %422 = arith.mulf %413, %392 : vector<4x16xf32>
    %423 = arith.mulf %407, %415 : vector<4x16xf32>
    %424 = arith.addf %422, %423 : vector<4x16xf32>
    %425 = math.tanh %424 : vector<4x16xf32>
    %426 = arith.mulf %421, %425 : vector<4x16xf32>
    %427 = vector.extract_strided_slice %426 {offsets = [0, 0], sizes = [2, 16], strides = [1, 1]} : vector<4x16xf32> to vector<2x16xf32>
    %428 = vector.extract_strided_slice %426 {offsets = [2, 0], sizes = [2, 16], strides = [1, 1]} : vector<4x16xf32> to vector<2x16xf32>
    %cst_154 = arith.constant dense<0.000000e+00> : vector<4x128xf32>
    %429 = tpu.matmul %426, %271, %cst_154 {dimension_numbers = #tpu.dot_dimension_numbers<[1], [0], [0], [1], [0, 0, 1, 1], [], []>} : vector<4x16xf32>, vector<16x128xf32>, vector<4x128xf32> -> vector<4x128xf32>
    %430 = vector.extract_strided_slice %429 {offsets = [0, 0], sizes = [4, 64], strides = [1, 1]} : vector<4x128xf32> to vector<4x64xf32>
    %431 = vector.extract_strided_slice %429 {offsets = [0, 64], sizes = [4, 64], strides = [1, 1]} : vector<4x128xf32> to vector<4x64xf32>
    %432 = arith.select %274, %430, %431 : vector<4x64xi1>, vector<4x64xf32>
    %433 = arith.addf %289, %432 : vector<4x64xf32>
    %434 = vector.extract_strided_slice %433 {offsets = [0, 0], sizes = [4, 16], strides = [1, 1]} : vector<4x64xf32> to vector<4x16xf32>
    %435 = arith.negf %434 : vector<4x16xf32>
    %436 = math.exp %435 : vector<4x16xf32>
    %cst_155 = arith.constant 1.000000e+00 : f32
    %437 = vector.broadcast %cst_155 : f32 to vector<4x16xf32>
    %438 = arith.addf %437, %436 : vector<4x16xf32>
    %439 = arith.divf %437, %438 : vector<4x16xf32>
    %440 = vector.extract_strided_slice %433 {offsets = [0, 16], sizes = [4, 16], strides = [1, 1]} : vector<4x64xf32> to vector<4x16xf32>
    %441 = arith.negf %440 : vector<4x16xf32>
    %442 = math.exp %441 : vector<4x16xf32>
    %cst_156 = arith.constant 1.000000e+00 : f32
    %443 = vector.broadcast %cst_156 : f32 to vector<4x16xf32>
    %444 = arith.addf %443, %442 : vector<4x16xf32>
    %445 = arith.divf %443, %444 : vector<4x16xf32>
    %446 = vector.extract_strided_slice %433 {offsets = [0, 32], sizes = [4, 16], strides = [1, 1]} : vector<4x64xf32> to vector<4x16xf32>
    %447 = math.tanh %446 : vector<4x16xf32>
    %448 = vector.extract_strided_slice %433 {offsets = [0, 48], sizes = [4, 16], strides = [1, 1]} : vector<4x64xf32> to vector<4x16xf32>
    %449 = arith.negf %448 : vector<4x16xf32>
    %450 = math.exp %449 : vector<4x16xf32>
    %cst_157 = arith.constant 1.000000e+00 : f32
    %451 = vector.broadcast %cst_157 : f32 to vector<4x16xf32>
    %452 = arith.addf %451, %450 : vector<4x16xf32>
    %453 = arith.divf %451, %452 : vector<4x16xf32>
    %454 = arith.mulf %445, %424 : vector<4x16xf32>
    %455 = arith.mulf %439, %447 : vector<4x16xf32>
    %456 = arith.addf %454, %455 : vector<4x16xf32>
    %457 = math.tanh %456 : vector<4x16xf32>
    %458 = arith.mulf %453, %457 : vector<4x16xf32>
    %459 = vector.extract_strided_slice %458 {offsets = [0, 0], sizes = [2, 16], strides = [1, 1]} : vector<4x16xf32> to vector<2x16xf32>
    %460 = vector.extract_strided_slice %458 {offsets = [2, 0], sizes = [2, 16], strides = [1, 1]} : vector<4x16xf32> to vector<2x16xf32>
    %cst_158 = arith.constant dense<0.000000e+00> : vector<4x128xf32>
    %461 = tpu.matmul %458, %271, %cst_158 {dimension_numbers = #tpu.dot_dimension_numbers<[1], [0], [0], [1], [0, 0, 1, 1], [], []>} : vector<4x16xf32>, vector<16x128xf32>, vector<4x128xf32> -> vector<4x128xf32>
    %462 = vector.extract_strided_slice %461 {offsets = [0, 0], sizes = [4, 64], strides = [1, 1]} : vector<4x128xf32> to vector<4x64xf32>
    %463 = vector.extract_strided_slice %461 {offsets = [0, 64], sizes = [4, 64], strides = [1, 1]} : vector<4x128xf32> to vector<4x64xf32>
    %464 = arith.select %274, %462, %463 : vector<4x64xi1>, vector<4x64xf32>
    %465 = arith.addf %292, %464 : vector<4x64xf32>
    %466 = vector.extract_strided_slice %465 {offsets = [0, 0], sizes = [4, 16], strides = [1, 1]} : vector<4x64xf32> to vector<4x16xf32>
    %467 = arith.negf %466 : vector<4x16xf32>
    %468 = math.exp %467 : vector<4x16xf32>
    %cst_159 = arith.constant 1.000000e+00 : f32
    %469 = vector.broadcast %cst_159 : f32 to vector<4x16xf32>
    %470 = arith.addf %469, %468 : vector<4x16xf32>
    %471 = arith.divf %469, %470 : vector<4x16xf32>
    %472 = vector.extract_strided_slice %465 {offsets = [0, 16], sizes = [4, 16], strides = [1, 1]} : vector<4x64xf32> to vector<4x16xf32>
    %473 = arith.negf %472 : vector<4x16xf32>
    %474 = math.exp %473 : vector<4x16xf32>
    %cst_160 = arith.constant 1.000000e+00 : f32
    %475 = vector.broadcast %cst_160 : f32 to vector<4x16xf32>
    %476 = arith.addf %475, %474 : vector<4x16xf32>
    %477 = arith.divf %475, %476 : vector<4x16xf32>
    %478 = vector.extract_strided_slice %465 {offsets = [0, 32], sizes = [4, 16], strides = [1, 1]} : vector<4x64xf32> to vector<4x16xf32>
    %479 = math.tanh %478 : vector<4x16xf32>
    %480 = vector.extract_strided_slice %465 {offsets = [0, 48], sizes = [4, 16], strides = [1, 1]} : vector<4x64xf32> to vector<4x16xf32>
    %481 = arith.negf %480 : vector<4x16xf32>
    %482 = math.exp %481 : vector<4x16xf32>
    %cst_161 = arith.constant 1.000000e+00 : f32
    %483 = vector.broadcast %cst_161 : f32 to vector<4x16xf32>
    %484 = arith.addf %483, %482 : vector<4x16xf32>
    %485 = arith.divf %483, %484 : vector<4x16xf32>
    %486 = arith.mulf %477, %456 : vector<4x16xf32>
    %487 = arith.mulf %471, %479 : vector<4x16xf32>
    %488 = arith.addf %486, %487 : vector<4x16xf32>
    %489 = math.tanh %488 : vector<4x16xf32>
    %490 = arith.mulf %485, %489 : vector<4x16xf32>
    %491 = vector.extract_strided_slice %490 {offsets = [0, 0], sizes = [2, 16], strides = [1, 1]} : vector<4x16xf32> to vector<2x16xf32>
    %492 = vector.extract_strided_slice %490 {offsets = [2, 0], sizes = [2, 16], strides = [1, 1]} : vector<4x16xf32> to vector<2x16xf32>
    %cst_162 = arith.constant dense<0.000000e+00> : vector<4x128xf32>
    %493 = tpu.matmul %490, %271, %cst_162 {dimension_numbers = #tpu.dot_dimension_numbers<[1], [0], [0], [1], [0, 0, 1, 1], [], []>} : vector<4x16xf32>, vector<16x128xf32>, vector<4x128xf32> -> vector<4x128xf32>
    %494 = vector.extract_strided_slice %493 {offsets = [0, 0], sizes = [4, 64], strides = [1, 1]} : vector<4x128xf32> to vector<4x64xf32>
    %495 = vector.extract_strided_slice %493 {offsets = [0, 64], sizes = [4, 64], strides = [1, 1]} : vector<4x128xf32> to vector<4x64xf32>
    %496 = arith.select %274, %494, %495 : vector<4x64xi1>, vector<4x64xf32>
    %497 = arith.addf %295, %496 : vector<4x64xf32>
    %498 = vector.extract_strided_slice %497 {offsets = [0, 0], sizes = [4, 16], strides = [1, 1]} : vector<4x64xf32> to vector<4x16xf32>
    %499 = arith.negf %498 : vector<4x16xf32>
    %500 = math.exp %499 : vector<4x16xf32>
    %cst_163 = arith.constant 1.000000e+00 : f32
    %501 = vector.broadcast %cst_163 : f32 to vector<4x16xf32>
    %502 = arith.addf %501, %500 : vector<4x16xf32>
    %503 = arith.divf %501, %502 : vector<4x16xf32>
    %504 = vector.extract_strided_slice %497 {offsets = [0, 16], sizes = [4, 16], strides = [1, 1]} : vector<4x64xf32> to vector<4x16xf32>
    %505 = arith.negf %504 : vector<4x16xf32>
    %506 = math.exp %505 : vector<4x16xf32>
    %cst_164 = arith.constant 1.000000e+00 : f32
    %507 = vector.broadcast %cst_164 : f32 to vector<4x16xf32>
    %508 = arith.addf %507, %506 : vector<4x16xf32>
    %509 = arith.divf %507, %508 : vector<4x16xf32>
    %510 = vector.extract_strided_slice %497 {offsets = [0, 32], sizes = [4, 16], strides = [1, 1]} : vector<4x64xf32> to vector<4x16xf32>
    %511 = math.tanh %510 : vector<4x16xf32>
    %512 = vector.extract_strided_slice %497 {offsets = [0, 48], sizes = [4, 16], strides = [1, 1]} : vector<4x64xf32> to vector<4x16xf32>
    %513 = arith.negf %512 : vector<4x16xf32>
    %514 = math.exp %513 : vector<4x16xf32>
    %cst_165 = arith.constant 1.000000e+00 : f32
    %515 = vector.broadcast %cst_165 : f32 to vector<4x16xf32>
    %516 = arith.addf %515, %514 : vector<4x16xf32>
    %517 = arith.divf %515, %516 : vector<4x16xf32>
    %518 = arith.mulf %509, %488 : vector<4x16xf32>
    %519 = arith.mulf %503, %511 : vector<4x16xf32>
    %520 = arith.addf %518, %519 : vector<4x16xf32>
    %521 = math.tanh %520 : vector<4x16xf32>
    %522 = arith.mulf %517, %521 : vector<4x16xf32>
    %523 = vector.extract_strided_slice %522 {offsets = [0, 0], sizes = [2, 16], strides = [1, 1]} : vector<4x16xf32> to vector<2x16xf32>
    %524 = vector.extract_strided_slice %522 {offsets = [2, 0], sizes = [2, 16], strides = [1, 1]} : vector<4x16xf32> to vector<2x16xf32>
    %cst_166 = arith.constant dense<0.000000e+00> : vector<4x128xf32>
    %525 = tpu.matmul %522, %271, %cst_166 {dimension_numbers = #tpu.dot_dimension_numbers<[1], [0], [0], [1], [0, 0, 1, 1], [], []>} : vector<4x16xf32>, vector<16x128xf32>, vector<4x128xf32> -> vector<4x128xf32>
    %526 = vector.extract_strided_slice %525 {offsets = [0, 0], sizes = [4, 64], strides = [1, 1]} : vector<4x128xf32> to vector<4x64xf32>
    %527 = vector.extract_strided_slice %525 {offsets = [0, 64], sizes = [4, 64], strides = [1, 1]} : vector<4x128xf32> to vector<4x64xf32>
    %528 = arith.select %274, %526, %527 : vector<4x64xi1>, vector<4x64xf32>
    %529 = arith.addf %298, %528 : vector<4x64xf32>
    %530 = vector.extract_strided_slice %529 {offsets = [0, 0], sizes = [4, 16], strides = [1, 1]} : vector<4x64xf32> to vector<4x16xf32>
    %531 = arith.negf %530 : vector<4x16xf32>
    %532 = math.exp %531 : vector<4x16xf32>
    %cst_167 = arith.constant 1.000000e+00 : f32
    %533 = vector.broadcast %cst_167 : f32 to vector<4x16xf32>
    %534 = arith.addf %533, %532 : vector<4x16xf32>
    %535 = arith.divf %533, %534 : vector<4x16xf32>
    %536 = vector.extract_strided_slice %529 {offsets = [0, 16], sizes = [4, 16], strides = [1, 1]} : vector<4x64xf32> to vector<4x16xf32>
    %537 = arith.negf %536 : vector<4x16xf32>
    %538 = math.exp %537 : vector<4x16xf32>
    %cst_168 = arith.constant 1.000000e+00 : f32
    %539 = vector.broadcast %cst_168 : f32 to vector<4x16xf32>
    %540 = arith.addf %539, %538 : vector<4x16xf32>
    %541 = arith.divf %539, %540 : vector<4x16xf32>
    %542 = vector.extract_strided_slice %529 {offsets = [0, 32], sizes = [4, 16], strides = [1, 1]} : vector<4x64xf32> to vector<4x16xf32>
    %543 = math.tanh %542 : vector<4x16xf32>
    %544 = vector.extract_strided_slice %529 {offsets = [0, 48], sizes = [4, 16], strides = [1, 1]} : vector<4x64xf32> to vector<4x16xf32>
    %545 = arith.negf %544 : vector<4x16xf32>
    %546 = math.exp %545 : vector<4x16xf32>
    %cst_169 = arith.constant 1.000000e+00 : f32
    %547 = vector.broadcast %cst_169 : f32 to vector<4x16xf32>
    %548 = arith.addf %547, %546 : vector<4x16xf32>
    %549 = arith.divf %547, %548 : vector<4x16xf32>
    %550 = arith.mulf %541, %520 : vector<4x16xf32>
    %551 = arith.mulf %535, %543 : vector<4x16xf32>
    %552 = arith.addf %550, %551 : vector<4x16xf32>
    %553 = math.tanh %552 : vector<4x16xf32>
    %554 = arith.mulf %549, %553 : vector<4x16xf32>
    %555 = vector.extract_strided_slice %554 {offsets = [0, 0], sizes = [2, 16], strides = [1, 1]} : vector<4x16xf32> to vector<2x16xf32>
    %556 = vector.extract_strided_slice %554 {offsets = [2, 0], sizes = [2, 16], strides = [1, 1]} : vector<4x16xf32> to vector<2x16xf32>
    %557 = tpu.concatenate %331, %556 in 1 : vector<2x16xf32>, vector<2x16xf32> -> vector<2x32xf32>
    %558 = tpu.concatenate %363, %524 in 1 : vector<2x16xf32>, vector<2x16xf32> -> vector<2x32xf32>
    %559 = tpu.concatenate %395, %492 in 1 : vector<2x16xf32>, vector<2x16xf32> -> vector<2x32xf32>
    %560 = tpu.concatenate %427, %460 in 1 : vector<2x16xf32>, vector<2x16xf32> -> vector<2x32xf32>
    %561 = tpu.concatenate %459, %428 in 1 : vector<2x16xf32>, vector<2x16xf32> -> vector<2x32xf32>
    %562 = tpu.concatenate %491, %396 in 1 : vector<2x16xf32>, vector<2x16xf32> -> vector<2x32xf32>
    %563 = tpu.concatenate %523, %364 in 1 : vector<2x16xf32>, vector<2x16xf32> -> vector<2x32xf32>
    %564 = tpu.concatenate %555, %332 in 1 : vector<2x16xf32>, vector<2x16xf32> -> vector<2x32xf32>
    %565 = tpu.concatenate %557, %558, %559, %560, %561, %562, %563, %564 in 0 : vector<2x32xf32>, vector<2x32xf32>, vector<2x32xf32>, vector<2x32xf32>, vector<2x32xf32>, vector<2x32xf32>, vector<2x32xf32>, vector<2x32xf32> -> vector<16x32xf32>
    %c0_170 = arith.constant 0 : index
    %c0_171 = arith.constant 0 : index
    %566 = vector.load %arg18[%c0_170, %c0_171] : memref<16x32xf32, #tpu.memory_space<vmem>>, vector<16x32xf32>
    %567 = arith.mulf %565, %566 : vector<16x32xf32>
    %c0_172 = arith.constant 0 : index
    %c0_173 = arith.constant 0 : index
    %568 = vector.load %arg19[%c0_172, %c0_173] : memref<16x32xf32, #tpu.memory_space<vmem>>, vector<16x32xf32>
    %569 = arith.mulf %565, %568 : vector<16x32xf32>
    %c0_174 = arith.constant 0 : index
    %c0_175 = arith.constant 0 : index
    %570 = vector.load %arg20[%c0_174, %c0_175] : memref<32x128xf32, #tpu.memory_space<vmem>>, vector<32x128xf32>
    %cst_176 = arith.constant dense<0.000000e+00> : vector<16x128xf32>
    %571 = tpu.matmul %567, %570, %cst_176 {dimension_numbers = #tpu.dot_dimension_numbers<[1], [0], [0], [1], [0, 0, 1, 1], [], []>} : vector<16x32xf32>, vector<32x128xf32>, vector<16x128xf32> -> vector<16x128xf32>
    %c0_177 = arith.constant 0 : index
    %c0_178 = arith.constant 0 : index
    %572 = vector.load %arg21[%c0_177, %c0_178] : memref<1x128xf32, #tpu.memory_space<vmem>>, vector<1x128xf32>
    %573 = vector.broadcast %572 : vector<1x128xf32> to vector<16x128xf32>
    %574 = arith.addf %571, %573 : vector<16x128xf32>
    %c0_179 = arith.constant 0 : index
    %c0_180 = arith.constant 0 : index
    %575 = vector.load %arg22[%c0_179, %c0_180] : memref<32x128xf32, #tpu.memory_space<vmem>>, vector<32x128xf32>
    %cst_181 = arith.constant dense<0.000000e+00> : vector<16x128xf32>
    %576 = tpu.matmul %569, %575, %cst_181 {dimension_numbers = #tpu.dot_dimension_numbers<[1], [0], [0], [1], [0, 0, 1, 1], [], []>} : vector<16x32xf32>, vector<32x128xf32>, vector<16x128xf32> -> vector<16x128xf32>
    %c0_182 = arith.constant 0 : index
    %c0_183 = arith.constant 0 : index
    %577 = vector.load %arg23[%c0_182, %c0_183] : memref<1x128xf32, #tpu.memory_space<vmem>>, vector<1x128xf32>
    %578 = vector.broadcast %577 : vector<1x128xf32> to vector<16x128xf32>
    %579 = arith.addf %576, %578 : vector<16x128xf32>
    %c0_184 = arith.constant 0 : index
    %c0_185 = arith.constant 0 : index
    %580 = vector.load %arg27[%c0_184, %c0_185] : memref<16x1xf32, #tpu.memory_space<vmem>>, vector<16x1xf32>
    %c0_186 = arith.constant 0 : index
    %c0_187 = arith.constant 0 : index
    %581 = vector.load %arg28[%c0_186, %c0_187] : memref<16x1xf32, #tpu.memory_space<vmem>>, vector<16x1xf32>
    %c0_188 = arith.constant 0 : index
    %c0_189 = arith.constant 0 : index
    %582 = vector.load %arg29[%c0_188, %c0_189] : memref<16x1xf32, #tpu.memory_space<vmem>>, vector<16x1xf32>
    %c0_190 = arith.constant 0 : index
    %c0_191 = arith.constant 0 : index
    %583 = vector.load %arg24[%c0_190, %c0_191] : memref<4x128xf32, #tpu.memory_space<vmem>>, vector<4x128xf32>
    %c0_192 = arith.constant 0 : index
    %c0_193 = arith.constant 0 : index
    %584 = vector.load %arg25[%c0_192, %c0_193] : memref<4x128xf32, #tpu.memory_space<vmem>>, vector<4x128xf32>
    %c0_194 = arith.constant 0 : index
    %c0_195 = arith.constant 0 : index
    %585 = vector.load %arg30[%c0_194, %c0_195] : memref<16x128xf32, #tpu.memory_space<vmem>>, vector<16x128xf32>
    %c0_196 = arith.constant 0 : index
    %c0_197 = arith.constant 0 : index
    %586 = vector.load %arg31[%c0_196, %c0_197] : memref<16x128xf32, #tpu.memory_space<vmem>>, vector<16x128xf32>
    %c0_198 = arith.constant 0 : index
    %c0_199 = arith.constant 0 : index
    %c0_200 = arith.constant 0 : index
    %587 = vector.load %arg26[%c0_198, %c0_199, %c0_200] : memref<2x128x128xf32, #tpu.memory_space<vmem>>, vector<1x128x128xf32>
    %588 = vector.shape_cast %587 : vector<1x128x128xf32> to vector<128x128xf32>
    %589 = vector.extract_strided_slice %583 {offsets = [0, 0], sizes = [1, 128], strides = [1, 1]} : vector<4x128xf32> to vector<1x128xf32>
    %590 = vector.extract_strided_slice %584 {offsets = [0, 0], sizes = [1, 128], strides = [1, 1]} : vector<4x128xf32> to vector<1x128xf32>
    %591 = vector.broadcast %580 : vector<16x1xf32> to vector<16x128xf32>
    %592 = arith.mulf %591, %574 : vector<16x128xf32>
    %593 = arith.mulf %592, %585 : vector<16x128xf32>
    %cst_201 = arith.constant dense<0.000000e+00> : vector<16xf32>
    %594 = vector.multi_reduction <add>, %593, %cst_201 [1] : vector<16x128xf32> to vector<16xf32>
    %595 = vector.shape_cast %594 : vector<16xf32> to vector<16x1xf32>
    %cst_202 = arith.constant dense<0.000000e+00> : vector<1xf32>
    %596 = vector.multi_reduction <add>, %595, %cst_202 [0] : vector<16x1xf32> to vector<1xf32>
    %597 = vector.shape_cast %596 : vector<1xf32> to vector<1x1xf32>
    %598 = vector.broadcast %581 : vector<16x1xf32> to vector<16x128xf32>
    %599 = arith.mulf %598, %585 : vector<16x128xf32>
    %600 = vector.broadcast %589 : vector<1x128xf32> to vector<16x128xf32>
    %601 = arith.mulf %599, %600 : vector<16x128xf32>
    %cst_203 = arith.constant dense<0.000000e+00> : vector<16xf32>
    %602 = vector.multi_reduction <add>, %601, %cst_203 [1] : vector<16x128xf32> to vector<16xf32>
    %603 = vector.shape_cast %602 : vector<16xf32> to vector<16x1xf32>
    %cst_204 = arith.constant dense<0.000000e+00> : vector<1xf32>
    %604 = vector.multi_reduction <add>, %603, %cst_204 [0] : vector<16x1xf32> to vector<1xf32>
    %605 = vector.shape_cast %604 : vector<1xf32> to vector<1x1xf32>
    %606 = vector.broadcast %582 : vector<16x1xf32> to vector<16x128xf32>
    %607 = arith.mulf %606, %585 : vector<16x128xf32>
    %608 = vector.broadcast %590 : vector<1x128xf32> to vector<16x128xf32>
    %609 = arith.mulf %607, %608 : vector<16x128xf32>
    %cst_205 = arith.constant dense<0.000000e+00> : vector<16xf32>
    %610 = vector.multi_reduction <add>, %609, %cst_205 [1] : vector<16x128xf32> to vector<16xf32>
    %611 = vector.shape_cast %610 : vector<16xf32> to vector<16x1xf32>
    %cst_206 = arith.constant dense<0.000000e+00> : vector<1xf32>
    %612 = vector.multi_reduction <add>, %611, %cst_206 [0] : vector<16x1xf32> to vector<1xf32>
    %613 = vector.shape_cast %612 : vector<1xf32> to vector<1x1xf32>
    %cst_207 = arith.constant dense<0.000000e+00> : vector<16x128xf32>
    %614 = tpu.matmul %586, %588, %cst_207 {dimension_numbers = #tpu.dot_dimension_numbers<[1], [0], [0], [1], [0, 0, 1, 1], [], []>} : vector<16x128xf32>, vector<128x128xf32>, vector<16x128xf32> -> vector<16x128xf32>
    %615 = vector.broadcast %580 : vector<16x1xf32> to vector<16x128xf32>
    %616 = arith.mulf %615, %614 : vector<16x128xf32>
    %617 = arith.mulf %616, %585 : vector<16x128xf32>
    %cst_208 = arith.constant dense<0.000000e+00> : vector<16xf32>
    %618 = vector.multi_reduction <add>, %617, %cst_208 [1] : vector<16x128xf32> to vector<16xf32>
    %619 = vector.shape_cast %618 : vector<16xf32> to vector<16x1xf32>
    %cst_209 = arith.constant dense<0.000000e+00> : vector<1xf32>
    %620 = vector.multi_reduction <add>, %619, %cst_209 [0] : vector<16x1xf32> to vector<1xf32>
    %621 = vector.shape_cast %620 : vector<1xf32> to vector<1x1xf32>
    %622 = arith.addf %597, %605 : vector<1x1xf32>
    %623 = arith.addf %622, %613 : vector<1x1xf32>
    %624 = arith.addf %623, %621 : vector<1x1xf32>
    %c0_210 = arith.constant 0 : index
    %c0_211 = arith.constant 0 : index
    %625 = vector.load %arg32[%c0_210, %c0_211] : memref<16x128xf32, #tpu.memory_space<vmem>>, vector<16x128xf32>
    %c0_212 = arith.constant 0 : index
    %c0_213 = arith.constant 0 : index
    %626 = vector.load %arg33[%c0_212, %c0_213] : memref<16x128xf32, #tpu.memory_space<vmem>>, vector<16x128xf32>
    %c1_214 = arith.constant 1 : index
    %c0_215 = arith.constant 0 : index
    %c0_216 = arith.constant 0 : index
    %627 = vector.load %arg26[%c1_214, %c0_215, %c0_216] : memref<2x128x128xf32, #tpu.memory_space<vmem>>, vector<1x128x128xf32>
    %628 = vector.shape_cast %627 : vector<1x128x128xf32> to vector<128x128xf32>
    %629 = vector.extract_strided_slice %583 {offsets = [2, 0], sizes = [1, 128], strides = [1, 1]} : vector<4x128xf32> to vector<1x128xf32>
    %630 = vector.extract_strided_slice %584 {offsets = [2, 0], sizes = [1, 128], strides = [1, 1]} : vector<4x128xf32> to vector<1x128xf32>
    %631 = vector.broadcast %580 : vector<16x1xf32> to vector<16x128xf32>
    %632 = arith.mulf %631, %579 : vector<16x128xf32>
    %633 = arith.mulf %632, %625 : vector<16x128xf32>
    %cst_217 = arith.constant dense<0.000000e+00> : vector<16xf32>
    %634 = vector.multi_reduction <add>, %633, %cst_217 [1] : vector<16x128xf32> to vector<16xf32>
    %635 = vector.shape_cast %634 : vector<16xf32> to vector<16x1xf32>
    %cst_218 = arith.constant dense<0.000000e+00> : vector<1xf32>
    %636 = vector.multi_reduction <add>, %635, %cst_218 [0] : vector<16x1xf32> to vector<1xf32>
    %637 = vector.shape_cast %636 : vector<1xf32> to vector<1x1xf32>
    %638 = vector.broadcast %581 : vector<16x1xf32> to vector<16x128xf32>
    %639 = arith.mulf %638, %625 : vector<16x128xf32>
    %640 = vector.broadcast %629 : vector<1x128xf32> to vector<16x128xf32>
    %641 = arith.mulf %639, %640 : vector<16x128xf32>
    %cst_219 = arith.constant dense<0.000000e+00> : vector<16xf32>
    %642 = vector.multi_reduction <add>, %641, %cst_219 [1] : vector<16x128xf32> to vector<16xf32>
    %643 = vector.shape_cast %642 : vector<16xf32> to vector<16x1xf32>
    %cst_220 = arith.constant dense<0.000000e+00> : vector<1xf32>
    %644 = vector.multi_reduction <add>, %643, %cst_220 [0] : vector<16x1xf32> to vector<1xf32>
    %645 = vector.shape_cast %644 : vector<1xf32> to vector<1x1xf32>
    %646 = vector.broadcast %582 : vector<16x1xf32> to vector<16x128xf32>
    %647 = arith.mulf %646, %625 : vector<16x128xf32>
    %648 = vector.broadcast %630 : vector<1x128xf32> to vector<16x128xf32>
    %649 = arith.mulf %647, %648 : vector<16x128xf32>
    %cst_221 = arith.constant dense<0.000000e+00> : vector<16xf32>
    %650 = vector.multi_reduction <add>, %649, %cst_221 [1] : vector<16x128xf32> to vector<16xf32>
    %651 = vector.shape_cast %650 : vector<16xf32> to vector<16x1xf32>
    %cst_222 = arith.constant dense<0.000000e+00> : vector<1xf32>
    %652 = vector.multi_reduction <add>, %651, %cst_222 [0] : vector<16x1xf32> to vector<1xf32>
    %653 = vector.shape_cast %652 : vector<1xf32> to vector<1x1xf32>
    %cst_223 = arith.constant dense<0.000000e+00> : vector<16x128xf32>
    %654 = tpu.matmul %626, %628, %cst_223 {dimension_numbers = #tpu.dot_dimension_numbers<[1], [0], [0], [1], [0, 0, 1, 1], [], []>} : vector<16x128xf32>, vector<128x128xf32>, vector<16x128xf32> -> vector<16x128xf32>
    %655 = vector.broadcast %580 : vector<16x1xf32> to vector<16x128xf32>
    %656 = arith.mulf %655, %654 : vector<16x128xf32>
    %657 = arith.mulf %656, %625 : vector<16x128xf32>
    %cst_224 = arith.constant dense<0.000000e+00> : vector<16xf32>
    %658 = vector.multi_reduction <add>, %657, %cst_224 [1] : vector<16x128xf32> to vector<16xf32>
    %659 = vector.shape_cast %658 : vector<16xf32> to vector<16x1xf32>
    %cst_225 = arith.constant dense<0.000000e+00> : vector<1xf32>
    %660 = vector.multi_reduction <add>, %659, %cst_225 [0] : vector<16x1xf32> to vector<1xf32>
    %661 = vector.shape_cast %660 : vector<1xf32> to vector<1x1xf32>
    %662 = arith.addf %637, %645 : vector<1x1xf32>
    %663 = arith.addf %662, %653 : vector<1x1xf32>
    %664 = arith.addf %663, %661 : vector<1x1xf32>
    %c0_226 = arith.constant 0 : index
    %c0_227 = arith.constant 0 : index
    %c0_228 = arith.constant 0 : index
    %665 = vector.load %arg26[%c0_226, %c0_227, %c0_228] : memref<2x128x128xf32, #tpu.memory_space<vmem>>, vector<1x128x128xf32>
    %666 = vector.shape_cast %665 : vector<1x128x128xf32> to vector<128x128xf32>
    %667 = math.exp %666 : vector<128x128xf32>
    %c1_229 = arith.constant 1 : index
    %c0_230 = arith.constant 0 : index
    %c0_231 = arith.constant 0 : index
    %668 = vector.load %arg26[%c1_229, %c0_230, %c0_231] : memref<2x128x128xf32, #tpu.memory_space<vmem>>, vector<1x128x128xf32>
    %669 = vector.shape_cast %668 : vector<1x128x128xf32> to vector<128x128xf32>
    %670 = math.exp %669 : vector<128x128xf32>
    %671 = tpu.iota {dimensions = array<i32: 0>} : vector<4x128xi32>
    %c2_i32_232 = arith.constant 2 : i32
    %672 = vector.broadcast %c2_i32_232 : i32 to vector<4x128xi32>
    %673 = arith.cmpi slt, %671, %672 : vector<4x128xi32>
    %674 = vector.extract_strided_slice %574 {offsets = [0, 0], sizes = [2, 128], strides = [1, 1]} : vector<16x128xf32> to vector<2x128xf32>
    %675 = vector.extract_strided_slice %579 {offsets = [0, 0], sizes = [2, 128], strides = [1, 1]} : vector<16x128xf32> to vector<2x128xf32>
    %676 = tpu.concatenate %674, %675 in 0 : vector<2x128xf32>, vector<2x128xf32> -> vector<4x128xf32>
    %677 = arith.addf %583, %676 : vector<4x128xf32>
    %cst_233 = arith.constant dense<0xFF800000> : vector<4xf32>
    %678 = vector.multi_reduction <maximumf>, %677, %cst_233 [1] : vector<4x128xf32> to vector<4xf32>
    %679 = vector.shape_cast %678 : vector<4xf32> to vector<4x1xf32>
    %680 = vector.broadcast %679 : vector<4x1xf32> to vector<4x128xf32>
    %681 = arith.subf %677, %680 : vector<4x128xf32>
    %682 = math.exp %681 : vector<4x128xf32>
    %cst_234 = arith.constant dense<0.000000e+00> : vector<4x128xf32>
    %683 = tpu.matmul %682, %667, %cst_234 {dimension_numbers = #tpu.dot_dimension_numbers<[1], [0], [0], [1], [0, 0, 1, 1], [], []>} : vector<4x128xf32>, vector<128x128xf32>, vector<4x128xf32> -> vector<4x128xf32>
    %cst_235 = arith.constant dense<0.000000e+00> : vector<4x128xf32>
    %684 = tpu.matmul %682, %670, %cst_235 {dimension_numbers = #tpu.dot_dimension_numbers<[1], [0], [0], [1], [0, 0, 1, 1], [], []>} : vector<4x128xf32>, vector<128x128xf32>, vector<4x128xf32> -> vector<4x128xf32>
    %685 = arith.select %673, %683, %684 : vector<4x128xi1>, vector<4x128xf32>
    %cst_236 = arith.constant 1.000000e-30 : f32
    %686 = vector.broadcast %cst_236 : f32 to vector<4x128xf32>
    %687 = arith.maximumf %685, %686 : vector<4x128xf32>
    %688 = math.log %687 : vector<4x128xf32>
    %689 = vector.broadcast %679 : vector<4x1xf32> to vector<4x128xf32>
    %690 = arith.addf %689, %688 : vector<4x128xf32>
    %691 = vector.extract_strided_slice %574 {offsets = [2, 0], sizes = [2, 128], strides = [1, 1]} : vector<16x128xf32> to vector<2x128xf32>
    %692 = vector.extract_strided_slice %579 {offsets = [2, 0], sizes = [2, 128], strides = [1, 1]} : vector<16x128xf32> to vector<2x128xf32>
    %693 = tpu.concatenate %691, %692 in 0 : vector<2x128xf32>, vector<2x128xf32> -> vector<4x128xf32>
    %694 = arith.addf %690, %693 : vector<4x128xf32>
    %695 = vector.extract_strided_slice %580 {offsets = [2, 0], sizes = [2, 1], strides = [1, 1]} : vector<16x1xf32> to vector<2x1xf32>
    %696 = tpu.concatenate %695, %695 in 0 : vector<2x1xf32>, vector<2x1xf32> -> vector<4x1xf32>
    %cst_237 = arith.constant 5.000000e-01 : f32
    %697 = vector.broadcast %cst_237 : f32 to vector<4x1xf32>
    %698 = arith.cmpf ogt, %696, %697 : vector<4x1xf32>
    %699 = vector.shape_cast %698 : vector<4x1xi1> to vector<4x1xi1>
    %700 = vector.broadcast %699 : vector<4x1xi1> to vector<4x128xi1>
    %701 = arith.select %700, %694, %677 : vector<4x128xi1>, vector<4x128xf32>
    %cst_238 = arith.constant dense<0xFF800000> : vector<4xf32>
    %702 = vector.multi_reduction <maximumf>, %701, %cst_238 [1] : vector<4x128xf32> to vector<4xf32>
    %703 = vector.shape_cast %702 : vector<4xf32> to vector<4x1xf32>
    %704 = vector.broadcast %703 : vector<4x1xf32> to vector<4x128xf32>
    %705 = arith.subf %701, %704 : vector<4x128xf32>
    %706 = math.exp %705 : vector<4x128xf32>
    %cst_239 = arith.constant dense<0.000000e+00> : vector<4x128xf32>
    %707 = tpu.matmul %706, %667, %cst_239 {dimension_numbers = #tpu.dot_dimension_numbers<[1], [0], [0], [1], [0, 0, 1, 1], [], []>} : vector<4x128xf32>, vector<128x128xf32>, vector<4x128xf32> -> vector<4x128xf32>
    %cst_240 = arith.constant dense<0.000000e+00> : vector<4x128xf32>
    %708 = tpu.matmul %706, %670, %cst_240 {dimension_numbers = #tpu.dot_dimension_numbers<[1], [0], [0], [1], [0, 0, 1, 1], [], []>} : vector<4x128xf32>, vector<128x128xf32>, vector<4x128xf32> -> vector<4x128xf32>
    %709 = arith.select %673, %707, %708 : vector<4x128xi1>, vector<4x128xf32>
    %cst_241 = arith.constant 1.000000e-30 : f32
    %710 = vector.broadcast %cst_241 : f32 to vector<4x128xf32>
    %711 = arith.maximumf %709, %710 : vector<4x128xf32>
    %712 = math.log %711 : vector<4x128xf32>
    %713 = vector.broadcast %703 : vector<4x1xf32> to vector<4x128xf32>
    %714 = arith.addf %713, %712 : vector<4x128xf32>
    %715 = vector.extract_strided_slice %574 {offsets = [4, 0], sizes = [2, 128], strides = [1, 1]} : vector<16x128xf32> to vector<2x128xf32>
    %716 = vector.extract_strided_slice %579 {offsets = [4, 0], sizes = [2, 128], strides = [1, 1]} : vector<16x128xf32> to vector<2x128xf32>
    %717 = tpu.concatenate %715, %716 in 0 : vector<2x128xf32>, vector<2x128xf32> -> vector<4x128xf32>
    %718 = arith.addf %714, %717 : vector<4x128xf32>
    %719 = vector.extract_strided_slice %580 {offsets = [4, 0], sizes = [2, 1], strides = [1, 1]} : vector<16x1xf32> to vector<2x1xf32>
    %720 = tpu.concatenate %719, %719 in 0 : vector<2x1xf32>, vector<2x1xf32> -> vector<4x1xf32>
    %cst_242 = arith.constant 5.000000e-01 : f32
    %721 = vector.broadcast %cst_242 : f32 to vector<4x1xf32>
    %722 = arith.cmpf ogt, %720, %721 : vector<4x1xf32>
    %723 = vector.shape_cast %722 : vector<4x1xi1> to vector<4x1xi1>
    %724 = vector.broadcast %723 : vector<4x1xi1> to vector<4x128xi1>
    %725 = arith.select %724, %718, %701 : vector<4x128xi1>, vector<4x128xf32>
    %cst_243 = arith.constant dense<0xFF800000> : vector<4xf32>
    %726 = vector.multi_reduction <maximumf>, %725, %cst_243 [1] : vector<4x128xf32> to vector<4xf32>
    %727 = vector.shape_cast %726 : vector<4xf32> to vector<4x1xf32>
    %728 = vector.broadcast %727 : vector<4x1xf32> to vector<4x128xf32>
    %729 = arith.subf %725, %728 : vector<4x128xf32>
    %730 = math.exp %729 : vector<4x128xf32>
    %cst_244 = arith.constant dense<0.000000e+00> : vector<4x128xf32>
    %731 = tpu.matmul %730, %667, %cst_244 {dimension_numbers = #tpu.dot_dimension_numbers<[1], [0], [0], [1], [0, 0, 1, 1], [], []>} : vector<4x128xf32>, vector<128x128xf32>, vector<4x128xf32> -> vector<4x128xf32>
    %cst_245 = arith.constant dense<0.000000e+00> : vector<4x128xf32>
    %732 = tpu.matmul %730, %670, %cst_245 {dimension_numbers = #tpu.dot_dimension_numbers<[1], [0], [0], [1], [0, 0, 1, 1], [], []>} : vector<4x128xf32>, vector<128x128xf32>, vector<4x128xf32> -> vector<4x128xf32>
    %733 = arith.select %673, %731, %732 : vector<4x128xi1>, vector<4x128xf32>
    %cst_246 = arith.constant 1.000000e-30 : f32
    %734 = vector.broadcast %cst_246 : f32 to vector<4x128xf32>
    %735 = arith.maximumf %733, %734 : vector<4x128xf32>
    %736 = math.log %735 : vector<4x128xf32>
    %737 = vector.broadcast %727 : vector<4x1xf32> to vector<4x128xf32>
    %738 = arith.addf %737, %736 : vector<4x128xf32>
    %739 = vector.extract_strided_slice %574 {offsets = [6, 0], sizes = [2, 128], strides = [1, 1]} : vector<16x128xf32> to vector<2x128xf32>
    %740 = vector.extract_strided_slice %579 {offsets = [6, 0], sizes = [2, 128], strides = [1, 1]} : vector<16x128xf32> to vector<2x128xf32>
    %741 = tpu.concatenate %739, %740 in 0 : vector<2x128xf32>, vector<2x128xf32> -> vector<4x128xf32>
    %742 = arith.addf %738, %741 : vector<4x128xf32>
    %743 = vector.extract_strided_slice %580 {offsets = [6, 0], sizes = [2, 1], strides = [1, 1]} : vector<16x1xf32> to vector<2x1xf32>
    %744 = tpu.concatenate %743, %743 in 0 : vector<2x1xf32>, vector<2x1xf32> -> vector<4x1xf32>
    %cst_247 = arith.constant 5.000000e-01 : f32
    %745 = vector.broadcast %cst_247 : f32 to vector<4x1xf32>
    %746 = arith.cmpf ogt, %744, %745 : vector<4x1xf32>
    %747 = vector.shape_cast %746 : vector<4x1xi1> to vector<4x1xi1>
    %748 = vector.broadcast %747 : vector<4x1xi1> to vector<4x128xi1>
    %749 = arith.select %748, %742, %725 : vector<4x128xi1>, vector<4x128xf32>
    %cst_248 = arith.constant dense<0xFF800000> : vector<4xf32>
    %750 = vector.multi_reduction <maximumf>, %749, %cst_248 [1] : vector<4x128xf32> to vector<4xf32>
    %751 = vector.shape_cast %750 : vector<4xf32> to vector<4x1xf32>
    %752 = vector.broadcast %751 : vector<4x1xf32> to vector<4x128xf32>
    %753 = arith.subf %749, %752 : vector<4x128xf32>
    %754 = math.exp %753 : vector<4x128xf32>
    %cst_249 = arith.constant dense<0.000000e+00> : vector<4x128xf32>
    %755 = tpu.matmul %754, %667, %cst_249 {dimension_numbers = #tpu.dot_dimension_numbers<[1], [0], [0], [1], [0, 0, 1, 1], [], []>} : vector<4x128xf32>, vector<128x128xf32>, vector<4x128xf32> -> vector<4x128xf32>
    %cst_250 = arith.constant dense<0.000000e+00> : vector<4x128xf32>
    %756 = tpu.matmul %754, %670, %cst_250 {dimension_numbers = #tpu.dot_dimension_numbers<[1], [0], [0], [1], [0, 0, 1, 1], [], []>} : vector<4x128xf32>, vector<128x128xf32>, vector<4x128xf32> -> vector<4x128xf32>
    %757 = arith.select %673, %755, %756 : vector<4x128xi1>, vector<4x128xf32>
    %cst_251 = arith.constant 1.000000e-30 : f32
    %758 = vector.broadcast %cst_251 : f32 to vector<4x128xf32>
    %759 = arith.maximumf %757, %758 : vector<4x128xf32>
    %760 = math.log %759 : vector<4x128xf32>
    %761 = vector.broadcast %751 : vector<4x1xf32> to vector<4x128xf32>
    %762 = arith.addf %761, %760 : vector<4x128xf32>
    %763 = vector.extract_strided_slice %574 {offsets = [8, 0], sizes = [2, 128], strides = [1, 1]} : vector<16x128xf32> to vector<2x128xf32>
    %764 = vector.extract_strided_slice %579 {offsets = [8, 0], sizes = [2, 128], strides = [1, 1]} : vector<16x128xf32> to vector<2x128xf32>
    %765 = tpu.concatenate %763, %764 in 0 : vector<2x128xf32>, vector<2x128xf32> -> vector<4x128xf32>
    %766 = arith.addf %762, %765 : vector<4x128xf32>
    %767 = vector.extract_strided_slice %580 {offsets = [8, 0], sizes = [2, 1], strides = [1, 1]} : vector<16x1xf32> to vector<2x1xf32>
    %768 = tpu.concatenate %767, %767 in 0 : vector<2x1xf32>, vector<2x1xf32> -> vector<4x1xf32>
    %cst_252 = arith.constant 5.000000e-01 : f32
    %769 = vector.broadcast %cst_252 : f32 to vector<4x1xf32>
    %770 = arith.cmpf ogt, %768, %769 : vector<4x1xf32>
    %771 = vector.shape_cast %770 : vector<4x1xi1> to vector<4x1xi1>
    %772 = vector.broadcast %771 : vector<4x1xi1> to vector<4x128xi1>
    %773 = arith.select %772, %766, %749 : vector<4x128xi1>, vector<4x128xf32>
    %cst_253 = arith.constant dense<0xFF800000> : vector<4xf32>
    %774 = vector.multi_reduction <maximumf>, %773, %cst_253 [1] : vector<4x128xf32> to vector<4xf32>
    %775 = vector.shape_cast %774 : vector<4xf32> to vector<4x1xf32>
    %776 = vector.broadcast %775 : vector<4x1xf32> to vector<4x128xf32>
    %777 = arith.subf %773, %776 : vector<4x128xf32>
    %778 = math.exp %777 : vector<4x128xf32>
    %cst_254 = arith.constant dense<0.000000e+00> : vector<4x128xf32>
    %779 = tpu.matmul %778, %667, %cst_254 {dimension_numbers = #tpu.dot_dimension_numbers<[1], [0], [0], [1], [0, 0, 1, 1], [], []>} : vector<4x128xf32>, vector<128x128xf32>, vector<4x128xf32> -> vector<4x128xf32>
    %cst_255 = arith.constant dense<0.000000e+00> : vector<4x128xf32>
    %780 = tpu.matmul %778, %670, %cst_255 {dimension_numbers = #tpu.dot_dimension_numbers<[1], [0], [0], [1], [0, 0, 1, 1], [], []>} : vector<4x128xf32>, vector<128x128xf32>, vector<4x128xf32> -> vector<4x128xf32>
    %781 = arith.select %673, %779, %780 : vector<4x128xi1>, vector<4x128xf32>
    %cst_256 = arith.constant 1.000000e-30 : f32
    %782 = vector.broadcast %cst_256 : f32 to vector<4x128xf32>
    %783 = arith.maximumf %781, %782 : vector<4x128xf32>
    %784 = math.log %783 : vector<4x128xf32>
    %785 = vector.broadcast %775 : vector<4x1xf32> to vector<4x128xf32>
    %786 = arith.addf %785, %784 : vector<4x128xf32>
    %787 = vector.extract_strided_slice %574 {offsets = [10, 0], sizes = [2, 128], strides = [1, 1]} : vector<16x128xf32> to vector<2x128xf32>
    %788 = vector.extract_strided_slice %579 {offsets = [10, 0], sizes = [2, 128], strides = [1, 1]} : vector<16x128xf32> to vector<2x128xf32>
    %789 = tpu.concatenate %787, %788 in 0 : vector<2x128xf32>, vector<2x128xf32> -> vector<4x128xf32>
    %790 = arith.addf %786, %789 : vector<4x128xf32>
    %791 = vector.extract_strided_slice %580 {offsets = [10, 0], sizes = [2, 1], strides = [1, 1]} : vector<16x1xf32> to vector<2x1xf32>
    %792 = tpu.concatenate %791, %791 in 0 : vector<2x1xf32>, vector<2x1xf32> -> vector<4x1xf32>
    %cst_257 = arith.constant 5.000000e-01 : f32
    %793 = vector.broadcast %cst_257 : f32 to vector<4x1xf32>
    %794 = arith.cmpf ogt, %792, %793 : vector<4x1xf32>
    %795 = vector.shape_cast %794 : vector<4x1xi1> to vector<4x1xi1>
    %796 = vector.broadcast %795 : vector<4x1xi1> to vector<4x128xi1>
    %797 = arith.select %796, %790, %773 : vector<4x128xi1>, vector<4x128xf32>
    %cst_258 = arith.constant dense<0xFF800000> : vector<4xf32>
    %798 = vector.multi_reduction <maximumf>, %797, %cst_258 [1] : vector<4x128xf32> to vector<4xf32>
    %799 = vector.shape_cast %798 : vector<4xf32> to vector<4x1xf32>
    %800 = vector.broadcast %799 : vector<4x1xf32> to vector<4x128xf32>
    %801 = arith.subf %797, %800 : vector<4x128xf32>
    %802 = math.exp %801 : vector<4x128xf32>
    %cst_259 = arith.constant dense<0.000000e+00> : vector<4x128xf32>
    %803 = tpu.matmul %802, %667, %cst_259 {dimension_numbers = #tpu.dot_dimension_numbers<[1], [0], [0], [1], [0, 0, 1, 1], [], []>} : vector<4x128xf32>, vector<128x128xf32>, vector<4x128xf32> -> vector<4x128xf32>
    %cst_260 = arith.constant dense<0.000000e+00> : vector<4x128xf32>
    %804 = tpu.matmul %802, %670, %cst_260 {dimension_numbers = #tpu.dot_dimension_numbers<[1], [0], [0], [1], [0, 0, 1, 1], [], []>} : vector<4x128xf32>, vector<128x128xf32>, vector<4x128xf32> -> vector<4x128xf32>
    %805 = arith.select %673, %803, %804 : vector<4x128xi1>, vector<4x128xf32>
    %cst_261 = arith.constant 1.000000e-30 : f32
    %806 = vector.broadcast %cst_261 : f32 to vector<4x128xf32>
    %807 = arith.maximumf %805, %806 : vector<4x128xf32>
    %808 = math.log %807 : vector<4x128xf32>
    %809 = vector.broadcast %799 : vector<4x1xf32> to vector<4x128xf32>
    %810 = arith.addf %809, %808 : vector<4x128xf32>
    %811 = vector.extract_strided_slice %574 {offsets = [12, 0], sizes = [2, 128], strides = [1, 1]} : vector<16x128xf32> to vector<2x128xf32>
    %812 = vector.extract_strided_slice %579 {offsets = [12, 0], sizes = [2, 128], strides = [1, 1]} : vector<16x128xf32> to vector<2x128xf32>
    %813 = tpu.concatenate %811, %812 in 0 : vector<2x128xf32>, vector<2x128xf32> -> vector<4x128xf32>
    %814 = arith.addf %810, %813 : vector<4x128xf32>
    %815 = vector.extract_strided_slice %580 {offsets = [12, 0], sizes = [2, 1], strides = [1, 1]} : vector<16x1xf32> to vector<2x1xf32>
    %816 = tpu.concatenate %815, %815 in 0 : vector<2x1xf32>, vector<2x1xf32> -> vector<4x1xf32>
    %cst_262 = arith.constant 5.000000e-01 : f32
    %817 = vector.broadcast %cst_262 : f32 to vector<4x1xf32>
    %818 = arith.cmpf ogt, %816, %817 : vector<4x1xf32>
    %819 = vector.shape_cast %818 : vector<4x1xi1> to vector<4x1xi1>
    %820 = vector.broadcast %819 : vector<4x1xi1> to vector<4x128xi1>
    %821 = arith.select %820, %814, %797 : vector<4x128xi1>, vector<4x128xf32>
    %cst_263 = arith.constant dense<0xFF800000> : vector<4xf32>
    %822 = vector.multi_reduction <maximumf>, %821, %cst_263 [1] : vector<4x128xf32> to vector<4xf32>
    %823 = vector.shape_cast %822 : vector<4xf32> to vector<4x1xf32>
    %824 = vector.broadcast %823 : vector<4x1xf32> to vector<4x128xf32>
    %825 = arith.subf %821, %824 : vector<4x128xf32>
    %826 = math.exp %825 : vector<4x128xf32>
    %cst_264 = arith.constant dense<0.000000e+00> : vector<4x128xf32>
    %827 = tpu.matmul %826, %667, %cst_264 {dimension_numbers = #tpu.dot_dimension_numbers<[1], [0], [0], [1], [0, 0, 1, 1], [], []>} : vector<4x128xf32>, vector<128x128xf32>, vector<4x128xf32> -> vector<4x128xf32>
    %cst_265 = arith.constant dense<0.000000e+00> : vector<4x128xf32>
    %828 = tpu.matmul %826, %670, %cst_265 {dimension_numbers = #tpu.dot_dimension_numbers<[1], [0], [0], [1], [0, 0, 1, 1], [], []>} : vector<4x128xf32>, vector<128x128xf32>, vector<4x128xf32> -> vector<4x128xf32>
    %829 = arith.select %673, %827, %828 : vector<4x128xi1>, vector<4x128xf32>
    %cst_266 = arith.constant 1.000000e-30 : f32
    %830 = vector.broadcast %cst_266 : f32 to vector<4x128xf32>
    %831 = arith.maximumf %829, %830 : vector<4x128xf32>
    %832 = math.log %831 : vector<4x128xf32>
    %833 = vector.broadcast %823 : vector<4x1xf32> to vector<4x128xf32>
    %834 = arith.addf %833, %832 : vector<4x128xf32>
    %835 = vector.extract_strided_slice %574 {offsets = [14, 0], sizes = [2, 128], strides = [1, 1]} : vector<16x128xf32> to vector<2x128xf32>
    %836 = vector.extract_strided_slice %579 {offsets = [14, 0], sizes = [2, 128], strides = [1, 1]} : vector<16x128xf32> to vector<2x128xf32>
    %837 = tpu.concatenate %835, %836 in 0 : vector<2x128xf32>, vector<2x128xf32> -> vector<4x128xf32>
    %838 = arith.addf %834, %837 : vector<4x128xf32>
    %839 = vector.extract_strided_slice %580 {offsets = [14, 0], sizes = [2, 1], strides = [1, 1]} : vector<16x1xf32> to vector<2x1xf32>
    %840 = tpu.concatenate %839, %839 in 0 : vector<2x1xf32>, vector<2x1xf32> -> vector<4x1xf32>
    %cst_267 = arith.constant 5.000000e-01 : f32
    %841 = vector.broadcast %cst_267 : f32 to vector<4x1xf32>
    %842 = arith.cmpf ogt, %840, %841 : vector<4x1xf32>
    %843 = vector.shape_cast %842 : vector<4x1xi1> to vector<4x1xi1>
    %844 = vector.broadcast %843 : vector<4x1xi1> to vector<4x128xi1>
    %845 = arith.select %844, %838, %821 : vector<4x128xi1>, vector<4x128xf32>
    %846 = arith.addf %845, %584 : vector<4x128xf32>
    %cst_268 = arith.constant dense<0xFF800000> : vector<4xf32>
    %847 = vector.multi_reduction <maximumf>, %846, %cst_268 [1] : vector<4x128xf32> to vector<4xf32>
    %848 = vector.shape_cast %847 : vector<4xf32> to vector<4x1xf32>
    %849 = vector.broadcast %848 : vector<4x1xf32> to vector<4x128xf32>
    %850 = arith.subf %846, %849 : vector<4x128xf32>
    %851 = math.exp %850 : vector<4x128xf32>
    %cst_269 = arith.constant dense<0.000000e+00> : vector<4xf32>
    %852 = vector.multi_reduction <add>, %851, %cst_269 [1] : vector<4x128xf32> to vector<4xf32>
    %853 = vector.shape_cast %852 : vector<4xf32> to vector<4x1xf32>
    %854 = math.log %853 : vector<4x1xf32>
    %855 = arith.addf %848, %854 : vector<4x1xf32>
    %856 = vector.extract_strided_slice %855 {offsets = [0, 0], sizes = [2, 1], strides = [1, 1]} : vector<4x1xf32> to vector<2x1xf32>
    %cst_270 = arith.constant dense<0.000000e+00> : vector<2xf32>
    %857 = vector.multi_reduction <add>, %856, %cst_270 [1] : vector<2x1xf32> to vector<2xf32>
    %858 = vector.shape_cast %857 : vector<2xf32> to vector<2x1xf32>
    %cst_271 = arith.constant dense<0.000000e+00> : vector<1xf32>
    %859 = vector.multi_reduction <add>, %858, %cst_271 [0] : vector<2x1xf32> to vector<1xf32>
    %860 = vector.shape_cast %859 : vector<1xf32> to vector<1x1xf32>
    %861 = vector.extract_strided_slice %855 {offsets = [2, 0], sizes = [2, 1], strides = [1, 1]} : vector<4x1xf32> to vector<2x1xf32>
    %cst_272 = arith.constant dense<0.000000e+00> : vector<2xf32>
    %862 = vector.multi_reduction <add>, %861, %cst_272 [1] : vector<2x1xf32> to vector<2xf32>
    %863 = vector.shape_cast %862 : vector<2xf32> to vector<2x1xf32>
    %cst_273 = arith.constant dense<0.000000e+00> : vector<1xf32>
    %864 = vector.multi_reduction <add>, %863, %cst_273 [0] : vector<2x1xf32> to vector<1xf32>
    %865 = vector.shape_cast %864 : vector<1xf32> to vector<1x1xf32>
    %cst_274 = arith.constant dense<0.000000e+00> : vector<16xf32>
    %866 = vector.multi_reduction <add>, %580, %cst_274 [1] : vector<16x1xf32> to vector<16xf32>
    %867 = vector.shape_cast %866 : vector<16xf32> to vector<16x1xf32>
    %cst_275 = arith.constant dense<0.000000e+00> : vector<1xf32>
    %868 = vector.multi_reduction <add>, %867, %cst_275 [0] : vector<16x1xf32> to vector<1xf32>
    %869 = vector.shape_cast %868 : vector<1xf32> to vector<1x1xf32>
    %870 = arith.subf %624, %860 : vector<1x1xf32>
    %cst_276 = arith.constant 0.000000e+00 : f32
    %871 = vector.broadcast %cst_276 : f32 to vector<1x1xf32>
    %872 = arith.subf %871, %870 : vector<1x1xf32>
    %873 = arith.divf %872, %869 : vector<1x1xf32>
    %874 = arith.subf %664, %865 : vector<1x1xf32>
    %cst_277 = arith.constant 0.000000e+00 : f32
    %875 = vector.broadcast %cst_277 : f32 to vector<1x1xf32>
    %876 = arith.subf %875, %874 : vector<1x1xf32>
    %877 = arith.divf %876, %869 : vector<1x1xf32>
    %878 = arith.addf %873, %877 : vector<1x1xf32>
    %cst_278 = arith.constant 5.000000e-01 : f32
    %879 = vector.broadcast %cst_278 : f32 to vector<1x1xf32>
    %880 = arith.mulf %879, %878 : vector<1x1xf32>
    %881 = vector.shape_cast %880 : vector<1x1xf32> to vector<1x1xf32>
    %882 = vector.broadcast %881 : vector<1x1xf32> to vector<8x128xf32>
    %c0_279 = arith.constant 0 : index
    %c0_280 = arith.constant 0 : index
    %883 = vector.load %arg34[%c0_279, %c0_280] : memref<8x128xf32, #tpu.memory_space<vmem>>, vector<8x128xf32>
    tpu.vector_store %arg34[%c0_279, %c0_280], %882 {strides = array<i32>} : memref<8x128xf32, #tpu.memory_space<vmem>>, vector<8x128xf32>,
    return
  }
  func.func @transform_0(%arg0: i32) -> (i32, i32) {
    %c0_i32 = arith.constant 0 : i32
    %c0_i32_0 = arith.constant 0 : i32
    %c0_i32_1 = arith.constant 0 : i32
    return %c0_i32, %c0_i32_0 : i32, i32
  }
  func.func @transform_1(%arg0: i32) -> (i32, i32) {
    %c0_i32 = arith.constant 0 : i32
    %c0_i32_0 = arith.constant 0 : i32
    %c0_i32_1 = arith.constant 0 : i32
    return %c0_i32, %c0_i32_0 : i32, i32
  }
  func.func @transform_2(%arg0: i32) -> (i32, i32, i32) {
    %c0_i32 = arith.constant 0 : i32
    %c0_i32_0 = arith.constant 0 : i32
    %c0_i32_1 = arith.constant 0 : i32
    %c0_i32_2 = arith.constant 0 : i32
    return %c0_i32, %c0_i32_0, %c0_i32_1 : i32, i32, i32
  }
  func.func @transform_3(%arg0: i32) -> (i32, i32, i32) {
    %c0_i32 = arith.constant 0 : i32
    %c0_i32_0 = arith.constant 0 : i32
    %c0_i32_1 = arith.constant 0 : i32
    %c0_i32_2 = arith.constant 0 : i32
    return %c0_i32, %c0_i32_0, %c0_i32_1 : i32, i32, i32
  }
  func.func @transform_4(%arg0: i32) -> (i32, i32, i32) {
    %c0_i32 = arith.constant 0 : i32
    %c0_i32_0 = arith.constant 0 : i32
    %c0_i32_1 = arith.constant 0 : i32
    %c0_i32_2 = arith.constant 0 : i32
    return %c0_i32, %c0_i32_0, %c0_i32_1 : i32, i32, i32
  }
  func.func @transform_5(%arg0: i32) -> (i32, i32, i32) {
    %c0_i32 = arith.constant 0 : i32
    %c0_i32_0 = arith.constant 0 : i32
    %c0_i32_1 = arith.constant 0 : i32
    %c0_i32_2 = arith.constant 0 : i32
    return %c0_i32, %c0_i32_0, %c0_i32_1 : i32, i32, i32
  }
  func.func @transform_6(%arg0: i32) -> (i32, i32, i32) {
    %c0_i32 = arith.constant 0 : i32
    %c0_i32_0 = arith.constant 0 : i32
    %c0_i32_1 = arith.constant 0 : i32
    %c0_i32_2 = arith.constant 0 : i32
    return %c0_i32, %c0_i32_0, %c0_i32_1 : i32, i32, i32
  }
  func.func @transform_7(%arg0: i32) -> (i32, i32, i32) {
    %c0_i32 = arith.constant 0 : i32
    %c0_i32_0 = arith.constant 0 : i32
    %c0_i32_1 = arith.constant 0 : i32
    %c0_i32_2 = arith.constant 0 : i32
    return %c0_i32, %c0_i32_0, %c0_i32_1 : i32, i32, i32
  }
  func.func @transform_8(%arg0: i32) -> (i32, i32, i32) {
    %c0_i32 = arith.constant 0 : i32
    %c0_i32_0 = arith.constant 0 : i32
    %c0_i32_1 = arith.constant 0 : i32
    %c0_i32_2 = arith.constant 0 : i32
    return %c0_i32, %c0_i32_0, %c0_i32_1 : i32, i32, i32
  }
  func.func @transform_9(%arg0: i32) -> (i32, i32, i32) {
    %c0_i32 = arith.constant 0 : i32
    %c0_i32_0 = arith.constant 0 : i32
    %c0_i32_1 = arith.constant 0 : i32
    %c0_i32_2 = arith.constant 0 : i32
    return %c0_i32, %c0_i32_0, %c0_i32_1 : i32, i32, i32
  }
  func.func @transform_10(%arg0: i32) -> (i32, i32, i32) {
    %c0_i32 = arith.constant 0 : i32
    %c0_i32_0 = arith.constant 0 : i32
    %c0_i32_1 = arith.constant 0 : i32
    %c0_i32_2 = arith.constant 0 : i32
    return %c0_i32, %c0_i32_0, %c0_i32_1 : i32, i32, i32
  }
  func.func @transform_11(%arg0: i32) -> (i32, i32, i32) {
    %c0_i32 = arith.constant 0 : i32
    %c0_i32_0 = arith.constant 0 : i32
    %c0_i32_1 = arith.constant 0 : i32
    %c0_i32_2 = arith.constant 0 : i32
    return %c0_i32, %c0_i32_0, %c0_i32_1 : i32, i32, i32
  }
  func.func @transform_12(%arg0: i32) -> (i32, i32, i32) {
    %c0_i32 = arith.constant 0 : i32
    %c0_i32_0 = arith.constant 0 : i32
    %c0_i32_1 = arith.constant 0 : i32
    %c0_i32_2 = arith.constant 0 : i32
    return %c0_i32, %c0_i32_0, %c0_i32_1 : i32, i32, i32
  }
  func.func @transform_13(%arg0: i32) -> (i32, i32, i32) {
    %c0_i32 = arith.constant 0 : i32
    %c0_i32_0 = arith.constant 0 : i32
    %c0_i32_1 = arith.constant 0 : i32
    %c0_i32_2 = arith.constant 0 : i32
    return %c0_i32, %c0_i32_0, %c0_i32_1 : i32, i32, i32
  }
  func.func @transform_14(%arg0: i32) -> (i32, i32) {
    %c0_i32 = arith.constant 0 : i32
    %c0_i32_0 = arith.constant 0 : i32
    %c0_i32_1 = arith.constant 0 : i32
    return %c0_i32, %c0_i32_0 : i32, i32
  }
  func.func @transform_15(%arg0: i32) -> (i32, i32) {
    %c0_i32 = arith.constant 0 : i32
    %c0_i32_0 = arith.constant 0 : i32
    %c0_i32_1 = arith.constant 0 : i32
    return %c0_i32, %c0_i32_0 : i32, i32
  }
  func.func @transform_16(%arg0: i32) -> (i32, i32) {
    %c0_i32 = arith.constant 0 : i32
    %c0_i32_0 = arith.constant 0 : i32
    %c0_i32_1 = arith.constant 0 : i32
    return %c0_i32, %c0_i32_0 : i32, i32
  }
  func.func @transform_17(%arg0: i32) -> (i32, i32) {
    %c0_i32 = arith.constant 0 : i32
    %c0_i32_0 = arith.constant 0 : i32
    %c0_i32_1 = arith.constant 0 : i32
    return %c0_i32, %c0_i32_0 : i32, i32
  }
  func.func @transform_18(%arg0: i32) -> (i32, i32) {
    %c0_i32 = arith.constant 0 : i32
    %c0_i32_0 = arith.constant 0 : i32
    %c0_i32_1 = arith.constant 0 : i32
    return %c0_i32, %c0_i32_0 : i32, i32
  }
  func.func @transform_19(%arg0: i32) -> (i32, i32) {
    %c0_i32 = arith.constant 0 : i32
    %c0_i32_0 = arith.constant 0 : i32
    %c0_i32_1 = arith.constant 0 : i32
    return %c0_i32, %c0_i32_0 : i32, i32
  }
  func.func @transform_20(%arg0: i32) -> (i32, i32) {
    %c0_i32 = arith.constant 0 : i32
    %c0_i32_0 = arith.constant 0 : i32
    %c0_i32_1 = arith.constant 0 : i32
    return %c0_i32, %c0_i32_0 : i32, i32
  }
  func.func @transform_21(%arg0: i32) -> (i32, i32) {
    %c0_i32 = arith.constant 0 : i32
    %c0_i32_0 = arith.constant 0 : i32
    %c0_i32_1 = arith.constant 0 : i32
    return %c0_i32, %c0_i32_0 : i32, i32
  }
  func.func @transform_22(%arg0: i32) -> (i32, i32) {
    %c0_i32 = arith.constant 0 : i32
    %c0_i32_0 = arith.constant 0 : i32
    %c0_i32_1 = arith.constant 0 : i32
    return %c0_i32, %c0_i32_0 : i32, i32
  }
  func.func @transform_23(%arg0: i32) -> (i32, i32) {
    %c0_i32 = arith.constant 0 : i32
    %c0_i32_0 = arith.constant 0 : i32
    %c0_i32_1 = arith.constant 0 : i32
    return %c0_i32, %c0_i32_0 : i32, i32
  }
  func.func @transform_24(%arg0: i32) -> (i32, i32) {
    %c0_i32 = arith.constant 0 : i32
    %c0_i32_0 = arith.constant 0 : i32
    %c0_i32_1 = arith.constant 0 : i32
    return %c0_i32, %c0_i32_0 : i32, i32
  }
  func.func @transform_25(%arg0: i32) -> (i32, i32, i32) {
    %c0_i32 = arith.constant 0 : i32
    %c0_i32_0 = arith.constant 0 : i32
    %c0_i32_1 = arith.constant 0 : i32
    %c0_i32_2 = arith.constant 0 : i32
    return %c0_i32, %c0_i32_0, %c0_i32_1 : i32, i32, i32
  }
  func.func @transform_26(%arg0: i32) -> (i32, i32) {
    %c0_i32 = arith.constant 0 : i32
    %c0_i32_0 = arith.constant 0 : i32
    %c0_i32_1 = arith.constant 0 : i32
    return %c0_i32, %c0_i32_0 : i32, i32
  }
  func.func @transform_27(%arg0: i32) -> (i32, i32) {
    %c0_i32 = arith.constant 0 : i32
    %c0_i32_0 = arith.constant 0 : i32
    %c0_i32_1 = arith.constant 0 : i32
    return %c0_i32, %c0_i32_0 : i32, i32
  }
  func.func @transform_28(%arg0: i32) -> (i32, i32) {
    %c0_i32 = arith.constant 0 : i32
    %c0_i32_0 = arith.constant 0 : i32
    %c0_i32_1 = arith.constant 0 : i32
    return %c0_i32, %c0_i32_0 : i32, i32
  }
  func.func @transform_29(%arg0: i32) -> (i32, i32) {
    %c0_i32 = arith.constant 0 : i32
    %c0_i32_0 = arith.constant 0 : i32
    %c0_i32_1 = arith.constant 0 : i32
    return %c0_i32, %c0_i32_0 : i32, i32
  }
  func.func @transform_30(%arg0: i32) -> (i32, i32) {
    %c0_i32 = arith.constant 0 : i32
    %c0_i32_0 = arith.constant 0 : i32
    %c0_i32_1 = arith.constant 0 : i32
    return %c0_i32, %c0_i32_0 : i32, i32
  }
  func.func @transform_31(%arg0: i32) -> (i32, i32) {
    %c0_i32 = arith.constant 0 : i32
    %c0_i32_0 = arith.constant 0 : i32
    %c0_i32_1 = arith.constant 0 : i32
    return %c0_i32, %c0_i32_0 : i32, i32
  }
  func.func @transform_32(%arg0: i32) -> (i32, i32) {
    %c0_i32 = arith.constant 0 : i32
    %c0_i32_0 = arith.constant 0 : i32
    %c0_i32_1 = arith.constant 0 : i32
    return %c0_i32, %c0_i32_0 : i32, i32
  }
  func.func @transform_33(%arg0: i32) -> (i32, i32) {
    %c0_i32 = arith.constant 0 : i32
    %c0_i32_0 = arith.constant 0 : i32
    %c0_i32_1 = arith.constant 0 : i32
    return %c0_i32, %c0_i32_0 : i32, i32
  }
}

</mosaic_0001>

<bundles_post_ra>
// kernel: eq.12
= control target key start
LH: loop header
LB: loop body
LE: loop exit
PB: predicated region body
PF: predicated region fallthrough
CT: control target
= control target key end

     0   :  { %s69_s10 = smov 14   ;;  %s70_s11 = smov 10   ;;  %vm3_vm0 = vcmask 15360   ;;  %vm9_vm1 = vcmask 130160   ;;  %vm15_vm2 = vcmask 113760   ;;  %vm21_vm3 = vcmask 97360   ;;  %s113_s0 = inlined_call_operand.vmem [shape: s32[8,2], index: 0, kind: input, shape index: {}]   ;;  %s114_s1 = inlined_call_operand.vmem [shape: s32[16], index: 1, kind: output, shape index: {}]  }
   0x1   :  { %v55_v0 = vld [vmem:[%s113_s0 + $0x7] sm:$0x1]   ;;  %v57_v1 = vld [vmem:[%s113_s0 + $0x5] sm:$0x1]   ;;  %v56_v2 = vld [vmem:[%s113_s0 + $0x6] sm:$0x1]  }
   0x2   :  { %7 = vrot.lane.b32.xlu0 %v55_v0, %s69_s10  ;;  %19 = vrot.lane.b32.xlu1 %v57_v1, %s70_s11  ;;  %v58_v3 = vld [vmem:[%s113_s0 + $0x4] sm:$0x1]   ;;  %v2_v4 = vld [vmem:[%s113_s0] sm:$0x1]   ;;  %s71_s18 = smov 12   ;;  %s72_s19 = smov 8  }
   0x3   :  { %4 = vst.msk [vmem:[#allocation0] sm:$0x1] %vm3_vm0, %v2_v4   ;;  %v59_v5 = vld [vmem:[%s113_s0 + $0x3] sm:$0x1]   ;;  %v60_v6 = vld [vmem:[%s113_s0 + $0x2] sm:$0x1]  }
   0x4   :  { %s73_s24 = smov 6   ;;  %s74_s25 = smov 4   ;;  %v61_v7 = vld [vmem:[%s113_s0 + $0x1] sm:$0x1]   ;;  %vm27_vm4 = vcmask 80960   ;;  %vm33_vm5 = vcmask 64560  }
   0x5   :  { %s75_s0 = smov 2   ;;  %vm39_vm6 = vcmask 48160   ;;  %vm45_vm7 = vcmask 31760  }
   0x6   :  { %13 = vrot.lane.b32.xlu0 %v56_v2, %s71_s18  ;;  %25 = vrot.lane.b32.xlu1 %v58_v3, %s72_s19 }
   0xa   :  { %31 = vrot.lane.b32.xlu0 %v59_v5, %s73_s24  ;;  %37 = vrot.lane.b32.xlu1 %v60_v6, %s74_s25 }
   0xe   :  { %43 = vrot.lane.b32.xlu0 %v61_v7, %s75_s0 }
  0x74   :  { %v8_v8 = vpop.permute.xlu0 %7   ;;  %v20_v9 = vpop.permute.xlu1 %19  }
  0x75   :  { %10 = vst.msk [vmem:[#allocation0] sm:$0x1] %vm9_vm1, %v8_v8  }
  0x78   :  { %v14_v10 = vpop.permute.xlu0 %13   ;;  %v26_v11 = vpop.permute.xlu1 %25  }
  0x79   :  { %16 = vst.msk [vmem:[#allocation0] sm:$0x1] %vm15_vm2, %v14_v10  }
  0x7a   :  { %22 = vst.msk [vmem:[#allocation0] sm:$0x1] %vm21_vm3, %v20_v9  }
  0x7b   :  { %28 = vst.msk [vmem:[#allocation0] sm:$0x1] %vm27_vm4, %v26_v11  }
  0x7c   :  { %v32_v12 = vpop.permute.xlu0 %31   ;;  %v38_v13 = vpop.permute.xlu1 %37  }
  0x7d   :  { %34 = vst.msk [vmem:[#allocation0] sm:$0x1] %vm33_vm5, %v32_v12  }
  0x7e   :  { %40 = vst.msk [vmem:[#allocation0] sm:$0x1] %vm39_vm6, %v38_v13  }
  0x80   :  { %v44_v14 = vpop.permute.xlu0 %43  }
  0x81   :  { %46 = vst.msk [vmem:[#allocation0] sm:$0x1] %vm45_vm7, %v44_v14  }
  0x88   :  { %v51_v15 = vld [vmem:[#allocation0] sm:$0x1] }
  0x89   :  { %54 = vst [vmem:[%s114_s1] sm:$0x1] %v51_v15 }

// kernel: entity_model_forward.1
= control target key start
LH: loop header
LB: loop body
LE: loop exit
PB: predicated region body
PF: predicated region fallthrough
CT: control target
= control target key end

     0   :  { %s6505_s3 = smov 2   ;;  %vm153_vm0 = vcmask 261120   ;;  %s6506_s10 = smov 3   ;;  %vm241_vm1 = vcmask 130048   ;;  %vm916_vm2 = vcmask 523264   ;;  %vm6527_vm3 = vmmov 0   ;;  %s8124_s0 = inlined_call_operand.smem [shape: u32[34], index: -1, kind: input, shape index: {}] }
   0x1   :  { %s6554_s6 = sld [smem:[%s8124_s0 + %s6505_s3]]   ;;  %s6507_s14 = smov 80   ;;  %vm2056_vm4 = vcmask 1041408   ;;  %vm3008_vm6 = vcmask 1045504   ;;  %vm3006_vm7 = vcmask 1043456  }
   0x2   :  { %s1_s9 = sld [smem:[%s8124_s0]]   ;;  %s6508_s15 = smov 96  }
   0x3   :  { %s6574_s13 = sld [smem:[%s8124_s0 + %s6506_s10]]   ;;  %s6509_s16 = smov 112  }
   0x4   :  { %s6510_s17 = smov 1   ;;  %s6511_s21 = smov 64  }
   0x5   :  { %s4871_s20 = sld [smem:[%s8124_s0 + %s6510_s17]]   ;;  %s6512_s22 = smov 48  }
   0x6   :  { %s6513_s23 = smov 4   ;;  %s6514_s27 = smov 16  }
   0x7   :  { %v145_v0 = vld [vmem:[%s6554_s6 + $0x18] sm:$0xff]  ;;  %v144_v1 = vld [vmem:[%s6554_s6 + $0x10] sm:$0xff]  ;;  %v143_v3 = vld [vmem:[%s6554_s6 + $0x8] sm:$0xff]  ;;  %s6641_s26 = sld [smem:[%s8124_s0 + %s6513_s23]]   ;;  %s6515_s28 = smov 5  }
   0x8   :  { %5432 = vmatprep.subr.mxu0 %v145_v0  ;;  %v6561_v2 = vld [vmem:[%s1_s9] sm:$0xff]  ;;  %v6567_v5 = vld [vmem:[%s1_s9 + $0x8] sm:$0xff]  ;;  %s6656_s1 = sld [smem:[%s8124_s0 + %s6515_s28]]   ;;  %s6516_s2 = smov 8  }
   0x9   :  { %5433 = vmatpush3.msra.mxu0 %v145_v0  ;;  %5440 = vmatprep.mubr.msk.f32.mxu0 %vm153_vm0, %v6561_v2  ;;  %v142_v4 = vld [vmem:[%s6554_s6] sm:$0xff]  ;;  %s6668_s5 = sld [smem:[%s8124_s0 + %s6516_s2]]   ;;  %s6517_s7 = smov 6  }
   0xa   :  { %5434 = vmatprep.subr.mxu0 %v144_v1  ;;  %v4904_v6 = vld [vmem:[%s6574_s13] ss:$0 sm:$0xff]  ;;  %s6677_s10 = sld [smem:[%s8124_s0 + %s6517_s7]]   ;;  %s6518_s11 = smov 7  }
   0xb   :  { %5435 = vmatpush3.msra.mxu0 %v144_v1  ;;  %v6610_v18 = vld [vmem:[%s4871_s20 + $0x8] sm:$0xff]  ;;  %v6612_v21 = vld [vmem:[%s4871_s20] sm:$0xff]  ;;  %s6682_s18 = sld [smem:[%s8124_s0 + %s6518_s11]]   ;;  %s6519_s19 = smov 10  }
   0xc   :  { %5436 = vmatprep.subr.mxu0 %v143_v3  ;;  %s6697_s24 = sld [smem:[%s8124_s0 + %s6519_s19]]   ;;  %s6520_s25 = smov 9  }
   0xd   :  { %5437 = vmatpush3.msra.mxu0 %v143_v3  ;;  %s6710_s30 = sld [smem:[%s8124_s0 + %s6520_s25]]   ;;  %s6521_s2 = smov 11  }
   0xe   :  { %5438 = vmatprep.subr.mxu0 %v142_v4  ;;  %s6718_s7 = sld [smem:[%s8124_s0 + %s6521_s2]]   ;;  %s6522_s8 = smov 12  }
   0xf   :  { %5439 = vmatpush3.msra.mxu0 %v142_v4  ;;  %s6734_s12 = sld [smem:[%s8124_s0 + %s6522_s8]]   ;;  %s6528_s28 = smov 32  }
  0x10   :  { %5441 = vmatmul.mubr.msk.f32.vlgmr.msra.gmra.mxu0 %vm153_vm0, %v6567_v5  ;;  %s4886_s25 = sld [smem:[%s8124_s0 + %s6514_s27]]   ;;  %s6530_s2 = smov 21  }
  0x11   :  { %s6531_s8 = smov 17   ;;  %s7241_s23 = sld [smem:[%s8124_s0 + %s6528_s28]]  }
  0x12   :  { %s6537_s3 = smov 23   ;;  %s6539_s9 = smov 26  }
  0x13   :  { %s6540_s17 = smov 27  }
  0xd0   :  { %v5442_v7 = vpop.f32.mrf.mxu0 }
  0xd1   :  { %v6577_v8 = vadd.f32 %v5442_v7, %v4904_v6 }
  0xd2   :  { %v226_v9 = vpop.f32.mrf.mxu0 }
  0xd3   :  { %v6579_v10 = vadd.f32 %v4904_v6, %v226_v9  ;;  %444 = vrot.lane.b32.xlu1 %v6577_v8, %s6507_s14  ;;  %239 = vrot.lane.b32.xlu0 %v6577_v8, %s6508_s15  ;;  %v655_v9 = vld [vmem:[%s6641_s26 + $0x18] sm:$0xff] }
  0xd5   :  { %5447 = vmatprep.mubr.msk.f32.mxu1 %vm241_vm1, %v6579_v10 }
  0xd7   :  { %442 = vrot.lane.b32.xlu1 %v6579_v10, %s6507_s14  ;;  %237 = vrot.lane.b32.xlu0 %v6579_v10, %s6508_s15 }
  0xdb   :  { %440 = vrot.lane.b32.xlu1 %v6577_v8, %s6509_s16  ;;  %438 = vrot.lane.b32.xlu0 %v6579_v10, %s6509_s16 }
 0x145   :  { %v240_v11 = vpop.permute.xlu0 %239  ;;  %v445_v12 = vpop.permute.xlu1 %444 }
 0x146   :  { %5443 = vmatprep.subr.msk.mxu1 %vm241_vm1, %v240_v11 }
 0x147   :  { %5444 = vmatpush3.xpose.msk.msra.mxu1 %vm241_vm1, %v240_v11  ;;  %v653_v11 = vld [vmem:[%s6641_s26 + $0x8] sm:$0xff] }
 0x149   :  { %v238_v13 = vpop.permute.xlu0 %237  ;;  %v443_v15 = vpop.permute.xlu1 %442 }
 0x14a   :  { %5445 = vmatprep.subr.msk.mxu1 %vm241_vm1, %v238_v13 }
 0x14b   :  { %5446 = vmatpush3.xpose.msk.msra.mxu1 %vm241_vm1, %v238_v13 }
 0x14c   :  { %5457 = vmatprep.subr.msk.mxu1 %vm241_vm1, %v445_v12 }
 0x14d   :  { %v439_v14 = vpop.permute.xlu0 %438  ;;  %v441_v16 = vpop.permute.xlu1 %440 }
 0x14e   :  { %5448 = vmatmul.mubr.msk.f32.vlgmr.msra.gmra.mxu1 %vm241_vm1, %v6577_v8 }
 0x14f   :  { %5458 = vmatpush3.xpose.msk.msra.mxu1 %vm241_vm1, %v445_v12  ;;  %5461 = vmatprep.mubr.msk.f32.mxu1 %vm241_vm1, %v439_v14  ;;  %v652_v12 = vld [vmem:[%s6641_s26] sm:$0xff] }
 0x150   :  { %5459 = vmatprep.subr.msk.mxu1 %vm241_vm1, %v443_v15 }
 0x153   :  { %5460 = vmatpush3.xpose.msk.msra.mxu1 %vm241_vm1, %v443_v15 }
 0x156   :  { %5462 = vmatmul.mubr.msk.f32.vlgmr.msra.gmra.mxu1 %vm241_vm1, %v441_v16 }
 0x20e   :  { %v5449_v17 = vpop.f32.mrf.mxu1 }
 0x20f   :  { %v326_v19 = vmul.f32 0.25, %v5449_v17 }
 0x210   :  { %v316_v20 = vpop.f32.mrf.mxu1 }
 0x211   :  { %v325_v22 = vmul.f32 0.25, %v316_v20  ;;  %v328_v23 = vadd.f32 %v326_v19, %v6610_v18 }
 0x213   :  { %v332_v24 = vsel %vm241_vm1, %v328_v23, -inf  ;;  %v327_v25 = vadd.f32 %v325_v22, %v6612_v21 }
 0x214   :  { %333 = vmax.xlane.f32.xlu1 %v332_v24 }
 0x215   :  { %v329_v26 = vsel %vm241_vm1, %v327_v25, -inf }
 0x216   :  { %v5463_v27 = vpop.f32.mrf.mxu1  ;;  %330 = vmax.xlane.f32.xlu0 %v329_v26 }
 0x217   :  { %v530_v29 = vmul.f32 0.25, %v5463_v27 }
 0x218   :  { %v520_v28 = vpop.f32.mrf.mxu1 }
 0x219   :  { %v529_v30 = vmul.f32 0.25, %v520_v28  ;;  %v532_v33 = vadd.f32 %v530_v29, %v6610_v18 }
 0x21b   :  { %v531_v31 = vadd.f32 %v529_v30, %v6612_v21  ;;  %v536_v34 = vsel %vm241_vm1, %v532_v33, -inf }
 0x21d   :  { %v533_v32 = vsel %vm241_vm1, %v531_v31, -inf }
 0x21e   :  { %534 = vmax.xlane.f32.xlu0 %v533_v32 }
 0x222   :  { %537 = vmax.xlane.f32.xlu0 %v536_v34 }
 0x225   :  { %353 = vrot.lane.b32.xlu1 %v6577_v8, %s6511_s21 }
 0x29d   :  { %v334_v35 = vpop.xlane.xlu1 %333 }
 0x29e   :  { %v336_v36 = vsub.f32 %v328_v23, %v334_v35  ;;  %v4919_v23 = vld [vmem:[%s6656_s1] ss:$0 sm:$0xff] }
 0x29f   :  { %v331_v37 = vpop.xlane.xlu0 %330 }
 0x2a0   :  { %v339_v38 = vmul.f32 1.442695, %v336_v36  ;;  %v335_v39 = vsub.f32 %v327_v25, %v331_v37 }
 0x2a1   :  { %v354_v40 = vpop.permute.xlu1 %353 }
 0x2a2   :  { %6284 = vpow2.f32 %v339_v38  ;;  %v337_v41 = vmul.f32 1.442695, %v335_v39  ;;  %5450 = vmatprep.subr.mxu0 %v354_v40 }
 0x2a3   :  { %5451 = vmatpush3.msra.mxu0 %v354_v40 }
 0x2a4   :  { %6286 = vpow2.f32 %v337_v41  ;;  %v793_v41 = vld [vmem:[%s6668_s5 + $0x10] sm:$0xff] }
 0x2a7   :  { %v535_v42 = vpop.xlane.xlu0 %534 }
 0x2a8   :  { %v539_v52 = vsub.f32 %v531_v31, %v535_v42  ;;  %v792_v42 = vld [vmem:[%s6668_s5 + $0x8] sm:$0xff] }
 0x2aa   :  { %v541_v53 = vmul.f32 1.442695, %v539_v52 }
 0x2ab   :  { %v538_v43 = vpop.xlane.xlu0 %537 }
 0x2ac   :  { %v540_v44 = vsub.f32 %v532_v33, %v538_v43  ;;  %v791_v43 = vld [vmem:[%s6668_s5] sm:$0xff] }
 0x2ae   :  { %v543_v45 = vmul.f32 1.442695, %v540_v44 }
 0x2af   :  { %v6285_v46 = vpop.eup %6284 }
 0x2b0   :  { %6288 = vpow2.f32 %v543_v45  ;;  %v344_v47 = vsel %vm241_vm1, %v6285_v46, 0.0 }
 0x2b1   :  { %v6287_v48 = vpop.eup %6286  ;;  %345 = vadd.xlane.f32.xlu0 %v344_v47  ;;  %6290 = vpow2.f32 %v541_v53  ;;  %v4923_v53 = vld [vmem:[%s6682_s18] ss:$0 sm:$0xff] }
 0x2b2   :  { %v341_v49 = vsel %vm241_vm1, %v6287_v48, 0.0 }
 0x2b3   :  { %342 = vadd.xlane.f32.xlu1 %v341_v49 }
 0x2bd   :  { %v6289_v50 = vpop.eup %6288 }
 0x2be   :  { %v548_v51 = vsel %vm241_vm1, %v6289_v50, 0.0  ;;  %v6291_v54 = vpop.eup %6290 }
 0x2bf   :  { %549 = vadd.xlane.f32.xlu0 %v548_v51  ;;  %v545_v55 = vsel %vm241_vm1, %v6291_v54, 0.0  ;;  %v4922_v51 = vld [vmem:[%s6677_s10] ss:$0 sm:$0xff] }
 0x2c4   :  { %557 = vrot.lane.b32.xlu1 %v6577_v8, %s6512_s22 }
 0x2d5   :  { %351 = vrot.lane.b32.xlu0 %v6579_v10, %s6511_s21 }
 0x2e8   :  { %546 = vadd.xlane.f32.xlu1 %v545_v55 }
 0x2f9   :  { %555 = vrot.lane.b32.xlu1 %v6579_v10, %s6512_s22  ;;  %v654_v10 = vld [vmem:[%s6641_s26 + $0x10] sm:$0xff] }
 0x33a   :  { %v346_v56 = vpop.xlane.xlu0 %345 }
 0x33b   :  { %6292 = vrcp.f32 %v346_v56 }
 0x33c   :  { %v343_v57 = vpop.xlane.xlu1 %342 }
 0x33d   :  { %6294 = vrcp.f32 %v343_v57 }
 0x340   :  { %v558_v0 = vpop.permute.xlu1 %557 }
 0x348   :  { %v550_v58 = vpop.xlane.xlu0 %549  ;;  %v6293_v59 = vpop.eup %6292 }
 0x349   :  { %v350_v63 = vmul.f32 %v6293_v59, %v6285_v46  ;;  %6296 = vrcp.f32 %v550_v58 }
 0x34a   :  { %v6295_v60 = vpop.eup %6294 }
 0x34b   :  { %v349_v61 = vmul.f32 %v6295_v60, %v6287_v48  ;;  %v908_v60 = vld [vmem:[%s6697_s24 + $0x38] sm:$0xff] }
 0x34c   :  { %v352_v62 = vpop.permute.xlu0 %351 }
 0x34d   :  { %5452 = vmatprep.subr.mxu0 %v352_v62  ;;  %5454 = vmatprep.mubr.msk.f32.mxu0 %vm241_vm1, %v349_v61  ;;  %v907_v61 = vld [vmem:[%s6697_s24 + $0x30] sm:$0xff] }
 0x34e   :  { %5453 = vmatpush3.msra.mxu0 %v352_v62  ;;  %v906_v62 = vld [vmem:[%s6697_s24 + $0x28] sm:$0xff] }
 0x34f   :  { %5455 = vmatmul.mubr.msk.f32.vlgmr.msra.gmra.mxu0 %vm241_vm1, %v350_v63  ;;  %5464 = vmatprep.subr.mxu0 %v558_v0  ;;  %v905_v63 = vld [vmem:[%s6697_s24 + $0x20] sm:$0xff] }
 0x350   :  { %5465 = vmatpush3.msra.mxu0 %v558_v0  ;;  %v904_v0 = vld [vmem:[%s6697_s24 + $0x18] sm:$0xff] }
 0x356   :  { %v6297_v4 = vpop.eup %6296 }
 0x357   :  { %v554_v8 = vmul.f32 %v6297_v4, %v6289_v50  ;;  %v901_v4 = vld [vmem:[%s6697_s24] sm:$0xff] }
 0x371   :  { %v547_v1 = vpop.xlane.xlu1 %546 }
 0x372   :  { %6298 = vrcp.f32 %v547_v1  ;;  %v903_v1 = vld [vmem:[%s6697_s24 + $0x10] sm:$0xff] }
 0x375   :  { %v556_v3 = vpop.permute.xlu1 %555 }
 0x376   :  { %5466 = vmatprep.subr.mxu0 %v556_v3 }
 0x377   :  { %5467 = vmatpush3.msra.mxu0 %v556_v3  ;;  %v902_v3 = vld [vmem:[%s6697_s24 + $0x8] sm:$0xff] }
 0x378   :  { %5471 = vmatprep.subr.mxu0 %v655_v9 }
 0x37f   :  { %v6299_v6 = vpop.eup %6298 }
 0x380   :  { %v553_v7 = vmul.f32 %v6299_v6, %v6291_v54  ;;  %v4924_v6 = vld [vmem:[%s6710_s30] ss:$0 sm:$0xff] }
 0x382   :  { %5468 = vmatprep.mubr.msk.f32.mxu0 %vm241_vm1, %v553_v7 }
 0x383   :  { %5469 = vmatmul.mubr.msk.f32.vlgmr.msra.gmra.mxu0 %vm241_vm1, %v554_v8 }
 0x384   :  { %5472 = vmatpush3.msra.mxu0 %v655_v9 }
 0x385   :  { %5473 = vmatprep.subr.mxu0 %v654_v10 }
 0x386   :  { %5474 = vmatpush3.msra.mxu0 %v654_v10 }
 0x387   :  { %5475 = vmatprep.subr.mxu0 %v653_v11 }
 0x388   :  { %5476 = vmatpush3.msra.mxu0 %v653_v11 }
 0x389   :  { %5477 = vmatprep.subr.mxu0 %v652_v12 }
 0x38a   :  { %5478 = vmatpush3.msra.mxu0 %v652_v12 }
 0x38b   :  { %5493 = vmatprep.subr.mxu0 %v908_v60 }
 0x40f   :  { %v5456_v13 = vpop.f32.mrf.mxu0 }
 0x411   :  { %v429_v14 = vpop.f32.mrf.mxu0 }
 0x443   :  { %v5470_v15 = vpop.f32.mrf.mxu0 }
 0x444   :  { %646 = vrot.lane.b32.xlu1 %v5470_v15, %s6514_s27 }
 0x445   :  { %v633_v16 = vpop.f32.mrf.mxu0 }
 0x446   :  { %644 = vrot.lane.b32.xlu0 %v633_v16, %s6514_s27 }
 0x4b6   :  { %v647_v17 = vpop.permute.xlu1 %646 }
 0x4b7   :  { %v651_v22 = vsel %vm241_vm1, %v5456_v13, %v647_v17 }
 0x4b8   :  { %v645_v19 = vpop.permute.xlu0 %644 }
 0x4b9   :  { %v650_v20 = vsel %vm241_vm1, %v429_v14, %v645_v19 }
 0x4ba   :  { %5479 = vmatprep.mubr.msk.f32.mxu0 %vm153_vm0, %v650_v20 }
 0x4bb   :  { %5480 = vmatmul.mubr.msk.f32.vlgmr.msra.gmra.mxu0 %vm153_vm0, %v651_v22 }
 0x4bc   :  { %5494 = vmatpush3.msra.mxu0 %v908_v60 }
 0x4bd   :  { %5495 = vmatprep.subr.mxu0 %v907_v61 }
 0x4be   :  { %5496 = vmatpush3.msra.mxu0 %v907_v61 }
 0x4bf   :  { %5497 = vmatprep.subr.mxu0 %v906_v62 }
 0x4c0   :  { %5498 = vmatpush3.msra.mxu0 %v906_v62 }
 0x4c1   :  { %5499 = vmatprep.subr.mxu0 %v905_v63 }
 0x4c2   :  { %5500 = vmatpush3.msra.mxu0 %v905_v63 }
 0x4c3   :  { %5501 = vmatprep.subr.mxu0 %v904_v0 }
 0x4c4   :  { %5502 = vmatpush3.msra.mxu0 %v904_v0 }
 0x4c5   :  { %5503 = vmatprep.subr.mxu0 %v903_v1 }
 0x4c6   :  { %5504 = vmatpush3.msra.mxu0 %v903_v1 }
 0x4c7   :  { %5505 = vmatprep.subr.mxu0 %v902_v3 }
 0x4c8   :  { %5506 = vmatpush3.msra.mxu0 %v902_v3 }
 0x4c9   :  { %5507 = vmatprep.subr.mxu0 %v901_v4 }
 0x4ca   :  { %5508 = vmatpush3.msra.mxu0 %v901_v4 }
 0x57b   :  { %v5481_v24 = vpop.f32.mrf.mxu0 }
 0x57c   :  { %v741_v25 = vadd.f32 %v5481_v24, %v4919_v23 }
 0x57d   :  { %v735_v26 = vpop.f32.mrf.mxu0 }
 0x57e   :  { %v736_v27 = vadd.f32 %v4919_v23, %v735_v26  ;;  %v745_v28 = vadd.f32 %v741_v25, %v6567_v5 }
 0x580   :  { %v751_v29 = vsel %vm153_vm0, %v745_v28, 0.0  ;;  %v744_v30 = vadd.f32 %v736_v27, %v6561_v2  ;;  %v794_v2 = vld [vmem:[%s6668_s5 + $0x18] sm:$0xff] }
 0x581   :  { %752 = vadd.xlane.f32.xlu1 %v751_v29  ;;  %5482 = vmatprep.subr.mxu1 %v794_v2 }
 0x582   :  { %v748_v31 = vsel %vm153_vm0, %v744_v30, 0.0  ;;  %5483 = vmatpush3.msra.mxu1 %v794_v2 }
 0x583   :  { %749 = vadd.xlane.f32.xlu0 %v748_v31  ;;  %5484 = vmatprep.subr.mxu1 %v793_v41  ;;  %v4927_v31 = vld [vmem:[%s6718_s7] ss:$0 sm:$0xff] }
 0x584   :  { %5485 = vmatpush3.msra.mxu1 %v793_v41 }
 0x585   :  { %5486 = vmatprep.subr.mxu1 %v792_v42 }
 0x586   :  { %5487 = vmatpush3.msra.mxu1 %v792_v42 }
 0x587   :  { %5488 = vmatprep.subr.mxu1 %v791_v43 }
 0x588   :  { %5489 = vmatpush3.msra.mxu1 %v791_v43 }
 0x60a   :  { %v753_v32 = vpop.xlane.xlu1 %752 }
 0x60b   :  { %v756_v33 = vmul.f32 0.03125, %v753_v32 }
 0x60c   :  { %v750_v34 = vpop.xlane.xlu0 %749 }
 0x60d   :  { %v755_v35 = vmul.f32 0.03125, %v750_v34  ;;  %v758_v36 = vsub.f32 %v745_v28, %v756_v33 }
 0x60f   :  { %v757_v37 = vsub.f32 %v744_v30, %v755_v35  ;;  %v760_v40 = vmul.f32 %v758_v36, %v758_v36 }
 0x611   :  { %v759_v38 = vmul.f32 %v757_v37, %v757_v37  ;;  %v764_v5 = vsel %vm153_vm0, %v760_v40, 0.0 }
 0x613   :  { %v761_v39 = vsel %vm153_vm0, %v759_v38, 0.0 }
 0x614   :  { %762 = vadd.xlane.f32.xlu0 %v761_v39 }
 0x618   :  { %765 = vadd.xlane.f32.xlu0 %v764_v5 }
 0x69d   :  { %v763_v44 = vpop.xlane.xlu0 %762 }
 0x69e   :  { %v767_v45 = vmul.f32 0.03125, %v763_v44 }
 0x6a0   :  { %v769_v46 = vadd.f32 1e-12, %v767_v45 }
 0x6a1   :  { %v766_v47 = vpop.xlane.xlu0 %765 }
 0x6a2   :  { %6300 = vrsqrt.f32 %v769_v46  ;;  %v768_v48 = vmul.f32 0.03125, %v766_v47 }
 0x6a4   :  { %v770_v49 = vadd.f32 1e-12, %v768_v48  ;;  %v4935_v48 = vld [vmem:[%s6554_s6 + $0x38] sm:$0xff] }
 0x6a5   :  { %5512 = vmatprep.subr.mxu1 %v4935_v48 }
 0x6a6   :  { %6302 = vrsqrt.f32 %v770_v49  ;;  %v4934_v49 = vld [vmem:[%s6554_s6 + $0x30] sm:$0xff] }
 0x6af   :  { %v6301_v50 = vpop.eup %6300 }
 0x6b0   :  { %v773_v52 = vmul.f32 %v6301_v50, %v757_v37  ;;  %v4933_v50 = vld [vmem:[%s6554_s6 + $0x28] sm:$0xff] }
 0x6b2   :  { %v781_v54 = vmul.f32 %v4922_v51, %v773_v52 }
 0x6b3   :  { %v6303_v55 = vpop.eup %6302 }
 0x6b4   :  { %v774_v56 = vmul.f32 %v6303_v55, %v758_v36  ;;  %v6686_v57 = vadd.f32 %v4923_v53, %v781_v54 }
 0x6b6   :  { %v782_v58 = vmul.f32 %v4922_v51, %v774_v56  ;;  %5490 = vmatprep.mubr.msk.f32.mxu1 %vm153_vm0, %v6686_v57  ;;  %v4932_v51 = vld [vmem:[%s6554_s6 + $0x20] sm:$0xff]  ;;  %s6523_s6 = smov 13  }
 0x6b7   :  { %s6739_s20 = sld [smem:[%s8124_s0 + %s6523_s6]]   ;;  %s6532_s6 = smov 18  }
 0x6b8   :  { %v6690_v59 = vadd.f32 %v4923_v53, %v782_v58 }
 0x6ba   :  { %5491 = vmatmul.mubr.msk.f32.vlgmr.msra.gmra.mxu1 %vm153_vm0, %v6690_v59 }
 0x6bb   :  { %5513 = vmatpush3.msra.mxu1 %v4935_v48 }
 0x6bc   :  { %5514 = vmatprep.subr.mxu1 %v4934_v49 }
 0x6bd   :  { %5515 = vmatpush3.msra.mxu1 %v4934_v49  ;;  %v4931_v0 = vld [vmem:[%s6739_s20] ss:$0 sm:$0xff] }
 0x6be   :  { %5516 = vmatprep.subr.mxu1 %v4933_v50 }
 0x6bf   :  { %5517 = vmatpush3.msra.mxu1 %v4933_v50 }
 0x6c0   :  { %5518 = vmatprep.subr.mxu1 %v4932_v51 }
 0x6c1   :  { %5519 = vmatpush3.msra.mxu1 %v4932_v51 }
 0x77a   :  { %v5492_v7 = vpop.f32.mrf.mxu1 }
 0x77b   :  { %v880_v8 = vadd.f32 %v5492_v7, %v4924_v6 }
 0x77c   :  { %v874_v9 = vpop.f32.mrf.mxu1 }
 0x77d   :  { %v884_v10 = vmul.f32 %v880_v8, %v880_v8  ;;  %v875_v11 = vadd.f32 %v4924_v6, %v874_v9  ;;  %v4937_v6 = vld [vmem:[%s6574_s13 + $0x1] ss:$0 sm:$0xff]  ;;  %s6524_s13 = smov 14  }
 0x77f   :  { %v886_v12 = vmul.f32 %v884_v10, %v880_v8  ;;  %v883_v13 = vmul.f32 %v875_v11, %v875_v11 }
 0x781   :  { %v888_v14 = vmul.f32 0.044715, %v886_v12  ;;  %v885_v15 = vmul.f32 %v883_v13, %v875_v11 }
 0x783   :  { %v890_v16 = vadd.f32 %v888_v14, %v880_v8  ;;  %v887_v17 = vmul.f32 0.044715, %v885_v15 }
 0x785   :  { %v892_v19 = vmul.f32 0.7978846, %v890_v16  ;;  %v889_v20 = vadd.f32 %v887_v17, %v875_v11 }
 0x787   :  { %6304 = vtanh.f32 %v892_v19  ;;  %v891_v22 = vmul.f32 0.7978846, %v889_v20 }
 0x789   :  { %6306 = vtanh.f32 %v891_v22 }
 0x794   :  { %v6305_v23 = vpop.eup %6304 }
 0x795   :  { %v896_v24 = vadd.f32 1.0, %v6305_v23 }
 0x796   :  { %v6307_v25 = vpop.eup %6306 }
 0x797   :  { %v895_v26 = vadd.f32 1.0, %v6307_v25  ;;  %v898_v27 = vmul.f32 0.5, %v896_v24 }
 0x799   :  { %v897_v28 = vmul.f32 0.5, %v895_v26  ;;  %v900_v30 = vmul.f32 %v898_v27, %v880_v8 }
 0x79b   :  { %v899_v29 = vmul.f32 %v897_v28, %v875_v11 }
 0x79d   :  { %5509 = vmatprep.mubr.msk.f32.mxu0 %vm916_vm2, %v899_v29 }
 0x79e   :  { %5510 = vmatmul.mubr.msk.f32.vlgmr.msra.gmra.mxu0 %vm916_vm2, %v900_v30 }
 0x85e   :  { %v5511_v32 = vpop.f32.mrf.mxu0 }
 0x85f   :  { %v995_v33 = vadd.f32 %v5511_v32, %v4927_v31 }
 0x860   :  { %v989_v34 = vpop.f32.mrf.mxu0 }
 0x861   :  { %v990_v35 = vadd.f32 %v4927_v31, %v989_v34  ;;  %v999_v36 = vadd.f32 %v995_v33, %v6690_v59  ;;  %v4930_v59 = vld [vmem:[%s6734_s12] ss:$0 sm:$0xff] }
 0x863   :  { %v1005_v37 = vsel %vm153_vm0, %v999_v36, 0.0  ;;  %v998_v38 = vadd.f32 %v990_v35, %v6686_v57 }
 0x864   :  { %1006 = vadd.xlane.f32.xlu0 %v1005_v37 }
 0x865   :  { %v1002_v39 = vsel %vm153_vm0, %v998_v38, 0.0 }
 0x866   :  { %1003 = vadd.xlane.f32.xlu1 %v1002_v39 }
 0x8ed   :  { %v1007_v40 = vpop.xlane.xlu0 %1006 }
 0x8ee   :  { %v1009_v5 = vmul.f32 0.03125, %v1007_v40 }
 0x8ef   :  { %v1004_v2 = vpop.xlane.xlu1 %1003 }
 0x8f0   :  { %v1011_v41 = vsub.f32 %v999_v36, %v1009_v5  ;;  %v1008_v42 = vmul.f32 0.03125, %v1004_v2 }
 0x8f2   :  { %v1010_v43 = vsub.f32 %v998_v38, %v1008_v42  ;;  %v1013_v44 = vmul.f32 %v1011_v41, %v1011_v41 }
 0x8f4   :  { %v1017_v45 = vsel %vm153_vm0, %v1013_v44, 0.0  ;;  %v1012_v46 = vmul.f32 %v1010_v43, %v1010_v43 }
 0x8f5   :  { %1018 = vadd.xlane.f32.xlu0 %v1017_v45 }
 0x8f6   :  { %v1014_v47 = vsel %vm153_vm0, %v1012_v46, 0.0 }
 0x8f7   :  { %1015 = vadd.xlane.f32.xlu1 %v1014_v47 }
 0x97e   :  { %v1019_v52 = vpop.xlane.xlu0 %1018 }
 0x97f   :  { %v1021_v53 = vmul.f32 0.03125, %v1019_v52 }
 0x980   :  { %v1016_v54 = vpop.xlane.xlu1 %1015 }
 0x981   :  { %v1023_v55 = vadd.f32 1e-12, %v1021_v53  ;;  %v1020_v56 = vmul.f32 0.03125, %v1016_v54 }
 0x983   :  { %6308 = vrsqrt.f32 %v1023_v55  ;;  %v1022_v57 = vadd.f32 1e-12, %v1020_v56 }
 0x985   :  { %6310 = vrsqrt.f32 %v1022_v57 }
 0x990   :  { %v6309_v58 = vpop.eup %6308 }
 0x991   :  { %v1027_v60 = vmul.f32 %v6309_v58, %v1011_v41 }
 0x992   :  { %v6311_v61 = vpop.eup %6310 }
 0x993   :  { %v1026_v62 = vmul.f32 %v6311_v61, %v1010_v43  ;;  %v1035_v63 = vmul.f32 %v4930_v59, %v1027_v60 }
 0x995   :  { %v1034_v1 = vmul.f32 %v4930_v59, %v1026_v62  ;;  %v6745_v4 = vadd.f32 %v4931_v0, %v1035_v63 }
 0x997   :  { %v6743_v3 = vadd.f32 %v4931_v0, %v1034_v1 }
 0x999   :  { %5520 = vmatprep.mubr.msk.f32.mxu1 %vm153_vm0, %v6743_v3 }
 0x99a   :  { %5521 = vmatmul.mubr.msk.f32.vlgmr.msra.gmra.mxu1 %vm153_vm0, %v6745_v4 }
 0xa5a   :  { %v5522_v7 = vpop.f32.mrf.mxu1 }
 0xa5b   :  { %v6752_v8 = vadd.f32 %v5522_v7, %v4937_v6  ;;  %v4955_v7 = vld [vmem:[%s6641_s26 + $0x38] sm:$0xff] }
 0xa5c   :  { %v1129_v9 = vpop.f32.mrf.mxu1 }
 0xa5d   :  { %v6754_v10 = vadd.f32 %v4937_v6, %v1129_v9  ;;  %1142 = vrot.lane.b32.xlu1 %v6752_v8, %s6508_s15  ;;  %v4953_v9 = vld [vmem:[%s6641_s26 + $0x28] sm:$0xff] }
 0xa5f   :  { %1140 = vrot.lane.b32.xlu0 %v6754_v10, %s6508_s15  ;;  %5527 = vmatprep.mubr.msk.f32.mxu1 %vm241_vm1, %v6754_v10 }
 0xa61   :  { %1346 = vrot.lane.b32.xlu1 %v6752_v8, %s6507_s14 }
 0xa63   :  { %1340 = vrot.lane.b32.xlu0 %v6754_v10, %s6509_s16 }
 0xa65   :  { %1344 = vrot.lane.b32.xlu1 %v6754_v10, %s6507_s14 }
 0xa69   :  { %1342 = vrot.lane.b32.xlu1 %v6752_v8, %s6509_s16 }
 0xacf   :  { %v1143_v11 = vpop.permute.xlu1 %1142 }
 0xad0   :  { %5523 = vmatprep.subr.msk.mxu1 %vm241_vm1, %v1143_v11 }
 0xad1   :  { %5524 = vmatpush3.xpose.msk.msra.mxu1 %vm241_vm1, %v1143_v11  ;;  %v1141_v12 = vpop.permute.xlu0 %1140 }
 0xad2   :  { %5525 = vmatprep.subr.msk.mxu1 %vm241_vm1, %v1141_v12 }
 0xad3   :  { %v1347_v13 = vpop.permute.xlu1 %1346 }
 0xad5   :  { %5526 = vmatpush3.xpose.msk.msra.mxu1 %vm241_vm1, %v1141_v12  ;;  %v1341_v14 = vpop.permute.xlu0 %1340 }
 0xad6   :  { %5537 = vmatprep.subr.msk.mxu1 %vm241_vm1, %v1347_v13 }
 0xad7   :  { %v1345_v15 = vpop.permute.xlu1 %1344 }
 0xad8   :  { %5528 = vmatmul.mubr.msk.f32.vlgmr.msra.gmra.mxu1 %vm241_vm1, %v6752_v8 }
 0xad9   :  { %5538 = vmatpush3.xpose.msk.msra.mxu1 %vm241_vm1, %v1347_v13  ;;  %5541 = vmatprep.mubr.msk.f32.mxu1 %vm241_vm1, %v1341_v14 }
 0xada   :  { %5539 = vmatprep.subr.msk.mxu1 %vm241_vm1, %v1345_v15 }
 0xadb   :  { %v1343_v16 = vpop.permute.xlu1 %1342 }
 0xadd   :  { %5540 = vmatpush3.xpose.msk.msra.mxu1 %vm241_vm1, %v1345_v15 }
 0xae0   :  { %5542 = vmatmul.mubr.msk.f32.vlgmr.msra.gmra.mxu1 %vm241_vm1, %v1343_v16 }
 0xb98   :  { %v5529_v17 = vpop.f32.mrf.mxu1 }
 0xb99   :  { %v1228_v19 = vmul.f32 0.25, %v5529_v17 }
 0xb9a   :  { %v1218_v20 = vpop.f32.mrf.mxu1 }
 0xb9b   :  { %v1227_v22 = vmul.f32 0.25, %v1218_v20  ;;  %v1230_v23 = vadd.f32 %v1228_v19, %v6610_v18  ;;  %v4957_v20 = vld [vmem:[%s6656_s1 + $0x1] ss:$0 sm:$0xff]  ;;  %s6525_s1 = smov 15  }
 0xb9d   :  { %v1234_v24 = vsel %vm241_vm1, %v1230_v23, -inf  ;;  %v1229_v25 = vadd.f32 %v1227_v22, %v6612_v21 }
 0xb9e   :  { %1235 = vmax.xlane.f32.xlu1 %v1234_v24 }
 0xb9f   :  { %v1231_v26 = vsel %vm241_vm1, %v1229_v25, -inf }
 0xba0   :  { %v5543_v27 = vpop.f32.mrf.mxu1  ;;  %1232 = vmax.xlane.f32.xlu0 %v1231_v26 }
 0xba1   :  { %v1432_v29 = vmul.f32 0.25, %v5543_v27 }
 0xba2   :  { %v1422_v28 = vpop.f32.mrf.mxu1 }
 0xba3   :  { %v1431_v30 = vmul.f32 0.25, %v1422_v28  ;;  %v1434_v33 = vadd.f32 %v1432_v29, %v6610_v18 }
 0xba5   :  { %v1433_v31 = vadd.f32 %v1431_v30, %v6612_v21  ;;  %v1438_v34 = vsel %vm241_vm1, %v1434_v33, -inf }
 0xba7   :  { %v1435_v32 = vsel %vm241_vm1, %v1433_v31, -inf }
 0xba8   :  { %1436 = vmax.xlane.f32.xlu0 %v1435_v32 }
 0xbac   :  { %1439 = vmax.xlane.f32.xlu0 %v1438_v34 }
 0xbaf   :  { %1255 = vrot.lane.b32.xlu1 %v6752_v8, %s6511_s21 }
 0xc27   :  { %v1236_v35 = vpop.xlane.xlu1 %1235 }
 0xc28   :  { %v1238_v36 = vsub.f32 %v1230_v23, %v1236_v35 }
 0xc29   :  { %v1233_v37 = vpop.xlane.xlu0 %1232 }
 0xc2a   :  { %v1241_v38 = vmul.f32 1.442695, %v1238_v36  ;;  %v1237_v39 = vsub.f32 %v1229_v25, %v1233_v37 }
 0xc2b   :  { %v1256_v40 = vpop.permute.xlu1 %1255 }
 0xc2c   :  { %6312 = vpow2.f32 %v1241_v38  ;;  %v1239_v5 = vmul.f32 1.442695, %v1237_v39  ;;  %5530 = vmatprep.subr.mxu0 %v1256_v40  ;;  %v4967_v38 = vld [vmem:[%s6668_s5 + $0x38] sm:$0xff]  ;;  %v4966_v39 = vld [vmem:[%s6668_s5 + $0x30] sm:$0xff] }
 0xc2d   :  { %5531 = vmatpush3.msra.mxu0 %v1256_v40  ;;  %5562 = vmatprep.subr.mxu1 %v4967_v38  ;;  %v4965_v40 = vld [vmem:[%s6668_s5 + $0x28] sm:$0xff] }
 0xc2e   :  { %6314 = vpow2.f32 %v1239_v5  ;;  %5563 = vmatpush3.msra.mxu1 %v4967_v38  ;;  %v4964_v5 = vld [vmem:[%s6668_s5 + $0x20] sm:$0xff] }
 0xc2f   :  { %5564 = vmatprep.subr.mxu1 %v4966_v39 }
 0xc30   :  { %5565 = vmatpush3.msra.mxu1 %v4966_v39 }
 0xc31   :  { %v1437_v21 = vpop.xlane.xlu0 %1436  ;;  %5566 = vmatprep.subr.mxu1 %v4965_v40 }
 0xc32   :  { %v1441_v48 = vsub.f32 %v1433_v31, %v1437_v21  ;;  %5567 = vmatpush3.msra.mxu1 %v4965_v40 }
 0xc33   :  { %5568 = vmatprep.subr.mxu1 %v4964_v5 }
 0xc34   :  { %v1443_v49 = vmul.f32 1.442695, %v1441_v48  ;;  %5569 = vmatpush3.msra.mxu1 %v4964_v5 }
 0xc35   :  { %v1440_v18 = vpop.xlane.xlu0 %1439 }
 0xc36   :  { %v1442_v2 = vsub.f32 %v1434_v33, %v1440_v18 }
 0xc38   :  { %v1445_v41 = vmul.f32 1.442695, %v1442_v2 }
 0xc39   :  { %v6313_v42 = vpop.eup %6312 }
 0xc3a   :  { %6316 = vpow2.f32 %v1445_v41  ;;  %v1246_v43 = vsel %vm241_vm1, %v6313_v42, 0.0 }
 0xc3b   :  { %v6315_v44 = vpop.eup %6314  ;;  %1247 = vadd.xlane.f32.xlu0 %v1246_v43  ;;  %6318 = vpow2.f32 %v1443_v49 }
 0xc3c   :  { %v1243_v45 = vsel %vm241_vm1, %v6315_v44, 0.0 }
 0xc3d   :  { %1244 = vadd.xlane.f32.xlu1 %v1243_v45  ;;  %v4962_v45 = vld [vmem:[%s6677_s10 + $0x1] ss:$0 sm:$0xff] }
 0xc47   :  { %v6317_v46 = vpop.eup %6316 }
 0xc48   :  { %v1450_v47 = vsel %vm241_vm1, %v6317_v46, 0.0  ;;  %v6319_v50 = vpop.eup %6318 }
 0xc49   :  { %1451 = vadd.xlane.f32.xlu0 %v1450_v47  ;;  %v1447_v51 = vsel %vm241_vm1, %v6319_v50, 0.0  ;;  %v4963_v47 = vld [vmem:[%s6682_s18 + $0x1] ss:$0 sm:$0xff]  ;;  %s4885_s18 = sld [smem:[%s8124_s0 + %s6525_s1]]  }
 0xc4e   :  { %1459 = vrot.lane.b32.xlu1 %v6752_v8, %s6512_s22  ;;  %v4954_v8 = vld [vmem:[%s6641_s26 + $0x30] sm:$0xff] }
 0xc5f   :  { %1253 = vrot.lane.b32.xlu0 %v6754_v10, %s6511_s21 }
 0xc72   :  { %1448 = vadd.xlane.f32.xlu1 %v1447_v51 }
 0xc83   :  { %1457 = vrot.lane.b32.xlu1 %v6754_v10, %s6512_s22  ;;  %v4952_v10 = vld [vmem:[%s6641_s26 + $0x20] sm:$0xff]  ;;  %s4884_s26 = sld [smem:[%s8124_s0 + %s6524_s13]]   ;;  %s6534_s22 = smov 30  }
 0xc84   :  { %s7226_s5 = sld [smem:[%s8124_s0 + %s6534_s22]]  }
 0xcc4   :  { %v1248_v52 = vpop.xlane.xlu0 %1247 }
 0xcc5   :  { %6320 = vrcp.f32 %v1248_v52 }
 0xcc6   :  { %v1245_v53 = vpop.xlane.xlu1 %1244 }
 0xcc7   :  { %6322 = vrcp.f32 %v1245_v53 }
 0xcca   :  { %v1460_v60 = vpop.permute.xlu1 %1459 }
 0xcd2   :  { %v1452_v54 = vpop.xlane.xlu0 %1451  ;;  %v6321_v55 = vpop.eup %6320 }
 0xcd3   :  { %v1252_v59 = vmul.f32 %v6321_v55, %v6313_v42  ;;  %6324 = vrcp.f32 %v1452_v54  ;;  %v4979_v54 = vld [vmem:[%s6697_s24 + $0x78] sm:$0xff]  ;;  %v4978_v55 = vld [vmem:[%s6697_s24 + $0x70] sm:$0xff] }
 0xcd4   :  { %v6323_v56 = vpop.eup %6322 }
 0xcd5   :  { %v1251_v57 = vmul.f32 %v6323_v56, %v6315_v44  ;;  %v4977_v56 = vld [vmem:[%s6697_s24 + $0x68] sm:$0xff] }
 0xcd6   :  { %v1254_v58 = vpop.permute.xlu0 %1253 }
 0xcd7   :  { %5532 = vmatprep.subr.mxu0 %v1254_v58  ;;  %5534 = vmatprep.mubr.msk.f32.mxu0 %vm241_vm1, %v1251_v57  ;;  %v4976_v57 = vld [vmem:[%s6697_s24 + $0x60] sm:$0xff] }
 0xcd8   :  { %5533 = vmatpush3.msra.mxu0 %v1254_v58  ;;  %v4975_v58 = vld [vmem:[%s6697_s24 + $0x58] sm:$0xff] }
 0xcd9   :  { %5535 = vmatmul.mubr.msk.f32.vlgmr.msra.gmra.mxu0 %vm241_vm1, %v1252_v59  ;;  %5544 = vmatprep.subr.mxu0 %v1460_v60  ;;  %v4974_v59 = vld [vmem:[%s6697_s24 + $0x50] sm:$0xff] }
 0xcda   :  { %5545 = vmatpush3.msra.mxu0 %v1460_v60  ;;  %v4973_v60 = vld [vmem:[%s6697_s24 + $0x48] sm:$0xff] }
 0xce0   :  { %v6325_v63 = vpop.eup %6324 }
 0xce1   :  { %v1456_v6 = vmul.f32 %v6325_v63, %v6317_v46 }
 0xcfb   :  { %v1449_v61 = vpop.xlane.xlu1 %1448 }
 0xcfc   :  { %6326 = vrcp.f32 %v1449_v61  ;;  %v4972_v61 = vld [vmem:[%s6697_s24 + $0x40] sm:$0xff]  ;;  %s6535_s24 = smov 20  }
 0xcff   :  { %v1458_v62 = vpop.permute.xlu1 %1457 }
 0xd00   :  { %5546 = vmatprep.subr.mxu0 %v1458_v62 }
 0xd01   :  { %5547 = vmatpush3.msra.mxu0 %v1458_v62  ;;  %v4969_v62 = vld [vmem:[%s6710_s30 + $0x1] ss:$0 sm:$0xff] }
 0xd02   :  { %5551 = vmatprep.subr.mxu0 %v4955_v7 }
 0xd09   :  { %v6327_v0 = vpop.eup %6326 }
 0xd0a   :  { %v1455_v1 = vmul.f32 %v6327_v0, %v6319_v50 }
 0xd0c   :  { %5548 = vmatprep.mubr.msk.f32.mxu0 %vm241_vm1, %v1455_v1 }
 0xd0d   :  { %5549 = vmatmul.mubr.msk.f32.vlgmr.msra.gmra.mxu0 %vm241_vm1, %v1456_v6 }
 0xd0e   :  { %5552 = vmatpush3.msra.mxu0 %v4955_v7 }
 0xd0f   :  { %5553 = vmatprep.subr.mxu0 %v4954_v8 }
 0xd10   :  { %5554 = vmatpush3.msra.mxu0 %v4954_v8 }
 0xd11   :  { %5555 = vmatprep.subr.mxu0 %v4953_v9 }
 0xd12   :  { %5556 = vmatpush3.msra.mxu0 %v4953_v9 }
 0xd13   :  { %5557 = vmatprep.subr.mxu0 %v4952_v10 }
 0xd14   :  { %5558 = vmatpush3.msra.mxu0 %v4952_v10 }
 0xd15   :  { %5573 = vmatprep.subr.mxu0 %v4979_v54 }
 0xd99   :  { %v5536_v11 = vpop.f32.mrf.mxu0 }
 0xd9b   :  { %v1331_v12 = vpop.f32.mrf.mxu0 }
 0xdcd   :  { %v5550_v13 = vpop.f32.mrf.mxu0 }
 0xdce   :  { %1548 = vrot.lane.b32.xlu1 %v5550_v13, %s6514_s27 }
 0xdcf   :  { %v1535_v14 = vpop.f32.mrf.mxu0 }
 0xdd0   :  { %1546 = vrot.lane.b32.xlu0 %v1535_v14, %s6514_s27 }
 0xe40   :  { %v1549_v15 = vpop.permute.xlu1 %1548 }
 0xe41   :  { %v1553_v19 = vsel %vm241_vm1, %v5536_v11, %v1549_v15 }
 0xe42   :  { %v1547_v16 = vpop.permute.xlu0 %1546 }
 0xe43   :  { %v1552_v17 = vsel %vm241_vm1, %v1331_v12, %v1547_v16 }
 0xe44   :  { %5559 = vmatprep.mubr.msk.f32.mxu0 %vm153_vm0, %v1552_v17 }
 0xe45   :  { %5560 = vmatmul.mubr.msk.f32.vlgmr.msra.gmra.mxu0 %vm153_vm0, %v1553_v19 }
 0xe46   :  { %5574 = vmatpush3.msra.mxu0 %v4979_v54  ;;  %v4986_v54 = vld [vmem:[%s6734_s12 + $0x1] ss:$0 sm:$0xff]  ;;  %s7096_s12 = sld [smem:[%s8124_s0 + %s6531_s8]]  }
 0xe47   :  { %5575 = vmatprep.subr.mxu0 %v4978_v55  ;;  %s7452_s8 = sld [smem:[%s8124_s0 + %s6537_s3]]  }
 0xe48   :  { %5576 = vmatpush3.msra.mxu0 %v4978_v55 }
 0xe49   :  { %5577 = vmatprep.subr.mxu0 %v4977_v56 }
 0xe4a   :  { %5578 = vmatpush3.msra.mxu0 %v4977_v56 }
 0xe4b   :  { %5579 = vmatprep.subr.mxu0 %v4976_v57 }
 0xe4c   :  { %5580 = vmatpush3.msra.mxu0 %v4976_v57 }
 0xe4d   :  { %5581 = vmatprep.subr.mxu0 %v4975_v58 }
 0xe4e   :  { %5582 = vmatpush3.msra.mxu0 %v4975_v58 }
 0xe4f   :  { %5583 = vmatprep.subr.mxu0 %v4974_v59 }
 0xe50   :  { %5584 = vmatpush3.msra.mxu0 %v4974_v59  ;;  %v4987_v59 = vld [vmem:[%s6739_s20 + $0x1] ss:$0 sm:$0xff]  ;;  %s7101_s20 = sld [smem:[%s8124_s0 + %s6532_s6]]  }
 0xe51   :  { %5585 = vmatprep.subr.mxu0 %v4973_v60  ;;  %s7474_s6 = sld [smem:[%s8124_s0 + %s6539_s9]]  }
 0xe52   :  { %5586 = vmatpush3.msra.mxu0 %v4973_v60 }
 0xe53   :  { %5587 = vmatprep.subr.mxu0 %v4972_v61 }
 0xe54   :  { %5588 = vmatpush3.msra.mxu0 %v4972_v61 }
 0xf05   :  { %v5561_v22 = vpop.f32.mrf.mxu0 }
 0xf06   :  { %v1645_v23 = vadd.f32 %v5561_v22, %v4957_v20 }
 0xf07   :  { %v1639_v24 = vpop.f32.mrf.mxu0 }
 0xf08   :  { %v1640_v25 = vadd.f32 %v4957_v20, %v1639_v24  ;;  %v1649_v26 = vadd.f32 %v1645_v23, %v6745_v4 }
 0xf0a   :  { %v1657_v27 = vsel %vm153_vm0, %v1649_v26, 0.0  ;;  %v1648_v28 = vadd.f32 %v1640_v25, %v6743_v3 }
 0xf0b   :  { %1658 = vadd.xlane.f32.xlu1 %v1657_v27  ;;  %v4981_v27 = vld [vmem:[%s6718_s7 + $0x1] ss:$0 sm:$0xff]  ;;  %s4891_s7 = sld [smem:[%s8124_s0 + %s6530_s2]]  }
 0xf0c   :  { %v1654_v29 = vsel %vm153_vm0, %v1648_v28, 0.0 }
 0xf0d   :  { %1655 = vadd.xlane.f32.xlu0 %v1654_v29 }
 0xf94   :  { %v1659_v30 = vpop.xlane.xlu1 %1658 }
 0xf95   :  { %v1661_v31 = vmul.f32 0.03125, %v1659_v30 }
 0xf96   :  { %v1656_v32 = vpop.xlane.xlu0 %1655 }
 0xf97   :  { %v1660_v33 = vmul.f32 0.03125, %v1656_v32  ;;  %v1663_v34 = vsub.f32 %v1649_v26, %v1661_v31 }
 0xf99   :  { %v1662_v35 = vsub.f32 %v1648_v28, %v1660_v33  ;;  %v1665_v37 = vmul.f32 %v1663_v34, %v1663_v34 }
 0xf9b   :  { %v1664_v36 = vmul.f32 %v1662_v35, %v1662_v35  ;;  %v1669_v3 = vsel %vm153_vm0, %v1665_v37, 0.0 }
 0xf9d   :  { %v1666_v4 = vsel %vm153_vm0, %v1664_v36, 0.0 }
 0xf9e   :  { %1667 = vadd.xlane.f32.xlu0 %v1666_v4 }
 0xfa2   :  { %1670 = vadd.xlane.f32.xlu0 %v1669_v3 }
0x1027   :  { %v1668_v21 = vpop.xlane.xlu0 %1667 }
0x1028   :  { %v1672_v18 = vmul.f32 0.03125, %v1668_v21 }
0x102a   :  { %v1674_v2 = vadd.f32 1e-12, %v1672_v18 }
0x102b   :  { %v1671_v41 = vpop.xlane.xlu0 %1670 }
0x102c   :  { %6328 = vrsqrt.f32 %v1674_v2  ;;  %v1673_v42 = vmul.f32 0.03125, %v1671_v41  ;;  %v1957_v2 = vld [vmem:[%s4884_s26 + $0x18] sm:$0xff]  ;;  %v1956_v41 = vld [vmem:[%s4884_s26 + $0x10] sm:$0xff] }
0x102d   :  { %5592 = vmatprep.subr.mxu1 %v1957_v2 }
0x102e   :  { %v1675_v43 = vadd.f32 1e-12, %v1673_v42  ;;  %v1955_v42 = vld [vmem:[%s4884_s26 + $0x8] sm:$0xff] }
0x1030   :  { %6330 = vrsqrt.f32 %v1675_v43  ;;  %v1954_v43 = vld [vmem:[%s4884_s26] sm:$0xff]  ;;  %s6542_s26 = smov 31  }
0x1031   :  { %s8043_s10 = sld [smem:[%s8124_s0 + %s6542_s26]]  }
0x1039   :  { %v6329_v44 = vpop.eup %6328 }
0x103a   :  { %v1678_v46 = vmul.f32 %v6329_v44, %v1662_v35  ;;  %v6526_v44 = vmov 0.0  }
0x103b   :  { %5617 = vmatprep.subr.mxu0 %v6526_v44 }
0x103c   :  { %v1686_v48 = vmul.f32 %v4962_v45, %v1678_v46  ;;  %v6862_v46 = vld [vmem:[%s4885_s18] sm:$0xff] }
0x103d   :  { %v6331_v49 = vpop.eup %6330 }
0x103e   :  { %v1679_v50 = vmul.f32 %v6331_v49, %v1663_v34  ;;  %v6829_v51 = vadd.f32 %v4963_v47, %v1686_v48 }
0x1040   :  { %v1687_v52 = vmul.f32 %v4962_v45, %v1679_v50  ;;  %5570 = vmatprep.mubr.msk.f32.mxu1 %vm153_vm0, %v6829_v51  ;;  %v6858_v45 = vld [vmem:[%s4885_s18 + $0x8] sm:$0xff]  ;;  %s6543_s18 = smov 29  }
0x1042   :  { %v1695_v53 = vadd.f32 %v4963_v47, %v1687_v52 }
0x1044   :  { %5571 = vmatmul.mubr.msk.f32.vlgmr.msra.gmra.mxu1 %vm153_vm0, %v1695_v53 }
0x1045   :  { %5593 = vmatpush3.msra.mxu1 %v1957_v2 }
0x1046   :  { %5594 = vmatprep.subr.mxu1 %v1956_v41 }
0x1047   :  { %5595 = vmatpush3.msra.mxu1 %v1956_v41 }
0x1048   :  { %5596 = vmatprep.subr.mxu1 %v1955_v42 }
0x1049   :  { %5597 = vmatpush3.msra.mxu1 %v1955_v42 }
0x104a   :  { %5598 = vmatprep.subr.mxu1 %v1954_v43 }
0x104b   :  { %5599 = vmatpush3.msra.mxu1 %v1954_v43 }
0x104c   :  { %5603 = vmatprep.subr.mxu1 %v6526_v44 }
0x1104   :  { %v5572_v63 = vpop.f32.mrf.mxu1 }
0x1105   :  { %v1787_v0 = vadd.f32 %v5572_v63, %v4969_v62  ;;  %v4988_v63 = vld [vmem:[%s4886_s25] ss:$0 sm:$0xff]  ;;  %s4899_s25 = sld [smem:[%s8124_s0 + %s6543_s18]]  }
0x1106   :  { %v1781_v1 = vpop.f32.mrf.mxu1 }
0x1107   :  { %v1791_v6 = vmul.f32 %v1787_v0, %v1787_v0  ;;  %v1782_v7 = vadd.f32 %v4969_v62, %v1781_v1 }
0x1109   :  { %v1793_v8 = vmul.f32 %v1791_v6, %v1787_v0  ;;  %v1790_v9 = vmul.f32 %v1782_v7, %v1782_v7 }
0x110b   :  { %v1795_v10 = vmul.f32 0.044715, %v1793_v8  ;;  %v1792_v11 = vmul.f32 %v1790_v9, %v1782_v7 }
0x110d   :  { %v1797_v12 = vadd.f32 %v1795_v10, %v1787_v0  ;;  %v1794_v13 = vmul.f32 0.044715, %v1792_v11  ;;  %v2048_v11 = vlaneseq }
0x110f   :  { %v1799_v14 = vmul.f32 0.7978846, %v1797_v12  ;;  %v1796_v15 = vadd.f32 %v1794_v13, %v1782_v7  ;;  %v6899_v12 = vshrl.u32 %v2048_v11, 7 }
0x1111   :  { %6332 = vtanh.f32 %v1799_v14  ;;  %v1798_v16 = vmul.f32 0.7978846, %v1796_v15  ;;  %vm2050_vm5 = vcmp.lt.s32.totalorder %v6899_v12, 2 }
0x1113   :  { %6334 = vtanh.f32 %v1798_v16 }
0x111e   :  { %v6333_v17 = vpop.eup %6332 }
0x111f   :  { %v1803_v19 = vadd.f32 1.0, %v6333_v17 }
0x1120   :  { %v6335_v20 = vpop.eup %6334 }
0x1121   :  { %v1802_v22 = vadd.f32 1.0, %v6335_v20  ;;  %v1805_v23 = vmul.f32 0.5, %v1803_v19 }
0x1123   :  { %v1804_v24 = vmul.f32 0.5, %v1802_v22  ;;  %v1807_v26 = vmul.f32 %v1805_v23, %v1787_v0 }
0x1125   :  { %v1806_v25 = vmul.f32 %v1804_v24, %v1782_v7 }
0x1127   :  { %5589 = vmatprep.mubr.msk.f32.mxu0 %vm916_vm2, %v1806_v25 }
0x1128   :  { %5590 = vmatmul.mubr.msk.f32.vlgmr.msra.gmra.mxu0 %vm916_vm2, %v1807_v26 }
0x1129   :  { %5618 = vmatpush3.msra.mxu0 %v6858_v45  ;;  %5621 = vmatprep.mubr.msk.f32.mxu0 %vm6527_vm3, %v6526_v44 }
0x112a   :  { %5619 = vmatprep.subr.mxu0 %v6526_v44 }
0x112b   :  { %5620 = vmatpush3.msra.mxu0 %v6862_v46 }
0x112c   :  { %5631 = vmatprep.subr.mxu0 %v6526_v44 }
0x11e8   :  { %v5591_v28 = vpop.f32.mrf.mxu0 }
0x11e9   :  { %v1903_v29 = vadd.f32 %v5591_v28, %v4981_v27 }
0x11ea   :  { %v1897_v30 = vpop.f32.mrf.mxu0 }
0x11eb   :  { %v1898_v31 = vadd.f32 %v4981_v27, %v1897_v30  ;;  %v1907_v32 = vadd.f32 %v1903_v29, %v1695_v53 }
0x11ed   :  { %v1915_v33 = vsel %vm153_vm0, %v1907_v32, 0.0  ;;  %v1906_v34 = vadd.f32 %v1898_v31, %v6829_v51 }
0x11ee   :  { %1916 = vadd.xlane.f32.xlu0 %v1915_v33 }
0x11ef   :  { %v1912_v35 = vsel %vm153_vm0, %v1906_v34, 0.0 }
0x11f0   :  { %1913 = vadd.xlane.f32.xlu1 %v1912_v35 }
0x1277   :  { %v1917_v36 = vpop.xlane.xlu0 %1916 }
0x1278   :  { %v1919_v4 = vmul.f32 0.03125, %v1917_v36 }
0x1279   :  { %v1914_v37 = vpop.xlane.xlu1 %1913 }
0x127a   :  { %v1921_v3 = vsub.f32 %v1907_v32, %v1919_v4  ;;  %v1918_v38 = vmul.f32 0.03125, %v1914_v37 }
0x127c   :  { %v1920_v39 = vsub.f32 %v1906_v34, %v1918_v38  ;;  %v1923_v40 = vmul.f32 %v1921_v3, %v1921_v3 }
0x127e   :  { %v1927_v5 = vsel %vm153_vm0, %v1923_v40, 0.0  ;;  %v1922_v21 = vmul.f32 %v1920_v39, %v1920_v39 }
0x127f   :  { %1928 = vadd.xlane.f32.xlu0 %v1927_v5 }
0x1280   :  { %v1924_v18 = vsel %vm153_vm0, %v1922_v21, 0.0 }
0x1281   :  { %1925 = vadd.xlane.f32.xlu1 %v1924_v18 }
0x1308   :  { %v1929_v47 = vpop.xlane.xlu0 %1928 }
0x1309   :  { %v1931_v48 = vmul.f32 0.03125, %v1929_v47 }
0x130a   :  { %v1926_v49 = vpop.xlane.xlu1 %1925 }
0x130b   :  { %v1933_v50 = vadd.f32 1e-12, %v1931_v48  ;;  %v1930_v51 = vmul.f32 0.03125, %v1926_v49 }
0x130d   :  { %6336 = vrsqrt.f32 %v1933_v50  ;;  %v1932_v52 = vadd.f32 1e-12, %v1930_v51 }
0x130f   :  { %6338 = vrsqrt.f32 %v1932_v52 }
0x131a   :  { %v6337_v53 = vpop.eup %6336 }
0x131b   :  { %v1937_v55 = vmul.f32 %v6337_v53, %v1921_v3 }
0x131c   :  { %v6339_v56 = vpop.eup %6338 }
0x131d   :  { %v1936_v57 = vmul.f32 %v6339_v56, %v1920_v39  ;;  %v1945_v58 = vmul.f32 %v4986_v54, %v1937_v55 }
0x131f   :  { %v1944_v60 = vmul.f32 %v4986_v54, %v1936_v57  ;;  %v1953_v62 = vadd.f32 %v4987_v59, %v1945_v58 }
0x1321   :  { %v1952_v61 = vadd.f32 %v4987_v59, %v1944_v60 }
0x1323   :  { %5600 = vmatprep.mubr.msk.f32.mxu1 %vm153_vm0, %v1952_v61 }
0x1324   :  { %5601 = vmatmul.mubr.msk.f32.vlgmr.msra.gmra.mxu1 %vm153_vm0, %v1953_v62 }
0x1325   :  { %5604 = vmatpush3.msra.mxu1 %v6858_v45  ;;  %5607 = vmatprep.mubr.msk.f32.mxu1 %vm6527_vm3, %v6526_v44 }
0x1326   :  { %5605 = vmatprep.subr.mxu1 %v6526_v44 }
0x1327   :  { %5606 = vmatpush3.msra.mxu1 %v6862_v46 }
0x1328   :  { %5608 = vmatmul.mubr.f32.vlgmr.msra.gmra.mxu1 %v6526_v44  ;;  %5610 = vmatprep.subr.mxu1 %v6526_v44 }
0x1329   :  { %5611 = vmatpush3.msra.mxu1 %v6858_v45  ;;  %5614 = vmatprep.mubr.msk.f32.mxu1 %vm6527_vm3, %v6526_v44 }
0x132a   :  { %5612 = vmatprep.subr.mxu1 %v6526_v44 }
0x132b   :  { %5613 = vmatpush3.msra.mxu1 %v6862_v46 }
0x132c   :  { %5624 = vmatprep.subr.mxu1 %v6526_v44 }
0x13e4   :  { %v5602_v0 = vpop.f32.mrf.mxu1 }
0x13e5   :  { %v6890_v1 = vadd.f32 %v5602_v0, %v4988_v63 }
0x13e6   :  { %v2037_v6 = vpop.f32.mrf.mxu1 }
0x13e7   :  { %v6892_v7 = vadd.f32 %v4988_v63, %v2037_v6  ;;  %v2052_v8 = vrot.slane %v6890_v1, 4  ;;  %v2061_v31 = vrot.slane %v6890_v1, 2 }
0x13e8   :  { %v2167_v9 = vpop.f32.mrf.mxu1 }
0x13e9   :  { %2053 = vrot.lane.b32.xlu1 %v2052_v8, %s6511_s21  ;;  %2172 = vrot.lane.b32.xlu0 %v2167_v9, %s6511_s21  ;;  %v2059_v37 = vrot.slane %v6892_v7, 2  ;;  %v2066_v57 = vrot.slane %v6892_v7, 4 }
0x13ea   :  { %v5609_v10 = vpop.f32.mrf.mxu1 }
0x145b   :  { %v2054_v13 = vpop.permute.xlu1 %2053  ;;  %v2173_v14 = vpop.permute.xlu0 %2172 }
0x145c   :  { %v2057_v15 = vsel %vm2056_vm4, %v6892_v7, %v2054_v13  ;;  %v2175_v16 = vsel %vm2050_vm5, %v2167_v9, %v2173_v14 }
0x145d   :  { %v2176_v17 = vadd.f32 %v2175_v16, %v2057_v15 }
0x145f   :  { %6340 = vtanh.f32 %v2176_v17  ;;  %v4991_v20 = vmul.f32 -1.442695, %v2176_v17  ;;  %v2074_v17 = vrot.slane %v6890_v1, 6 }
0x1461   :  { %6342 = vpow2.f32 %v4991_v20 }
0x146c   :  { %v6341_v19 = vpop.eup %6340 }
0x146d   :  { %2186 = vrot.lane.b32.xlu1 %v6341_v19, %s6508_s15 }
0x146e   :  { %v6343_v22 = vpop.eup %6342 }
0x146f   :  { %v2180_v23 = vadd.f32 1.0, %v6343_v22 }
0x1471   :  { %6344 = vrcp.f32 %v2180_v23 }
0x147e   :  { %v6345_v24 = vpop.eup %6344 }
0x147f   :  { %v2184_v27 = vmul.f32 0.0, %v6345_v24 }
0x14df   :  { %v2187_v25 = vpop.permute.xlu1 %2186 }
0x14e0   :  { %v2189_v26 = vmul.f32 %v6345_v24, %v2187_v25 }
0x14e2   :  { %2191 = vrot.lane.b32.xlu1 %v2189_v26, %s6514_s27  ;;  %v2072_v26 = vrot.slane %v6892_v7, 6 }
0x1554   :  { %v2192_v28 = vpop.permute.xlu1 %2191 }
0x1555   :  { %v2194_v29 = vadd.f32 %v2192_v28, %v2184_v27 }
0x1557   :  { %6346 = vtanh.f32 %v2194_v29 }
0x1564   :  { %v6347_v30 = vpop.eup %6346 }
0x1565   :  { %2197 = vrot.lane.b32.xlu0 %v6347_v30, %s6528_s28 }
0x1569   :  { %2062 = vrot.lane.b32.xlu0 %v2061_v31, %s6511_s21 }
0x15d7   :  { %v2198_v32 = vpop.permute.xlu0 %2197 }
0x15d8   :  { %v6913_v33 = vmul.f32 %v6345_v24, %v2198_v32 }
0x15da   :  { %2202 = vrot.lane.b32.xlu1 %v6913_v33, %s6507_s14 }
0x15db   :  { %v2063_v4 = vpop.permute.xlu0 %2062 }
0x15dc   :  { %v2065_v38 = vsel %vm2056_vm4, %v2059_v37, %v2063_v4 }
0x164c   :  { %v6917_v34 = vpop.permute.xlu1 %2202 }
0x164d   :  { %5615 = vmatmul.mubr.msk.f32.vlgmr.msra.gmra.mxu1 %vm241_vm1, %v6917_v34 }
0x164e   :  { %5625 = vmatpush3.msra.mxu1 %v6858_v45  ;;  %5628 = vmatprep.mubr.msk.f32.mxu1 %vm6527_vm3, %v6526_v44 }
0x164f   :  { %5626 = vmatprep.subr.mxu1 %v6526_v44 }
0x1650   :  { %5627 = vmatpush3.msra.mxu1 %v6862_v46 }
0x1651   :  { %5638 = vmatprep.subr.mxu1 %v6526_v44 }
0x170d   :  { %v2272_v35 = vpop.f32.mrf.mxu1 }
0x170e   :  { %2277 = vrot.lane.b32.xlu1 %v2272_v35, %s6511_s21 }
0x170f   :  { %v5616_v36 = vpop.f32.mrf.mxu1 }
0x1780   :  { %v2278_v3 = vpop.permute.xlu1 %2277 }
0x1781   :  { %v2280_v39 = vsel %vm2050_vm5, %v2272_v35, %v2278_v3 }
0x1782   :  { %v2281_v40 = vadd.f32 %v2280_v39, %v2065_v38 }
0x1784   :  { %6348 = vtanh.f32 %v2281_v40  ;;  %v4993_v21 = vmul.f32 -1.442695, %v2281_v40 }
0x1786   :  { %6350 = vpow2.f32 %v4993_v21 }
0x1791   :  { %v6349_v5 = vpop.eup %6348 }
0x1792   :  { %2291 = vrot.lane.b32.xlu0 %v6349_v5, %s6508_s15 }
0x1793   :  { %v6351_v18 = vpop.eup %6350 }
0x1794   :  { %v2285_v2 = vadd.f32 1.0, %v6351_v18 }
0x1796   :  { %6352 = vrcp.f32 %v2285_v2 }
0x17a3   :  { %v6353_v41 = vpop.eup %6352 }
0x17a4   :  { %v2289_v47 = vmul.f32 %v6353_v41, %v2194_v29 }
0x1804   :  { %v2292_v42 = vpop.permute.xlu0 %2291 }
0x1805   :  { %v2294_v43 = vmul.f32 %v6353_v41, %v2292_v42 }
0x1807   :  { %2296 = vrot.lane.b32.xlu1 %v2294_v43, %s6514_s27 }
0x1879   :  { %v2297_v48 = vpop.permute.xlu1 %2296 }
0x187a   :  { %v2299_v49 = vadd.f32 %v2297_v48, %v2289_v47 }
0x187c   :  { %6354 = vtanh.f32 %v2299_v49 }
0x1889   :  { %v6355_v50 = vpop.eup %6354 }
0x188a   :  { %2302 = vrot.lane.b32.xlu0 %v6355_v50, %s6528_s28 }
0x188e   :  { %2068 = vrot.lane.b32.xlu0 %v6890_v1, %s6511_s21 }
0x18fc   :  { %v2303_v51 = vpop.permute.xlu0 %2302 }
0x18fd   :  { %v6939_v52 = vmul.f32 %v6353_v41, %v2303_v51 }
0x18ff   :  { %2307 = vrot.lane.b32.xlu1 %v6939_v52, %s6507_s14 }
0x1900   :  { %v2069_v56 = vpop.permute.xlu0 %2068 }
0x1901   :  { %v2071_v59 = vsel %vm2056_vm4, %v2066_v57, %v2069_v56 }
0x1971   :  { %v6943_v53 = vpop.permute.xlu1 %2307 }
0x1972   :  { %5622 = vmatmul.mubr.msk.f32.vlgmr.msra.gmra.mxu0 %vm241_vm1, %v6943_v53 }
0x1973   :  { %5632 = vmatpush3.msra.mxu0 %v6858_v45  ;;  %5635 = vmatprep.mubr.msk.f32.mxu0 %vm6527_vm3, %v6526_v44 }
0x1974   :  { %5633 = vmatprep.subr.mxu0 %v6526_v44 }
0x1975   :  { %5634 = vmatpush3.msra.mxu0 %v6862_v46 }
0x1976   :  { %5645 = vmatprep.subr.mxu0 %v6526_v44 }
0x1a32   :  { %v2377_v54 = vpop.f32.mrf.mxu0 }
0x1a33   :  { %2382 = vrot.lane.b32.xlu1 %v2377_v54, %s6511_s21 }
0x1a34   :  { %v5623_v55 = vpop.f32.mrf.mxu0 }
0x1aa5   :  { %v2383_v58 = vpop.permute.xlu1 %2382 }
0x1aa6   :  { %v2385_v60 = vsel %vm2050_vm5, %v2377_v54, %v2383_v58 }
0x1aa7   :  { %v2386_v61 = vadd.f32 %v2385_v60, %v2071_v59 }
0x1aa9   :  { %6356 = vtanh.f32 %v2386_v61  ;;  %v4995_v63 = vmul.f32 -1.442695, %v2386_v61 }
0x1aab   :  { %6358 = vpow2.f32 %v4995_v63 }
0x1ab6   :  { %v6357_v62 = vpop.eup %6356 }
0x1ab7   :  { %2396 = vrot.lane.b32.xlu0 %v6357_v62, %s6508_s15 }
0x1ab8   :  { %v6359_v0 = vpop.eup %6358 }
0x1ab9   :  { %v2390_v6 = vadd.f32 1.0, %v6359_v0 }
0x1abb   :  { %6360 = vrcp.f32 %v2390_v6 }
0x1ac8   :  { %v6361_v9 = vpop.eup %6360 }
0x1ac9   :  { %v2394_v13 = vmul.f32 %v6361_v9, %v2299_v49 }
0x1b29   :  { %v2397_v10 = vpop.permute.xlu0 %2396 }
0x1b2a   :  { %v2399_v11 = vmul.f32 %v6361_v9, %v2397_v10 }
0x1b2c   :  { %2401 = vrot.lane.b32.xlu1 %v2399_v11, %s6514_s27 }
0x1b9e   :  { %v2402_v14 = vpop.permute.xlu1 %2401 }
0x1b9f   :  { %v2404_v15 = vadd.f32 %v2402_v14, %v2394_v13 }
0x1ba1   :  { %6362 = vtanh.f32 %v2404_v15 }
0x1bae   :  { %v6363_v16 = vpop.eup %6362 }
0x1baf   :  { %2407 = vrot.lane.b32.xlu0 %v6363_v16, %s6528_s28 }
0x1bb3   :  { %2075 = vrot.lane.b32.xlu0 %v2074_v17, %s6511_s21 }
0x1c21   :  { %v2408_v19 = vpop.permute.xlu0 %2407 }
0x1c22   :  { %v6965_v20 = vmul.f32 %v6361_v9, %v2408_v19 }
0x1c24   :  { %2412 = vrot.lane.b32.xlu1 %v6965_v20, %s6507_s14 }
0x1c25   :  { %v2076_v25 = vpop.permute.xlu0 %2075 }
0x1c26   :  { %v2078_v28 = vsel %vm2056_vm4, %v2072_v26, %v2076_v25 }
0x1c96   :  { %v6969_v22 = vpop.permute.xlu1 %2412 }
0x1c97   :  { %5629 = vmatmul.mubr.msk.f32.vlgmr.msra.gmra.mxu1 %vm241_vm1, %v6969_v22 }
0x1c98   :  { %5639 = vmatpush3.msra.mxu1 %v6858_v45  ;;  %5642 = vmatprep.mubr.msk.f32.mxu1 %vm6527_vm3, %v6526_v44 }
0x1c99   :  { %5640 = vmatprep.subr.mxu1 %v6526_v44 }
0x1c9a   :  { %5641 = vmatpush3.msra.mxu1 %v6862_v46 }
0x1c9b   :  { %5652 = vmatprep.subr.mxu1 %v6526_v44 }
0x1d57   :  { %v2482_v23 = vpop.f32.mrf.mxu1 }
0x1d58   :  { %2487 = vrot.lane.b32.xlu1 %v2482_v23, %s6511_s21 }
0x1d59   :  { %v5630_v24 = vpop.f32.mrf.mxu1 }
0x1dca   :  { %v2488_v27 = vpop.permute.xlu1 %2487 }
0x1dcb   :  { %v2490_v29 = vsel %vm2050_vm5, %v2482_v23, %v2488_v27 }
0x1dcc   :  { %v2491_v30 = vadd.f32 %v2490_v29, %v2078_v28 }
0x1dce   :  { %6364 = vtanh.f32 %v2491_v30  ;;  %v4997_v35 = vmul.f32 -1.442695, %v2491_v30 }
0x1dd0   :  { %6366 = vpow2.f32 %v4997_v35 }
0x1ddb   :  { %v6365_v32 = vpop.eup %6364 }
0x1ddc   :  { %2501 = vrot.lane.b32.xlu0 %v6365_v32, %s6508_s15 }
0x1ddd   :  { %v6367_v36 = vpop.eup %6366 }
0x1dde   :  { %v2495_v4 = vadd.f32 1.0, %v6367_v36 }
0x1de0   :  { %6368 = vrcp.f32 %v2495_v4 }
0x1ded   :  { %v6369_v3 = vpop.eup %6368 }
0x1dee   :  { %v2499_v40 = vmul.f32 %v6369_v3, %v2404_v15 }
0x1e4e   :  { %v2502_v38 = vpop.permute.xlu0 %2501 }
0x1e4f   :  { %v2504_v39 = vmul.f32 %v6369_v3, %v2502_v38 }
0x1e51   :  { %2506 = vrot.lane.b32.xlu1 %v2504_v39, %s6514_s27 }
0x1ec3   :  { %v2507_v5 = vpop.permute.xlu1 %2506 }
0x1ec4   :  { %v2509_v21 = vadd.f32 %v2507_v5, %v2499_v40 }
0x1ec6   :  { %6370 = vtanh.f32 %v2509_v21 }
0x1ed3   :  { %v6371_v18 = vpop.eup %6370 }
0x1ed4   :  { %2512 = vrot.lane.b32.xlu0 %v6371_v18, %s6528_s28 }
0x1ed8   :  { %2079 = vrot.lane.b32.xlu0 %v2066_v57, %s6511_s21 }
0x1f46   :  { %v2513_v2 = vpop.permute.xlu0 %2512 }
0x1f47   :  { %v6990_v41 = vmul.f32 %v6369_v3, %v2513_v2 }
0x1f49   :  { %2517 = vrot.lane.b32.xlu1 %v6990_v41, %s6507_s14 }
0x1f4a   :  { %v2080_v48 = vpop.permute.xlu0 %2079 }
0x1f4b   :  { %v2082_v50 = vsel %vm2056_vm4, %v6890_v1, %v2080_v48 }
0x1fbb   :  { %v6994_v42 = vpop.permute.xlu1 %2517 }
0x1fbc   :  { %5636 = vmatmul.mubr.msk.f32.vlgmr.msra.gmra.mxu0 %vm241_vm1, %v6994_v42 }
0x1fbd   :  { %5646 = vmatpush3.msra.mxu0 %v6858_v45  ;;  %5649 = vmatprep.mubr.msk.f32.mxu0 %vm6527_vm3, %v6526_v44 }
0x1fbe   :  { %5647 = vmatprep.subr.mxu0 %v6526_v44 }
0x1fbf   :  { %5648 = vmatpush3.msra.mxu0 %v6862_v46 }
0x207c   :  { %v2587_v43 = vpop.f32.mrf.mxu0 }
0x207d   :  { %2592 = vrot.lane.b32.xlu1 %v2587_v43, %s6511_s21 }
0x207e   :  { %v5637_v47 = vpop.f32.mrf.mxu0 }
0x20ef   :  { %v2593_v49 = vpop.permute.xlu1 %2592 }
0x20f0   :  { %v2595_v51 = vsel %vm2050_vm5, %v2587_v43, %v2593_v49 }
0x20f1   :  { %v2596_v54 = vadd.f32 %v2595_v51, %v2082_v50 }
0x20f3   :  { %6372 = vtanh.f32 %v2596_v54  ;;  %v4999_v56 = vmul.f32 -1.442695, %v2596_v54 }
0x20f5   :  { %6374 = vpow2.f32 %v4999_v56 }
0x2100   :  { %v6373_v55 = vpop.eup %6372 }
0x2101   :  { %2606 = vrot.lane.b32.xlu0 %v6373_v55, %s6508_s15 }
0x2102   :  { %v6375_v57 = vpop.eup %6374 }
0x2103   :  { %v2600_v58 = vadd.f32 1.0, %v6375_v57 }
0x2105   :  { %6376 = vrcp.f32 %v2600_v58 }
0x2112   :  { %v6377_v59 = vpop.eup %6376 }
0x2113   :  { %v2604_v62 = vmul.f32 %v6377_v59, %v2509_v21 }
0x2173   :  { %v2607_v60 = vpop.permute.xlu0 %2606 }
0x2174   :  { %v2609_v61 = vmul.f32 %v6377_v59, %v2607_v60 }
0x2176   :  { %2611 = vrot.lane.b32.xlu1 %v2609_v61, %s6514_s27 }
0x21e8   :  { %v2612_v63 = vpop.permute.xlu1 %2611 }
0x21e9   :  { %v2614_v0 = vadd.f32 %v2612_v63, %v2604_v62 }
0x21eb   :  { %6378 = vtanh.f32 %v2614_v0 }
0x21f8   :  { %v6379_v6 = vpop.eup %6378 }
0x21f9   :  { %2617 = vrot.lane.b32.xlu0 %v6379_v6, %s6528_s28 }
0x21fd   :  { %2084 = vrot.lane.b32.xlu0 %v2059_v37, %s6511_s21 }
0x226b   :  { %v2618_v9 = vpop.permute.xlu0 %2617 }
0x226c   :  { %v7014_v10 = vmul.f32 %v6377_v59, %v2618_v9 }
0x226e   :  { %2622 = vrot.lane.b32.xlu1 %v7014_v10, %s6507_s14 }
0x226f   :  { %v2085_v14 = vpop.permute.xlu0 %2084 }
0x2270   :  { %v2087_v16 = vsel %vm2056_vm4, %v2061_v31, %v2085_v14 }
0x22e0   :  { %v7018_v11 = vpop.permute.xlu1 %2622 }
0x22e1   :  { %5643 = vmatmul.mubr.msk.f32.vlgmr.msra.gmra.mxu1 %vm241_vm1, %v7018_v11 }
0x22e2   :  { %5653 = vmatpush3.msra.mxu1 %v6858_v45  ;;  %5656 = vmatprep.mubr.msk.f32.mxu1 %vm6527_vm3, %v6526_v44 }
0x22e3   :  { %5654 = vmatprep.subr.mxu1 %v6526_v44 }
0x22e4   :  { %5655 = vmatpush3.msra.mxu1 %v6862_v46 }
0x23a1   :  { %v2692_v37 = vpop.f32.mrf.mxu1 }
0x23a2   :  { %2697 = vrot.lane.b32.xlu1 %v2692_v37, %s6511_s21 }
0x23a3   :  { %v5644_v13 = vpop.f32.mrf.mxu1 }
0x2414   :  { %v2698_v15 = vpop.permute.xlu1 %2697 }
0x2415   :  { %v2700_v45 = vsel %vm2050_vm5, %v2692_v37, %v2698_v15 }
0x2416   :  { %v2701_v19 = vadd.f32 %v2700_v45, %v2087_v16 }
0x2418   :  { %6380 = vtanh.f32 %v2701_v19  ;;  %v5001_v24 = vmul.f32 -1.442695, %v2701_v19  ;;  %v2956_v19 = vrot.slane %v7014_v10, 2  ;;  %v2974_v10 = vrot.slane %v6939_v52, 2 }
0x241a   :  { %6382 = vpow2.f32 %v5001_v24  ;;  %v2982_v24 = vrot.slane %v6913_v33, 2 }
0x2425   :  { %v6381_v23 = vpop.eup %6380 }
0x2426   :  { %2711 = vrot.lane.b32.xlu0 %v6381_v23, %s6508_s15  ;;  %v2962_v23 = vrot.slane %v6990_v41, 2  ;;  %v3116_v41 = vld [vmem:[%s4891_s7 + $0x18] sm:$0xff] }
0x2427   :  { %v6383_v46 = vpop.eup %6382  ;;  %5670 = vmatprep.subr.mxu1 %v3116_v41 }
0x2428   :  { %v2705_v25 = vadd.f32 1.0, %v6383_v46 }
0x242a   :  { %6384 = vrcp.f32 %v2705_v25 }
0x2437   :  { %v6385_v27 = vpop.eup %6384 }
0x2438   :  { %v2709_v30 = vmul.f32 %v6385_v27, %v2614_v0 }
0x2498   :  { %v2712_v28 = vpop.permute.xlu0 %2711 }
0x2499   :  { %v2714_v29 = vmul.f32 %v6385_v27, %v2712_v28 }
0x249b   :  { %2716 = vrot.lane.b32.xlu1 %v2714_v29, %s6514_s27 }
0x250d   :  { %v2717_v31 = vpop.permute.xlu1 %2716 }
0x250e   :  { %v2719_v32 = vadd.f32 %v2717_v31, %v2709_v30  ;;  %v3115_v30 = vld [vmem:[%s4891_s7 + $0x10] sm:$0xff]  ;;  %v3114_v31 = vld [vmem:[%s4891_s7 + $0x8] sm:$0xff] }
0x2510   :  { %6386 = vtanh.f32 %v2719_v32 }
0x251d   :  { %v6387_v35 = vpop.eup %6386 }
0x251e   :  { %2722 = vrot.lane.b32.xlu0 %v6387_v35, %s6528_s28  ;;  %v3113_v35 = vld [vmem:[%s4891_s7] sm:$0xff] }
0x2522   :  { %2089 = vrot.lane.b32.xlu0 %v6892_v7, %s6511_s21 }
0x2590   :  { %v2723_v36 = vpop.permute.xlu0 %2722 }
0x2591   :  { %v7038_v4 = vmul.f32 %v6385_v27, %v2723_v36 }
0x2593   :  { %2727 = vrot.lane.b32.xlu1 %v7038_v4, %s6507_s14 }
0x2594   :  { %v2090_v40 = vpop.permute.xlu0 %2089 }
0x2595   :  { %v2092_v21 = vsel %vm2056_vm4, %v2052_v8, %v2090_v40 }
0x2605   :  { %v7042_v3 = vpop.permute.xlu1 %2727 }
0x2606   :  { %5650 = vmatmul.mubr.msk.f32.vlgmr.msra.gmra.mxu0 %vm241_vm1, %v7042_v3 }
0x26c6   :  { %v2797_v38 = vpop.f32.mrf.mxu0 }
0x26c7   :  { %2802 = vrot.lane.b32.xlu1 %v2797_v38, %s6511_s21 }
0x26c8   :  { %v5651_v39 = vpop.f32.mrf.mxu0 }
0x2739   :  { %v2803_v5 = vpop.permute.xlu1 %2802 }
0x273a   :  { %v2805_v18 = vsel %vm2050_vm5, %v2797_v38, %v2803_v5 }
0x273b   :  { %v2806_v2 = vadd.f32 %v2805_v18, %v2092_v21 }
0x273d   :  { %6388 = vtanh.f32 %v2806_v2  ;;  %v5003_v47 = vmul.f32 -1.442695, %v2806_v2 }
0x273f   :  { %6390 = vpow2.f32 %v5003_v47 }
0x274a   :  { %v6389_v43 = vpop.eup %6388 }
0x274b   :  { %2816 = vrot.lane.b32.xlu0 %v6389_v43, %s6508_s15 }
0x274c   :  { %v6391_v48 = vpop.eup %6390 }
0x274d   :  { %v2810_v49 = vadd.f32 1.0, %v6391_v48 }
0x274f   :  { %6392 = vrcp.f32 %v2810_v49 }
0x275c   :  { %v6393_v50 = vpop.eup %6392 }
0x275d   :  { %v2814_v55 = vmul.f32 %v6393_v50, %v2719_v32 }
0x27bd   :  { %v2817_v51 = vpop.permute.xlu0 %2816 }
0x27be   :  { %v2819_v54 = vmul.f32 %v6393_v50, %v2817_v51 }
0x27c0   :  { %2821 = vrot.lane.b32.xlu1 %v2819_v54, %s6514_s27 }
0x2832   :  { %v2822_v8 = vpop.permute.xlu1 %2821 }
0x2833   :  { %v2824_v56 = vadd.f32 %v2822_v8, %v2814_v55 }
0x2835   :  { %6394 = vtanh.f32 %v2824_v56 }
0x2842   :  { %v6395_v57 = vpop.eup %6394 }
0x2843   :  { %2827 = vrot.lane.b32.xlu0 %v6395_v57, %s6528_s28 }
0x2847   :  { %2094 = vrot.lane.b32.xlu0 %v2072_v26, %s6511_s21 }
0x28b5   :  { %v2828_v58 = vpop.permute.xlu0 %2827 }
0x28b6   :  { %v2830_v59 = vmul.f32 %v6393_v50, %v2828_v58 }
0x28b8   :  { %2832 = vrot.lane.b32.xlu1 %v2830_v59, %s6507_s14  ;;  %v2944_v1 = vrot.slane %v2830_v59, 2 }
0x28b9   :  { %v2095_v63 = vpop.permute.xlu0 %2094 }
0x28ba   :  { %v2097_v7 = vsel %vm2056_vm4, %v2074_v17, %v2095_v63  ;;  %v2968_v17 = vrot.slane %v6965_v20, 2  ;;  %v2950_v20 = vrot.slane %v7038_v4, 2 }
0x292a   :  { %v7059_v60 = vpop.permute.xlu1 %2832 }
0x292b   :  { %5657 = vmatmul.mubr.msk.f32.vlgmr.msra.gmra.mxu1 %vm241_vm1, %v7059_v60 }
0x292c   :  { %5671 = vmatpush3.msra.mxu1 %v3116_v41 }
0x292d   :  { %5672 = vmatprep.subr.mxu1 %v3115_v30 }
0x292e   :  { %5673 = vmatpush3.msra.mxu1 %v3115_v30 }
0x292f   :  { %5674 = vmatprep.subr.mxu1 %v3114_v31 }
0x2930   :  { %5675 = vmatpush3.msra.mxu1 %v3114_v31 }
0x2931   :  { %5676 = vmatprep.subr.mxu1 %v3113_v35 }
0x2932   :  { %5677 = vmatpush3.msra.mxu1 %v3113_v35 }
0x29eb   :  { %v2902_v61 = vpop.f32.mrf.mxu1 }
0x29ec   :  { %2907 = vrot.lane.b32.xlu1 %v2902_v61, %s6511_s21  ;;  %s6529_s21 = smov 19  }
0x29ed   :  { %v5658_v62 = vpop.f32.mrf.mxu1  ;;  %s4889_s30 = sld [smem:[%s8124_s0 + %s6529_s21]]  }
0x29ee   :  { %s4890_s21 = sld [smem:[%s8124_s0 + %s6535_s24]]  }
0x29f3   :  { %v3024_v33 = vld [vmem:[%s4889_s30 + $0x18] sm:$0xff]  ;;  %v3023_v29 = vld [vmem:[%s4889_s30 + $0x10] sm:$0xff]  ;;  %v3022_v52 = vld [vmem:[%s4889_s30 + $0x8] sm:$0xff] }
0x29f4   :  { %5659 = vmatprep.subr.mxu0 %v3024_v33  ;;  %v3021_v32 = vld [vmem:[%s4889_s30] sm:$0xff]  ;;  %s6545_s30 = smov 33  }
0x29f5   :  { %5660 = vmatpush3.msra.mxu0 %v3024_v33  ;;  %s4903_s4 = sld [smem:[%s8124_s0 + %s6545_s30]]  }
0x29f6   :  { %5661 = vmatprep.subr.mxu0 %v3023_v29 }
0x29f7   :  { %5662 = vmatpush3.msra.mxu0 %v3023_v29 }
0x29f8   :  { %5663 = vmatprep.subr.mxu0 %v3022_v52 }
0x29f9   :  { %5664 = vmatpush3.msra.mxu0 %v3022_v52 }
0x29fa   :  { %5665 = vmatprep.subr.mxu0 %v3021_v32 }
0x29fb   :  { %5666 = vmatpush3.msra.mxu0 %v3021_v32 }
0x2a5e   :  { %v2908_v0 = vpop.permute.xlu1 %2907 }
0x2a5f   :  { %v2910_v26 = vsel %vm2050_vm5, %v2902_v61, %v2908_v0 }
0x2a60   :  { %v2911_v6 = vadd.f32 %v2910_v26, %v2097_v7  ;;  %v3014_v26 = vld [vmem:[%s7096_s12 + $0x8] sm:$0xff] }
0x2a62   :  { %6396 = vtanh.f32 %v2911_v6  ;;  %v5005_v37 = vmul.f32 -1.442695, %v2911_v6  ;;  %v3018_v6 = vld [vmem:[%s7101_s20 + $0x8] sm:$0xff] }
0x2a64   :  { %6398 = vpow2.f32 %v5005_v37 }
0x2a6f   :  { %v6397_v9 = vpop.eup %6396 }
0x2a70   :  { %2921 = vrot.lane.b32.xlu0 %v6397_v9, %s6508_s15 }
0x2a71   :  { %v6399_v13 = vpop.eup %6398 }
0x2a72   :  { %v2915_v14 = vadd.f32 1.0, %v6399_v13 }
0x2a74   :  { %6400 = vrcp.f32 %v2915_v14 }
0x2a81   :  { %v6401_v15 = vpop.eup %6400 }
0x2a82   :  { %v2919_v46 = vmul.f32 %v6401_v15, %v2824_v56  ;;  %v3017_v56 = vld [vmem:[%s7101_s20] sm:$0xff] }
0x2ae2   :  { %v2922_v16 = vpop.permute.xlu0 %2921 }
0x2ae3   :  { %v2924_v45 = vmul.f32 %v6401_v15, %v2922_v16 }
0x2ae5   :  { %2926 = vrot.lane.b32.xlu1 %v2924_v45, %s6514_s27  ;;  %s6536_s27 = smov 22  }
0x2ae6   :  { %s4892_s2 = sld [smem:[%s8124_s0 + %s6536_s27]]  }
0x2ae9   :  { %2945 = vrot.lane.b32.xlu1 %v2944_v1, %s6508_s15 }
0x2aed   :  { %2969 = vrot.lane.b32.xlu1 %v2968_v17, %s6508_s15 }
0x2af1   :  { %2957 = vrot.lane.b32.xlu1 %v2956_v19, %s6508_s15 }
0x2af5   :  { %2963 = vrot.lane.b32.xlu1 %v2962_v23, %s6508_s15 }
0x2af9   :  { %2983 = vrot.lane.b32.xlu1 %v2982_v24, %s6508_s15 }
0x2b57   :  { %v2927_v25 = vpop.permute.xlu1 %2926 }
0x2b58   :  { %v2929_v27 = vadd.f32 %v2927_v25, %v2919_v46 }
0x2b5a   :  { %6402 = vtanh.f32 %v2929_v27 }
0x2b5b   :  { %v2946_v39 = vpop.permute.xlu1 %2945 }
0x2b5c   :  { %v2948_v2 = vsel %vm241_vm1, %v6943_v53, %v2946_v39 }
0x2b5d   :  { %v2988_v49 = vrot.slane %v2948_v2, 6 }
0x2b5f   :  { %v2970_v40 = vpop.permute.xlu1 %2969 }
0x2b60   :  { %v2972_v54 = vsel %vm241_vm1, %v7042_v3, %v2970_v40 }
0x2b61   :  { %v2997_v3 = vrot.slane %v2972_v54, 6 }
0x2b63   :  { %v2958_v21 = vpop.permute.xlu1 %2957 }
0x2b64   :  { %v2960_v48 = vsel %vm241_vm1, %v6994_v42, %v2958_v21  ;;  %v3013_v42 = vld [vmem:[%s7096_s12] sm:$0xff] }
0x2b65   :  { %v2994_v53 = vrot.slane %v2960_v48, 2 }
0x2b67   :  { %v6403_v28 = vpop.eup %6402  ;;  %v2964_v43 = vpop.permute.xlu1 %2963 }
0x2b68   :  { %2932 = vrot.lane.b32.xlu0 %v6403_v28, %s6528_s28  ;;  %v2966_v57 = vsel %vm241_vm1, %v7018_v11, %v2964_v43  ;;  %s6544_s28 = smov 24  }
0x2b69   :  { %v3010_v7 = vsel %vm2056_vm4, %v2966_v57, %v2997_v3  ;;  %v3215_v3 = vld [vmem:[%s7226_s5] sm:$0xff]  ;;  %s4894_s29 = sld [smem:[%s8124_s0 + %s6544_s28]]  }
0x2b6c   :  { %2951 = vrot.lane.b32.xlu0 %v2950_v20, %s6508_s15 }
0x2b70   :  { %2975 = vrot.lane.b32.xlu0 %v2974_v10, %s6508_s15 }
0x2bda   :  { %v2933_v36 = vpop.permute.xlu0 %2932 }
0x2bdb   :  { %v2935_v4 = vmul.f32 %v6401_v15, %v2933_v36 }
0x2bdd   :  { %v2938_v38 = vrot.slane %v2935_v4, 2 }
0x2bde   :  { %v2952_v5 = vpop.permute.xlu0 %2951 }
0x2bdf   :  { %2939 = vrot.lane.b32.xlu0 %v2938_v38, %s6508_s15  ;;  %v2954_v47 = vsel %vm241_vm1, %v6969_v22, %v2952_v5  ;;  %s6541_s15 = smov 28  }
0x2be0   :  { %v2991_v55 = vrot.slane %v2954_v47, 4  ;;  %s4898_s22 = sld [smem:[%s8124_s0 + %s6541_s15]]  }
0x2be2   :  { %v2976_v18 = vpop.permute.xlu0 %2975 }
0x2be3   :  { %2979 = vrot.lane.b32.xlu0 %v2935_v4, %s6507_s14  ;;  %v2978_v50 = vsel %vm241_vm1, %v7059_v60, %v2976_v18  ;;  %v2984_v60 = vpop.permute.xlu1 %2983  ;;  %s6533_s14 = smov 25  }
0x2be4   :  { %v3000_v58 = vrot.slane %v2978_v50, 4  ;;  %s7135_s16 = sld [smem:[%s8124_s0 + %s6533_s14]]  }
0x2be5   :  { %s8029_s14 = sld [smem:[%s8124_s0 + %s6540_s17]]  }
0x2be6   :  { %v3011_v37 = vsel %vm3006_vm7, %v3010_v7, %v3000_v58 }
0x2bea   :  { %v3232_v15 = vld [vmem:[%s7135_s16 + $0x78] sm:$0xff]  ;;  %v3231_v45 = vld [vmem:[%s7135_s16 + $0x70] sm:$0xff]  ;;  %v3230_v17 = vld [vmem:[%s7135_s16 + $0x68] sm:$0xff] }
0x2beb   :  { %v5027_v16 = vld [vmem:[%s7135_s16 + $0xf8] sm:$0xff]  ;;  %5681 = vmatprep.subr.mxu0 %v3232_v15  ;;  %v5026_v1 = vld [vmem:[%s7135_s16 + $0xf0] sm:$0xff]  ;;  %v5025_v19 = vld [vmem:[%s7135_s16 + $0xe8] sm:$0xff]  ;;  %v3606_v52 = vmul.f32 1.442695, %v3232_v15 }
0x2bec   :  { %5716 = vmatprep.subr.mxu1 %v5027_v16  ;;  %v3229_v23 = vld [vmem:[%s7135_s16 + $0x60] sm:$0xff]  ;;  %v7148_v46 = vld [vmem:[%s7135_s16 + $0x58] sm:$0xff]  ;;  %v7156_v27 = vld [vmem:[%s7135_s16 + $0x50] sm:$0xff]  ;;  %v3638_v31 = vmul.f32 1.442695, %v5027_v16 }
0x2bed   :  { %v7145_v24 = vld [vmem:[%s7135_s16 + $0xe0] sm:$0xff]  ;;  %v7151_v25 = vld [vmem:[%s7135_s16 + $0xd8] sm:$0xff]  ;;  %v7159_v28 = vld [vmem:[%s7135_s16 + $0xd0] sm:$0xff]  ;;  %v3604_v36 = vmul.f32 1.442695, %v3231_v45  ;;  %6404 = vpow2.f32 %v3606_v52 }
0x2bee   :  { %v7166_v20 = vld [vmem:[%s7135_s16 + $0x48] sm:$0xff]  ;;  %v7176_v33 = vld [vmem:[%s7135_s16 + $0x40] sm:$0xff]  ;;  %v7186_v29 = vld [vmem:[%s7135_s16 + $0x38] sm:$0xff]  ;;  %v3636_v4 = vmul.f32 1.442695, %v5026_v1  ;;  %6406 = vpow2.f32 %v3638_v31 }
0x2bef   :  { %v7169_v10 = vld [vmem:[%s7135_s16 + $0xc8] sm:$0xff]  ;;  %v7179_v41 = vld [vmem:[%s7135_s16 + $0xc0] sm:$0xff]  ;;  %v7189_v30 = vld [vmem:[%s7135_s16 + $0xb8] sm:$0xff]  ;;  %v3602_v40 = vmul.f32 1.442695, %v3230_v17  ;;  %6408 = vpow2.f32 %v3604_v36 }
0x2bf0   :  { %v7196_v32 = vld [vmem:[%s7135_s16 + $0x30] sm:$0xff]  ;;  %v7206_v38 = vld [vmem:[%s7135_s16 + $0x28] sm:$0xff]  ;;  %v3634_v5 = vmul.f32 1.442695, %v5025_v19  ;;  %v7216_v21 = vld [vmem:[%s7135_s16 + $0x20] sm:$0xff]  ;;  %6410 = vpow2.f32 %v3636_v4 }
0x2bf1   :  { %v7199_v35 = vld [vmem:[%s7135_s16 + $0xb0] sm:$0xff]  ;;  %v7209_v39 = vld [vmem:[%s7135_s16 + $0xa8] sm:$0xff]  ;;  %v7219_v18 = vld [vmem:[%s7135_s16 + $0xa0] sm:$0xff]  ;;  %v3600_v2 = vmul.f32 1.442695, %v3229_v23  ;;  %6412 = vpow2.f32 %v3602_v40 }
0x2bf2   :  { %v3632_v43 = vmul.f32 1.442695, %v7145_v24  ;;  %v7232_v47 = vld [vmem:[%s7135_s16 + $0x18] sm:$0xff]  ;;  %6414 = vpow2.f32 %v3634_v5  ;;  %v3630_v50 = vmul.f32 1.442695, %v7151_v25  ;;  %v7253_v54 = vld [vmem:[%s7135_s16 + $0x90] sm:$0xff] }
0x2bf3   :  { %v7235_v48 = vld [vmem:[%s7135_s16 + $0x98] sm:$0xff]  ;;  %6416 = vpow2.f32 %v3600_v2  ;;  %v7274_v57 = vld [vmem:[%s7135_s16] sm:$0xff]  ;;  %v3622_v7 = vmul.f32 1.442695, %v7189_v30 }
0x2bf4   :  { %6418 = vpow2.f32 %v3632_v43  ;;  %v7277_v58 = vld [vmem:[%s7135_s16 + $0x80] sm:$0xff]  ;;  %v3576_v31 = vmul.f32 1.442695, %v7274_v57 }
0x2c51   :  { %v2940_v51 = vpop.permute.xlu0 %2939 }
0x2c52   :  { %v2942_v8 = vsel %vm241_vm1, %v6917_v34, %v2940_v51  ;;  %v7250_v51 = vld [vmem:[%s7135_s16 + $0x10] sm:$0xff] }
0x2c53   :  { %v3005_v22 = vsel %vm2056_vm4, %v2942_v8, %v2988_v49  ;;  %v3598_v49 = vmul.f32 1.442695, %v7148_v46  ;;  %v3628_v8 = vmul.f32 1.442695, %v7159_v28 }
0x2c54   :  { %v3007_v59 = vsel %vm3006_vm7, %v3005_v22, %v2991_v55  ;;  %v3596_v55 = vmul.f32 1.442695, %v7156_v27  ;;  %v7265_v22 = vld [vmem:[%s7135_s16 + $0x88] sm:$0xff] }
0x2c55   :  { %v2980_v61 = vpop.permute.xlu0 %2979  ;;  %v3009_v34 = vsel %vm3008_vm6, %v3007_v59, %v2994_v53  ;;  %v7262_v53 = vld [vmem:[%s7135_s16 + $0x8] sm:$0xff]  ;;  %6420 = vpow2.f32 %v3598_v49  ;;  %v3592_v59 = vmul.f32 1.442695, %v7176_v33 }
0x2c56   :  { %v2986_v62 = vsel %vm241_vm1, %v2980_v61, %v2984_v60  ;;  %v3015_v63 = vmul.f32 %v3013_v42, %v3009_v34  ;;  %v3019_v0 = vmul.f32 %v3017_v56, %v3009_v34  ;;  %v3594_v42 = vmul.f32 1.442695, %v7166_v20  ;;  %v3411_v61 = vld [vmem:[%s7241_s23] sm:$0xff] }
0x2c57   :  { %v3003_v9 = vrot.slane %v2986_v62, 2  ;;  %6422 = vpow2.f32 %v3630_v50  ;;  %v3626_v56 = vmul.f32 1.442695, %v7169_v10  ;;  %v3624_v60 = vmul.f32 1.442695, %v7179_v41  ;;  %v3216_v62 = vld [vmem:[%s7226_s5 + $0x8] sm:$0xff] }
0x2c58   :  { %5667 = vmatprep.mubr.msk.f32.mxu0 %vm153_vm0, %v3015_v63  ;;  %5678 = vmatprep.mubr.msk.f32.mxu1 %vm153_vm0, %v3019_v0  ;;  %6424 = vpow2.f32 %v3596_v55  ;;  %v3590_v34 = vmul.f32 1.442695, %v7186_v29  ;;  %v3412_v63 = vld [vmem:[%s7241_s23 + $0x8] sm:$0xff]  ;;  %v7292_v0 = vpop.eup %6404  ;;  %v5006_v55 = vld [vmem:[%s4890_s21] ss:$0 sm:$0xff] }
0x2c59   :  { %v3012_v11 = vsel %vm3008_vm6, %v3011_v37, %v3003_v9  ;;  %6426 = vpow2.f32 %v3628_v8  ;;  %v3620_v37 = vmul.f32 1.442695, %v7199_v35  ;;  %v5009_v8 = vld [vmem:[%s4892_s2] ss:$0 sm:$0xff] }
0x2c5a   :  { %v3016_v13 = vmul.f32 %v3014_v26, %v3012_v11  ;;  %v3020_v14 = vmul.f32 %v3018_v6, %v3012_v11  ;;  %6428 = vpow2.f32 %v3594_v42  ;;  %v7296_v26 = vpop.eup %6406  ;;  %v3588_v6 = vmul.f32 1.442695, %v7196_v32 }
0x2c5b   :  { %6430 = vpow2.f32 %v3626_v56  ;;  %v7300_v9 = vpop.eup %6408 }
0x2c5c   :  { %5668 = vmatmul.mubr.msk.f32.vlgmr.msra.gmra.mxu0 %vm153_vm0, %v3016_v13  ;;  %5679 = vmatmul.mubr.msk.f32.vlgmr.msra.gmra.mxu1 %vm153_vm0, %v3020_v14  ;;  %6432 = vpow2.f32 %v3592_v59  ;;  %v7303_v11 = vpop.eup %6410  ;;  %v3586_v13 = vmul.f32 1.442695, %v7206_v38 }
0x2c5d   :  { %5682 = vmatpush3.msra.mxu0 %v3232_v15  ;;  %5717 = vmatpush3.msra.mxu1 %v5027_v16  ;;  %6434 = vpow2.f32 %v3624_v60  ;;  %v7308_v14 = vpop.eup %6412  ;;  %v3618_v15 = vmul.f32 1.442695, %v7209_v39  ;;  %v3211_v60 = vld [vmem:[%s7452_s8] sm:$0xf] }
0x2c5e   :  { %5683 = vmatprep.subr.mxu0 %v3231_v45  ;;  %5718 = vmatprep.subr.mxu1 %v5026_v1  ;;  %6436 = vpow2.f32 %v3590_v34  ;;  %v7313_v16 = vpop.eup %6414 }
0x2c5f   :  { %5684 = vmatpush3.msra.mxu0 %v3231_v45  ;;  %5719 = vmatpush3.msra.mxu1 %v5026_v1  ;;  %6438 = vpow2.f32 %v3622_v7  ;;  %v3584_v45 = vmul.f32 1.442695, %v7216_v21  ;;  %v7318_v1 = vpop.eup %6416  ;;  %v6538_v7 = vmov 0  }
0x2c60   :  { %5685 = vmatprep.subr.mxu0 %v3230_v17  ;;  %5720 = vmatprep.subr.mxu1 %v5025_v19  ;;  %6440 = vpow2.f32 %v3588_v6  ;;  %v7478_v6 = vld [vmem:[%s7474_s6] sm:$0xff] }
0x2c61   :  { %5686 = vmatpush3.msra.mxu0 %v3230_v17  ;;  %5721 = vmatpush3.msra.mxu1 %v5025_v19  ;;  %6442 = vpow2.f32 %v3620_v37  ;;  %v3616_v17 = vmul.f32 1.442695, %v7219_v18  ;;  %v7323_v19 = vpop.eup %6418  ;;  %v3801_v37 = vrot.slane %v7478_v6, 2 }
0x2c62   :  { %5687 = vmatprep.subr.mxu0 %v3229_v23  ;;  %5722 = vmatprep.subr.mxu1 %v7145_v24  ;;  %6444 = vpow2.f32 %v3586_v13 }
0x2c63   :  { %5688 = vmatpush3.msra.mxu0 %v3229_v23  ;;  %5723 = vmatpush3.msra.mxu1 %v7145_v24  ;;  %v3582_v23 = vmul.f32 1.442695, %v7232_v47  ;;  %v7328_v24 = vpop.eup %6420  ;;  %6446 = vpow2.f32 %v3618_v15  ;;  %v3803_v13 = vsel %vm2056_vm4, %v3801_v37, %v7478_v6 }
0x2c64   :  { %5689 = vmatprep.subr.mxu0 %v7148_v46  ;;  %5724 = vmatprep.subr.mxu1 %v7151_v25  ;;  %6448 = vpow2.f32 %v3584_v45  ;;  %vm3804_vm8 = vcmp.gt.f32.partialorder %v3803_v13, 0.5 }
0x2c65   :  { %5690 = vmatpush3.msra.mxu0 %v7148_v46  ;;  %5725 = vmatpush3.msra.mxu1 %v7151_v25  ;;  %v3614_v46 = vmul.f32 1.442695, %v7235_v48  ;;  %v7333_v25 = vpop.eup %6422  ;;  %6450 = vpow2.f32 %v3616_v17  ;;  %v3805_v15 = vsel %vm3804_vm8, 1, %v6538_v7 }
0x2c66   :  { %5691 = vmatprep.subr.mxu0 %v7156_v27  ;;  %5726 = vmatprep.subr.mxu1 %v7159_v28  ;;  %6452 = vpow2.f32 %v3582_v23 }
0x2c67   :  { %5692 = vmatpush3.msra.mxu0 %v7156_v27  ;;  %5727 = vmatpush3.msra.mxu1 %v7159_v28  ;;  %v3580_v27 = vmul.f32 1.442695, %v7250_v51  ;;  %v7338_v28 = vpop.eup %6424  ;;  %6454 = vpow2.f32 %v3614_v46 }
0x2c68   :  { %5693 = vmatprep.subr.mxu0 %v7166_v20  ;;  %5728 = vmatprep.subr.mxu1 %v7169_v10 }
0x2c69   :  { %5694 = vmatpush3.msra.mxu0 %v7166_v20  ;;  %5729 = vmatpush3.msra.mxu1 %v7169_v10  ;;  %v3612_v20 = vmul.f32 1.442695, %v7253_v54  ;;  %v7343_v10 = vpop.eup %6426  ;;  %6456 = vpow2.f32 %v3580_v27 }
0x2c6a   :  { %5695 = vmatprep.subr.mxu0 %v7176_v33  ;;  %5730 = vmatprep.subr.mxu1 %v7179_v41 }
0x2c6b   :  { %5696 = vmatpush3.msra.mxu0 %v7176_v33  ;;  %5731 = vmatpush3.msra.mxu1 %v7179_v41  ;;  %v3578_v33 = vmul.f32 1.442695, %v7262_v53  ;;  %v7348_v41 = vpop.eup %6428  ;;  %6458 = vpow2.f32 %v3612_v20 }
0x2c6c   :  { %5697 = vmatprep.subr.mxu0 %v7186_v29  ;;  %5732 = vmatprep.subr.mxu1 %v7189_v30 }
0x2c6d   :  { %5698 = vmatpush3.msra.mxu0 %v7186_v29  ;;  %5733 = vmatpush3.msra.mxu1 %v7189_v30  ;;  %v3610_v29 = vmul.f32 1.442695, %v7265_v22  ;;  %v7353_v30 = vpop.eup %6430  ;;  %6460 = vpow2.f32 %v3578_v33 }
0x2c6e   :  { %5699 = vmatprep.subr.mxu0 %v7196_v32  ;;  %5734 = vmatprep.subr.mxu1 %v7199_v35  ;;  %v7357_v52 = vpop.eup %6432 }
0x2c6f   :  { %5700 = vmatpush3.msra.mxu0 %v7196_v32  ;;  %5735 = vmatpush3.msra.mxu1 %v7199_v35  ;;  %v7362_v32 = vpop.eup %6434  ;;  %v3608_v35 = vmul.f32 1.442695, %v7277_v58  ;;  %6462 = vpow2.f32 %v3610_v29 }
0x2c70   :  { %5701 = vmatprep.subr.mxu0 %v7206_v38  ;;  %5736 = vmatprep.subr.mxu1 %v7209_v39  ;;  %v7367_v36 = vpop.eup %6436  ;;  %6464 = vpow2.f32 %v3576_v31 }
0x2c71   :  { %5702 = vmatpush3.msra.mxu0 %v7206_v38  ;;  %5737 = vmatpush3.msra.mxu1 %v7209_v39  ;;  %v7371_v4 = vpop.eup %6438  ;;  %6466 = vpow2.f32 %v3608_v35 }
0x2c72   :  { %5703 = vmatprep.subr.mxu0 %v7216_v21  ;;  %5738 = vmatprep.subr.mxu1 %v7219_v18  ;;  %v7375_v38 = vpop.eup %6440 }
0x2c73   :  { %5704 = vmatpush3.msra.mxu0 %v7216_v21  ;;  %5739 = vmatpush3.msra.mxu1 %v7219_v18  ;;  %v7379_v39 = vpop.eup %6442 }
0x2c74   :  { %5705 = vmatprep.subr.mxu0 %v7232_v47  ;;  %5740 = vmatprep.subr.mxu1 %v7235_v48  ;;  %v7383_v40 = vpop.eup %6444 }
0x2c75   :  { %5706 = vmatpush3.msra.mxu0 %v7232_v47  ;;  %5741 = vmatpush3.msra.mxu1 %v7235_v48  ;;  %v7387_v5 = vpop.eup %6446 }
0x2c76   :  { %5707 = vmatprep.subr.mxu0 %v7250_v51  ;;  %5742 = vmatprep.subr.mxu1 %v7253_v54  ;;  %v7391_v21 = vpop.eup %6448 }
0x2c77   :  { %5708 = vmatpush3.msra.mxu0 %v7250_v51  ;;  %5743 = vmatpush3.msra.mxu1 %v7253_v54  ;;  %v7395_v18 = vpop.eup %6450 }
0x2c78   :  { %5709 = vmatprep.subr.mxu0 %v7262_v53  ;;  %5744 = vmatprep.subr.mxu1 %v7265_v22  ;;  %v7399_v2 = vpop.eup %6452 }
0x2c79   :  { %5710 = vmatpush3.msra.mxu0 %v7262_v53  ;;  %5745 = vmatpush3.msra.mxu1 %v7265_v22  ;;  %v7403_v43 = vpop.eup %6454 }
0x2c7a   :  { %5711 = vmatprep.subr.mxu0 %v7274_v57  ;;  %5746 = vmatprep.subr.mxu1 %v7277_v58  ;;  %v7407_v47 = vpop.eup %6456 }
0x2c7b   :  { %5712 = vmatpush3.msra.mxu0 %v7274_v57  ;;  %5713 = vmatprep.mubr.f32.mxu0 %v3215_v3  ;;  %v7411_v48 = vpop.eup %6458 }
0x2c7c   :  { %5747 = vmatpush3.msra.mxu1 %v7277_v58  ;;  %5748 = vmatprep.mubr.f32.mxu1 %v3411_v61  ;;  %v7415_v49 = vpop.eup %6460 }
0x2c7d   :  { %5714 = vmatmul.mubr.f32.vlgmr.msra.gmra.mxu0 %v3216_v62  ;;  %5749 = vmatmul.mubr.f32.vlgmr.msra.gmra.mxu1 %v3412_v63  ;;  %v7419_v50 = vpop.eup %6462 }
0x2c7e   :  { %5751 = vmatprep.subr.mxu0 %v6526_v44  ;;  %5786 = vmatprep.subr.mxu1 %v6526_v44  ;;  %v7425_v51 = vpop.eup %6464 }
0x2c7f   :  { %5752 = vmatpush3.msra.mxu0 %v7292_v0  ;;  %5787 = vmatpush3.msra.mxu1 %v7296_v26  ;;  %v7429_v54 = vpop.eup %6466 }
0x2c80   :  { %5753 = vmatprep.subr.mxu0 %v6526_v44  ;;  %5788 = vmatprep.subr.mxu1 %v6526_v44 }
0x2c81   :  { %5754 = vmatpush3.msra.mxu0 %v7300_v9  ;;  %5789 = vmatpush3.msra.mxu1 %v7303_v11 }
0x2c82   :  { %5755 = vmatprep.subr.mxu0 %v6526_v44  ;;  %5790 = vmatprep.subr.mxu1 %v6526_v44 }
0x2c83   :  { %5756 = vmatpush3.msra.mxu0 %v7308_v14  ;;  %5791 = vmatpush3.msra.mxu1 %v7313_v16 }
0x2c84   :  { %5757 = vmatprep.subr.mxu0 %v6526_v44  ;;  %5792 = vmatprep.subr.mxu1 %v6526_v44 }
0x2c85   :  { %5758 = vmatpush3.msra.mxu0 %v7318_v1  ;;  %5793 = vmatpush3.msra.mxu1 %v7323_v19 }
0x2c86   :  { %5759 = vmatprep.subr.mxu0 %v6526_v44  ;;  %5794 = vmatprep.subr.mxu1 %v6526_v44 }
0x2c87   :  { %5760 = vmatpush3.msra.mxu0 %v7328_v24  ;;  %5795 = vmatpush3.msra.mxu1 %v7333_v25 }
0x2c88   :  { %5761 = vmatprep.subr.mxu0 %v6526_v44  ;;  %5796 = vmatprep.subr.mxu1 %v6526_v44 }
0x2c89   :  { %5762 = vmatpush3.msra.mxu0 %v7338_v28  ;;  %5797 = vmatpush3.msra.mxu1 %v7343_v10 }
0x2c8a   :  { %5763 = vmatprep.subr.mxu0 %v6526_v44  ;;  %5798 = vmatprep.subr.mxu1 %v6526_v44 }
0x2c8b   :  { %5764 = vmatpush3.msra.mxu0 %v7348_v41  ;;  %5799 = vmatpush3.msra.mxu1 %v7353_v30 }
0x2c8c   :  { %5765 = vmatprep.subr.mxu0 %v6526_v44  ;;  %5800 = vmatprep.subr.mxu1 %v6526_v44 }
0x2c8d   :  { %5766 = vmatpush3.msra.mxu0 %v7357_v52  ;;  %5801 = vmatpush3.msra.mxu1 %v7362_v32 }
0x2c8e   :  { %5767 = vmatprep.subr.mxu0 %v6526_v44  ;;  %5802 = vmatprep.subr.mxu1 %v6526_v44 }
0x2c8f   :  { %5768 = vmatpush3.msra.mxu0 %v7367_v36  ;;  %5803 = vmatpush3.msra.mxu1 %v7371_v4 }
0x2c90   :  { %5769 = vmatprep.subr.mxu0 %v6526_v44  ;;  %5804 = vmatprep.subr.mxu1 %v6526_v44 }
0x2c91   :  { %5770 = vmatpush3.msra.mxu0 %v7375_v38  ;;  %5805 = vmatpush3.msra.mxu1 %v7379_v39 }
0x2c92   :  { %5771 = vmatprep.subr.mxu0 %v6526_v44  ;;  %5806 = vmatprep.subr.mxu1 %v6526_v44 }
0x2c93   :  { %5772 = vmatpush3.msra.mxu0 %v7383_v40  ;;  %5807 = vmatpush3.msra.mxu1 %v7387_v5 }
0x2c94   :  { %5773 = vmatprep.subr.mxu0 %v6526_v44  ;;  %5808 = vmatprep.subr.mxu1 %v6526_v44 }
0x2c95   :  { %5774 = vmatpush3.msra.mxu0 %v7391_v21  ;;  %5809 = vmatpush3.msra.mxu1 %v7395_v18 }
0x2c96   :  { %5775 = vmatprep.subr.mxu0 %v6526_v44  ;;  %5810 = vmatprep.subr.mxu1 %v6526_v44 }
0x2c97   :  { %5776 = vmatpush3.msra.mxu0 %v7399_v2  ;;  %5811 = vmatpush3.msra.mxu1 %v7403_v43 }
0x2c98   :  { %5777 = vmatprep.subr.mxu0 %v6526_v44  ;;  %5812 = vmatprep.subr.mxu1 %v6526_v44 }
0x2c99   :  { %5778 = vmatpush3.msra.mxu0 %v7407_v47  ;;  %5813 = vmatpush3.msra.mxu1 %v7411_v48 }
0x2c9a   :  { %5779 = vmatprep.subr.mxu0 %v6526_v44  ;;  %5814 = vmatprep.subr.mxu1 %v6526_v44 }
0x2c9b   :  { %5780 = vmatpush3.msra.mxu0 %v7415_v49  ;;  %5815 = vmatpush3.msra.mxu1 %v7419_v50 }
0x2c9c   :  { %5781 = vmatprep.subr.mxu0 %v6526_v44  ;;  %5816 = vmatprep.subr.mxu1 %v6526_v44 }
0x2c9d   :  { %5782 = vmatpush3.msra.mxu0 %v7425_v51  ;;  %5783 = vmatprep.mubr.msk.f32.mxu0 %vm6527_vm3, %v6526_v44 }
0x2c9e   :  { %5817 = vmatpush3.msra.mxu1 %v7429_v54  ;;  %5818 = vmatprep.mubr.msk.f32.mxu1 %vm6527_vm3, %v6526_v44 }
0x2c9f   :  { %5821 = vmatprep.subr.mxu0 %v6526_v44  ;;  %5856 = vmatprep.subr.mxu1 %v6526_v44 }
0x2ca0   :  { %6282 = vset.pattern.permute.xlu1 %v6538_v7  ;;  %6283 = vset.pattern.permute.xlu0 %v6538_v7 }
0x2ca1   :  { %3807 = vperm.xlu1 %6282, %v3805_v15  }
0x2d1c   :  { %v5669_v53 = vpop.f32.mrf.mxu0  ;;  %v5680_v22 = vpop.f32.mrf.mxu1 }
0x2d1d   :  { %v7454_v42 = vadd.f32 %v5669_v53, %v5006_v55  ;;  %v7456_v56 = vadd.f32 %v5680_v22, %v5009_v8 }
0x2d1e   :  { %v3196_v57 = vpop.f32.mrf.mxu1  ;;  %v3104_v58 = vpop.f32.mrf.mxu0 }
0x2d1f   :  { %v7458_v59 = vadd.f32 %v5009_v8, %v3196_v57  ;;  %v7460_v3 = vadd.f32 %v5006_v55, %v3104_v58 }
0x2d21   :  { %v3641_v61 = vrot.slane %v7458_v59, 6  ;;  %v3797_v58 = vrot.slane %v7460_v3, 2 }
0x2d23   :  { %v3643_v34 = vsel %vm2056_vm4, %v7460_v3, %v3641_v61  ;;  %v3808_v61 = vpop.permute.xlu1 %3807 }
0x2d24   :  { %v7466_v62 = vadd.f32 %v3643_v34, %v3211_v60  ;;  %vm3809_vm9 = vcmp.eq.s32.totalorder %v3808_v61, 1 }
0x2d26   :  { %v3645_v63 = vsel %vm3006_vm7, %v7466_v62, -inf }
0x2d27   :  { %3646 = vmax.xlane.f32.xlu0 %v3645_v63  ;;  %v3799_v63 = vsel %vm2056_vm4, %v3797_v58, %v7458_v59 }
0x2d3d   :  { %v7558_v27 = vpop.f32.mrf.mxu0  ;;  %v7560_v20 = vpop.f32.mrf.mxu1 }
0x2d3f   :  { %v7562_v33 = vpop.f32.mrf.mxu0  ;;  %v7564_v29 = vpop.f32.mrf.mxu1 }
0x2db0   :  { %v7486_v45 = vpop.xlane.xlu0 %3646 }
0x2db1   :  { %v3648_v17 = vsub.f32 %v7466_v62, %v7486_v45 }
0x2db3   :  { %v3649_v23 = vmul.f32 1.442695, %v3648_v17 }
0x2db5   :  { %6468 = vpow2.f32 %v3649_v23  ;;  %v3968_v23 = vrot.slane %v7478_v6, 4 }
0x2dc2   :  { %v6469_v46 = vpop.eup %6468 }
0x2dc3   :  { %5784 = vmatmul.mubr.f32.vlgmr.msra.gmra.mxu0 %v6469_v46  ;;  %5819 = vmatmul.mubr.f32.vlgmr.msra.gmra.mxu1 %v6469_v46  ;;  %v7579_v46 = vld [vmem:[%s7474_s6 + $0x8] sm:$0xff] }
0x2dc4   :  { %5822 = vmatpush3.msra.mxu0 %v7292_v0  ;;  %5857 = vmatpush3.msra.mxu1 %v7296_v26 }
0x2dc5   :  { %5823 = vmatprep.subr.mxu0 %v6526_v44  ;;  %5858 = vmatprep.subr.mxu1 %v6526_v44 }
0x2dc6   :  { %5824 = vmatpush3.msra.mxu0 %v7300_v9  ;;  %5859 = vmatpush3.msra.mxu1 %v7303_v11 }
0x2dc7   :  { %5825 = vmatprep.subr.mxu0 %v6526_v44  ;;  %5860 = vmatprep.subr.mxu1 %v6526_v44 }
0x2dc8   :  { %5826 = vmatpush3.msra.mxu0 %v7308_v14  ;;  %5861 = vmatpush3.msra.mxu1 %v7313_v16 }
0x2dc9   :  { %5827 = vmatprep.subr.mxu0 %v6526_v44  ;;  %5862 = vmatprep.subr.mxu1 %v6526_v44 }
0x2dca   :  { %5828 = vmatpush3.msra.mxu0 %v7318_v1  ;;  %5863 = vmatpush3.msra.mxu1 %v7323_v19 }
0x2dcb   :  { %5829 = vmatprep.subr.mxu0 %v6526_v44  ;;  %5864 = vmatprep.subr.mxu1 %v6526_v44 }
0x2dcc   :  { %5830 = vmatpush3.msra.mxu0 %v7328_v24  ;;  %5865 = vmatpush3.msra.mxu1 %v7333_v25 }
0x2dcd   :  { %5831 = vmatprep.subr.mxu0 %v6526_v44  ;;  %5866 = vmatprep.subr.mxu1 %v6526_v44 }
0x2dce   :  { %5832 = vmatpush3.msra.mxu0 %v7338_v28  ;;  %5867 = vmatpush3.msra.mxu1 %v7343_v10 }
0x2dcf   :  { %5833 = vmatprep.subr.mxu0 %v6526_v44  ;;  %5868 = vmatprep.subr.mxu1 %v6526_v44 }
0x2dd0   :  { %5834 = vmatpush3.msra.mxu0 %v7348_v41  ;;  %5869 = vmatpush3.msra.mxu1 %v7353_v30 }
0x2dd1   :  { %5835 = vmatprep.subr.mxu0 %v6526_v44  ;;  %5870 = vmatprep.subr.mxu1 %v6526_v44 }
0x2dd2   :  { %5836 = vmatpush3.msra.mxu0 %v7357_v52  ;;  %5871 = vmatpush3.msra.mxu1 %v7362_v32 }
0x2dd3   :  { %5837 = vmatprep.subr.mxu0 %v6526_v44  ;;  %5872 = vmatprep.subr.mxu1 %v6526_v44 }
0x2dd4   :  { %5838 = vmatpush3.msra.mxu0 %v7367_v36  ;;  %5873 = vmatpush3.msra.mxu1 %v7371_v4 }
0x2dd5   :  { %5839 = vmatprep.subr.mxu0 %v6526_v44  ;;  %5874 = vmatprep.subr.mxu1 %v6526_v44 }
0x2dd6   :  { %5840 = vmatpush3.msra.mxu0 %v7375_v38  ;;  %5875 = vmatpush3.msra.mxu1 %v7379_v39 }
0x2dd7   :  { %5841 = vmatprep.subr.mxu0 %v6526_v44  ;;  %5876 = vmatprep.subr.mxu1 %v6526_v44 }
0x2dd8   :  { %5842 = vmatpush3.msra.mxu0 %v7383_v40  ;;  %5877 = vmatpush3.msra.mxu1 %v7387_v5 }
0x2dd9   :  { %5843 = vmatprep.subr.mxu0 %v6526_v44  ;;  %5878 = vmatprep.subr.mxu1 %v6526_v44 }
0x2dda   :  { %5844 = vmatpush3.msra.mxu0 %v7391_v21  ;;  %5879 = vmatpush3.msra.mxu1 %v7395_v18 }
0x2ddb   :  { %5845 = vmatprep.subr.mxu0 %v6526_v44  ;;  %5880 = vmatprep.subr.mxu1 %v6526_v44 }
0x2ddc   :  { %5846 = vmatpush3.msra.mxu0 %v7399_v2  ;;  %5881 = vmatpush3.msra.mxu1 %v7403_v43 }
0x2ddd   :  { %5847 = vmatprep.subr.mxu0 %v6526_v44  ;;  %5882 = vmatprep.subr.mxu1 %v6526_v44 }
0x2dde   :  { %5848 = vmatpush3.msra.mxu0 %v7407_v47  ;;  %5883 = vmatpush3.msra.mxu1 %v7411_v48 }
0x2ddf   :  { %5849 = vmatprep.subr.mxu0 %v6526_v44  ;;  %5884 = vmatprep.subr.mxu1 %v6526_v44 }
0x2de0   :  { %5850 = vmatpush3.msra.mxu0 %v7415_v49  ;;  %5885 = vmatpush3.msra.mxu1 %v7419_v50 }
0x2de1   :  { %5851 = vmatprep.subr.mxu0 %v6526_v44  ;;  %5886 = vmatprep.subr.mxu1 %v6526_v44 }
0x2de2   :  { %5852 = vmatpush3.msra.mxu0 %v7425_v51  ;;  %5853 = vmatprep.mubr.msk.f32.mxu0 %vm6527_vm3, %v6526_v44 }
0x2de3   :  { %5887 = vmatpush3.msra.mxu1 %v7429_v54  ;;  %5888 = vmatprep.mubr.msk.f32.mxu1 %vm6527_vm3, %v6526_v44 }
0x2de4   :  { %5891 = vmatprep.subr.mxu0 %v6526_v44  ;;  %5926 = vmatprep.subr.mxu1 %v6526_v44 }
0x2e83   :  { %v3717_v31 = vpop.f32.mrf.mxu0  ;;  %v3787_v35 = vpop.f32.mrf.mxu1 }
0x2e84   :  { %v3791_v55 = vsel %vm2050_vm5, %v3717_v31, %v3787_v35  ;;  %v4301_v31 = vrot.slane %v7579_v46, 6 }
0x2e85   :  { %v3792_v8 = vmax.f32 %v3791_v55, 1e-30  ;;  %v5785_v53 = vpop.f32.mrf.mxu0  ;;  %v5820_v22 = vpop.f32.mrf.mxu1 }
0x2e87   :  { %6470 = vlog2.f32 %v3792_v8 }
0x2e94   :  { %v6471_v57 = vpop.eup %6470 }
0x2e95   :  { %v3794_v60 = vmul.f32 0.6931472, %v6471_v57 }
0x2e97   :  { %v3795_v34 = vadd.f32 %v3794_v60, %v7486_v45  ;;  %v3970_v45 = vsel %vm2056_vm4, %v3968_v23, %v3801_v37 }
0x2e98   :  { %vm3971_vm10 = vcmp.gt.f32.partialorder %v3970_v45, 0.5  ;;  %v3964_v45 = vrot.slane %v7458_v59, 2 }
0x2e99   :  { %v3800_v13 = vadd.f32 %v3799_v63, %v3795_v34  ;;  %v3972_v35 = vsel %vm3971_vm10, 1, %v6538_v7 }
0x2e9a   :  { %3974 = vperm.xlu0 %6283, %v3972_v35  }
0x2e9b   :  { %v7573_v15 = vsel %vm3809_vm9, %v3800_v13, %v7466_v62  ;;  %v4303_v62 = vsel %vm2056_vm4, %v7579_v46, %v4301_v31 }
0x2e9c   :  { %v3811_v17 = vsel %vm3006_vm7, %v7573_v15, -inf  ;;  %vm4304_vm11 = vcmp.gt.f32.partialorder %v4303_v62, 0.5 }
0x2e9d   :  { %3812 = vmax.xlane.f32.xlu1 %v3811_v17  ;;  %v4305_v55 = vsel %vm4304_vm11, 1, %v6538_v7  ;;  %v3962_v17 = vrot.slane %v7460_v3, 4 }
0x2e9e   :  { %4307 = vperm.xlu0 %6283, %v4305_v55  }
0x2f15   :  { %v3975_v55 = vpop.permute.xlu0 %3974 }
0x2f16   :  { %vm3976_vm12 = vcmp.eq.s32.totalorder %v3975_v55, 1  ;;  %v4129_v55 = vrot.slane %v7460_v3, 6 }
0x2f26   :  { %v7593_v8 = vpop.xlane.xlu1 %3812 }
0x2f27   :  { %v3814_v53 = vsub.f32 %v7573_v15, %v7593_v8 }
0x2f29   :  { %v3815_v22 = vmul.f32 1.442695, %v3814_v53  ;;  %v3966_v53 = vsel %vm2056_vm4, %v3962_v17, %v3964_v45 }
0x2f2b   :  { %6472 = vpow2.f32 %v3815_v22 }
0x2f38   :  { %v6473_v37 = vpop.eup %6472 }
0x2f39   :  { %5854 = vmatmul.mubr.f32.vlgmr.msra.gmra.mxu0 %v6473_v37  ;;  %5889 = vmatmul.mubr.f32.vlgmr.msra.gmra.mxu1 %v6473_v37 }
0x2f3a   :  { %5892 = vmatpush3.msra.mxu0 %v7292_v0  ;;  %5927 = vmatpush3.msra.mxu1 %v7296_v26 }
0x2f3b   :  { %5893 = vmatprep.subr.mxu0 %v6526_v44  ;;  %5928 = vmatprep.subr.mxu1 %v6526_v44 }
0x2f3c   :  { %5894 = vmatpush3.msra.mxu0 %v7300_v9  ;;  %5929 = vmatpush3.msra.mxu1 %v7303_v11 }
0x2f3d   :  { %5895 = vmatprep.subr.mxu0 %v6526_v44  ;;  %5930 = vmatprep.subr.mxu1 %v6526_v44 }
0x2f3e   :  { %5896 = vmatpush3.msra.mxu0 %v7308_v14  ;;  %5931 = vmatpush3.msra.mxu1 %v7313_v16 }
0x2f3f   :  { %5897 = vmatprep.subr.mxu0 %v6526_v44  ;;  %5932 = vmatprep.subr.mxu1 %v6526_v44 }
0x2f40   :  { %5898 = vmatpush3.msra.mxu0 %v7318_v1  ;;  %5933 = vmatpush3.msra.mxu1 %v7323_v19 }
0x2f41   :  { %5899 = vmatprep.subr.mxu0 %v6526_v44  ;;  %5934 = vmatprep.subr.mxu1 %v6526_v44 }
0x2f42   :  { %5900 = vmatpush3.msra.mxu0 %v7328_v24  ;;  %5935 = vmatpush3.msra.mxu1 %v7333_v25 }
0x2f43   :  { %5901 = vmatprep.subr.mxu0 %v6526_v44  ;;  %5936 = vmatprep.subr.mxu1 %v6526_v44 }
0x2f44   :  { %5902 = vmatpush3.msra.mxu0 %v7338_v28  ;;  %5937 = vmatpush3.msra.mxu1 %v7343_v10 }
0x2f45   :  { %5903 = vmatprep.subr.mxu0 %v6526_v44  ;;  %5938 = vmatprep.subr.mxu1 %v6526_v44 }
0x2f46   :  { %5904 = vmatpush3.msra.mxu0 %v7348_v41  ;;  %5939 = vmatpush3.msra.mxu1 %v7353_v30 }
0x2f47   :  { %5905 = vmatprep.subr.mxu0 %v6526_v44  ;;  %5940 = vmatprep.subr.mxu1 %v6526_v44 }
0x2f48   :  { %5906 = vmatpush3.msra.mxu0 %v7357_v52  ;;  %5941 = vmatpush3.msra.mxu1 %v7362_v32 }
0x2f49   :  { %5907 = vmatprep.subr.mxu0 %v6526_v44  ;;  %5942 = vmatprep.subr.mxu1 %v6526_v44 }
0x2f4a   :  { %5908 = vmatpush3.msra.mxu0 %v7367_v36  ;;  %5943 = vmatpush3.msra.mxu1 %v7371_v4 }
0x2f4b   :  { %5909 = vmatprep.subr.mxu0 %v6526_v44  ;;  %5944 = vmatprep.subr.mxu1 %v6526_v44 }
0x2f4c   :  { %5910 = vmatpush3.msra.mxu0 %v7375_v38  ;;  %5945 = vmatpush3.msra.mxu1 %v7379_v39 }
0x2f4d   :  { %5911 = vmatprep.subr.mxu0 %v6526_v44  ;;  %5946 = vmatprep.subr.mxu1 %v6526_v44 }
0x2f4e   :  { %5912 = vmatpush3.msra.mxu0 %v7383_v40  ;;  %5947 = vmatpush3.msra.mxu1 %v7387_v5 }
0x2f4f   :  { %5913 = vmatprep.subr.mxu0 %v6526_v44  ;;  %5948 = vmatprep.subr.mxu1 %v6526_v44 }
0x2f50   :  { %5914 = vmatpush3.msra.mxu0 %v7391_v21  ;;  %5949 = vmatpush3.msra.mxu1 %v7395_v18 }
0x2f51   :  { %5915 = vmatprep.subr.mxu0 %v6526_v44  ;;  %5950 = vmatprep.subr.mxu1 %v6526_v44 }
0x2f52   :  { %5916 = vmatpush3.msra.mxu0 %v7399_v2  ;;  %5951 = vmatpush3.msra.mxu1 %v7403_v43 }
0x2f53   :  { %5917 = vmatprep.subr.mxu0 %v6526_v44  ;;  %5952 = vmatprep.subr.mxu1 %v6526_v44 }
0x2f54   :  { %5918 = vmatpush3.msra.mxu0 %v7407_v47  ;;  %5953 = vmatpush3.msra.mxu1 %v7411_v48 }
0x2f55   :  { %5919 = vmatprep.subr.mxu0 %v6526_v44  ;;  %5954 = vmatprep.subr.mxu1 %v6526_v44 }
0x2f56   :  { %5920 = vmatpush3.msra.mxu0 %v7415_v49  ;;  %5955 = vmatpush3.msra.mxu1 %v7419_v50 }
0x2f57   :  { %5921 = vmatprep.subr.mxu0 %v6526_v44  ;;  %5956 = vmatprep.subr.mxu1 %v6526_v44 }
0x2f58   :  { %5922 = vmatpush3.msra.mxu0 %v7425_v51  ;;  %5923 = vmatprep.mubr.msk.f32.mxu0 %vm6527_vm3, %v6526_v44 }
0x2f59   :  { %5957 = vmatpush3.msra.mxu1 %v7429_v54  ;;  %5958 = vmatprep.mubr.msk.f32.mxu1 %vm6527_vm3, %v6526_v44 }
0x2f5a   :  { %5961 = vmatprep.subr.mxu0 %v6526_v44  ;;  %5996 = vmatprep.subr.mxu1 %v6526_v44 }
0x2ff9   :  { %v3883_v57 = vpop.f32.mrf.mxu0  ;;  %v3953_v58 = vpop.f32.mrf.mxu1 }
0x2ffa   :  { %v3957_v60 = vsel %vm2050_vm5, %v3883_v57, %v3953_v58  ;;  %v4135_v58 = vrot.slane %v7478_v6, 6 }
0x2ffb   :  { %v3958_v61 = vmax.f32 %v3957_v60, 1e-30  ;;  %v5855_v34 = vpop.f32.mrf.mxu0  ;;  %v5890_v63 = vpop.f32.mrf.mxu1 }
0x2ffc   :  { %v4137_v60 = vsel %vm2056_vm4, %v4135_v58, %v3968_v23 }
0x2ffd   :  { %6474 = vlog2.f32 %v3958_v61  ;;  %vm4138_vm13 = vcmp.gt.f32.partialorder %v4137_v60, 0.5 }
0x300a   :  { %v6475_v13 = vpop.eup %6474 }
0x300b   :  { %v3960_v62 = vmul.f32 0.6931472, %v6475_v13 }
0x300d   :  { %v3961_v35 = vadd.f32 %v3960_v62, %v7593_v8  ;;  %v4139_v8 = vsel %vm4138_vm13, 1, %v6538_v7 }
0x300f   :  { %v3967_v22 = vadd.f32 %v3966_v53, %v3961_v35  ;;  %v4131_v53 = vrot.slane %v7458_v59, 4 }
0x3011   :  { %v7672_v37 = vsel %vm3976_vm12, %v3967_v22, %v7573_v15  ;;  %v4133_v60 = vsel %vm2056_vm4, %v4129_v55, %v4131_v53 }
0x3012   :  { %v3978_v57 = vsel %vm3006_vm7, %v7672_v37, -inf }
0x3013   :  { %3979 = vmax.xlane.f32.xlu1 %v3978_v57 }
0x3024   :  { %4141 = vperm.xlu1 %6282, %v4139_v8  }
0x309c   :  { %v7681_v61 = vpop.xlane.xlu1 %3979 }
0x309d   :  { %v3981_v15 = vsub.f32 %v7672_v37, %v7681_v61 }
0x309f   :  { %v3982_v34 = vmul.f32 1.442695, %v3981_v15 }
0x30a0   :  { %v4142_v57 = vpop.permute.xlu1 %4141 }
0x30a1   :  { %6476 = vpow2.f32 %v3982_v34  ;;  %vm4143_vm14 = vcmp.eq.s32.totalorder %v4142_v57, 1 }
0x30ae   :  { %v6477_v63 = vpop.eup %6476 }
0x30af   :  { %5924 = vmatmul.mubr.f32.vlgmr.msra.gmra.mxu0 %v6477_v63  ;;  %5959 = vmatmul.mubr.f32.vlgmr.msra.gmra.mxu1 %v6477_v63  ;;  %v4467_v63 = vrot.slane %v7579_v46, 2 }
0x30b0   :  { %5962 = vmatpush3.msra.mxu0 %v7292_v0  ;;  %5997 = vmatpush3.msra.mxu1 %v7296_v26 }
0x30b1   :  { %5963 = vmatprep.subr.mxu0 %v6526_v44  ;;  %5998 = vmatprep.subr.mxu1 %v6526_v44 }
0x30b2   :  { %5964 = vmatpush3.msra.mxu0 %v7300_v9  ;;  %5999 = vmatpush3.msra.mxu1 %v7303_v11 }
0x30b3   :  { %5965 = vmatprep.subr.mxu0 %v6526_v44  ;;  %6000 = vmatprep.subr.mxu1 %v6526_v44 }
0x30b4   :  { %5966 = vmatpush3.msra.mxu0 %v7308_v14  ;;  %6001 = vmatpush3.msra.mxu1 %v7313_v16 }
0x30b5   :  { %5967 = vmatprep.subr.mxu0 %v6526_v44  ;;  %6002 = vmatprep.subr.mxu1 %v6526_v44 }
0x30b6   :  { %5968 = vmatpush3.msra.mxu0 %v7318_v1  ;;  %6003 = vmatpush3.msra.mxu1 %v7323_v19 }
0x30b7   :  { %5969 = vmatprep.subr.mxu0 %v6526_v44  ;;  %6004 = vmatprep.subr.mxu1 %v6526_v44 }
0x30b8   :  { %5970 = vmatpush3.msra.mxu0 %v7328_v24  ;;  %6005 = vmatpush3.msra.mxu1 %v7333_v25 }
0x30b9   :  { %5971 = vmatprep.subr.mxu0 %v6526_v44  ;;  %6006 = vmatprep.subr.mxu1 %v6526_v44 }
0x30ba   :  { %5972 = vmatpush3.msra.mxu0 %v7338_v28  ;;  %6007 = vmatpush3.msra.mxu1 %v7343_v10 }
0x30bb   :  { %5973 = vmatprep.subr.mxu0 %v6526_v44  ;;  %6008 = vmatprep.subr.mxu1 %v6526_v44 }
0x30bc   :  { %5974 = vmatpush3.msra.mxu0 %v7348_v41  ;;  %6009 = vmatpush3.msra.mxu1 %v7353_v30 }
0x30bd   :  { %5975 = vmatprep.subr.mxu0 %v6526_v44  ;;  %6010 = vmatprep.subr.mxu1 %v6526_v44 }
0x30be   :  { %5976 = vmatpush3.msra.mxu0 %v7357_v52  ;;  %6011 = vmatpush3.msra.mxu1 %v7362_v32 }
0x30bf   :  { %5977 = vmatprep.subr.mxu0 %v6526_v44  ;;  %6012 = vmatprep.subr.mxu1 %v6526_v44 }
0x30c0   :  { %5978 = vmatpush3.msra.mxu0 %v7367_v36  ;;  %6013 = vmatpush3.msra.mxu1 %v7371_v4 }
0x30c1   :  { %5979 = vmatprep.subr.mxu0 %v6526_v44  ;;  %6014 = vmatprep.subr.mxu1 %v6526_v44 }
0x30c2   :  { %5980 = vmatpush3.msra.mxu0 %v7375_v38  ;;  %6015 = vmatpush3.msra.mxu1 %v7379_v39 }
0x30c3   :  { %5981 = vmatprep.subr.mxu0 %v6526_v44  ;;  %6016 = vmatprep.subr.mxu1 %v6526_v44 }
0x30c4   :  { %5982 = vmatpush3.msra.mxu0 %v7383_v40  ;;  %6017 = vmatpush3.msra.mxu1 %v7387_v5 }
0x30c5   :  { %5983 = vmatprep.subr.mxu0 %v6526_v44  ;;  %6018 = vmatprep.subr.mxu1 %v6526_v44 }
0x30c6   :  { %5984 = vmatpush3.msra.mxu0 %v7391_v21  ;;  %6019 = vmatpush3.msra.mxu1 %v7395_v18 }
0x30c7   :  { %5985 = vmatprep.subr.mxu0 %v6526_v44  ;;  %6020 = vmatprep.subr.mxu1 %v6526_v44 }
0x30c8   :  { %5986 = vmatpush3.msra.mxu0 %v7399_v2  ;;  %6021 = vmatpush3.msra.mxu1 %v7403_v43 }
0x30c9   :  { %5987 = vmatprep.subr.mxu0 %v6526_v44  ;;  %6022 = vmatprep.subr.mxu1 %v6526_v44 }
0x30ca   :  { %5988 = vmatpush3.msra.mxu0 %v7407_v47  ;;  %6023 = vmatpush3.msra.mxu1 %v7411_v48 }
0x30cb   :  { %5989 = vmatprep.subr.mxu0 %v6526_v44  ;;  %6024 = vmatprep.subr.mxu1 %v6526_v44 }
0x30cc   :  { %5990 = vmatpush3.msra.mxu0 %v7415_v49  ;;  %6025 = vmatpush3.msra.mxu1 %v7419_v50 }
0x30cd   :  { %5991 = vmatprep.subr.mxu0 %v6526_v44  ;;  %6026 = vmatprep.subr.mxu1 %v6526_v44 }
0x30ce   :  { %5992 = vmatpush3.msra.mxu0 %v7425_v51  ;;  %5993 = vmatprep.mubr.msk.f32.mxu0 %vm6527_vm3, %v6526_v44 }
0x30cf   :  { %6027 = vmatpush3.msra.mxu1 %v7429_v54  ;;  %6028 = vmatprep.mubr.msk.f32.mxu1 %vm6527_vm3, %v6526_v44 }
0x30d0   :  { %6031 = vmatprep.subr.mxu0 %v6526_v44  ;;  %6066 = vmatprep.subr.mxu1 %v6526_v44 }
0x316f   :  { %v4050_v6 = vpop.f32.mrf.mxu0  ;;  %v4120_v23 = vpop.f32.mrf.mxu1 }
0x3170   :  { %v4124_v13 = vsel %vm2050_vm5, %v4050_v6, %v4120_v23  ;;  %v4469_v6 = vsel %vm2056_vm4, %v4467_v63, %v7579_v46 }
0x3171   :  { %v4125_v17 = vmax.f32 %v4124_v13, 1e-30  ;;  %v5925_v45 = vpop.f32.mrf.mxu0  ;;  %v5960_v62 = vpop.f32.mrf.mxu1  ;;  %vm4470_vm15 = vcmp.gt.f32.partialorder %v4469_v6, 0.5 }
0x3173   :  { %6478 = vlog2.f32 %v4125_v17 }
0x3180   :  { %v6479_v35 = vpop.eup %6478 }
0x3181   :  { %v4127_v22 = vmul.f32 0.6931472, %v6479_v35 }
0x3183   :  { %v4128_v58 = vadd.f32 %v4127_v22, %v7681_v61  ;;  %v4471_v61 = vsel %vm4470_vm15, 1, %v6538_v7 }
0x3185   :  { %v4134_v8 = vadd.f32 %v4133_v60, %v4128_v58  ;;  %v4297_v58 = vrot.slane %v7456_v56, 6 }
0x3187   :  { %v7760_v15 = vsel %vm4143_vm14, %v4134_v8, %v7672_v37  ;;  %v4308_v8 = vpop.permute.xlu0 %4307  ;;  %v4299_v6 = vsel %vm2056_vm4, %v7454_v42, %v4297_v58 }
0x3188   :  { %v4145_v34 = vsel %vm3006_vm7, %v7760_v15, -inf  ;;  %vm4309_vm0 = vcmp.eq.s32.totalorder %v4308_v8, 1 }
0x3189   :  { %4146 = vmax.xlane.f32.xlu1 %v4145_v34 }
0x319a   :  { %4473 = vperm.xlu1 %6282, %v4471_v61  }
0x3212   :  { %v7770_v23 = vpop.xlane.xlu1 %4146 }
0x3213   :  { %v4148_v37 = vsub.f32 %v7760_v15, %v7770_v23 }
0x3215   :  { %v4149_v13 = vmul.f32 1.442695, %v4148_v37 }
0x3217   :  { %6480 = vpow2.f32 %v4149_v13 }
0x3224   :  { %v6481_v17 = vpop.eup %6480 }
0x3225   :  { %5994 = vmatmul.mubr.f32.vlgmr.msra.gmra.mxu0 %v6481_v17  ;;  %6029 = vmatmul.mubr.f32.vlgmr.msra.gmra.mxu1 %v6481_v17 }
0x3226   :  { %6032 = vmatpush3.msra.mxu0 %v7292_v0  ;;  %6067 = vmatpush3.msra.mxu1 %v7296_v26 }
0x3227   :  { %6033 = vmatprep.subr.mxu0 %v6526_v44  ;;  %6068 = vmatprep.subr.mxu1 %v6526_v44 }
0x3228   :  { %6034 = vmatpush3.msra.mxu0 %v7300_v9  ;;  %6069 = vmatpush3.msra.mxu1 %v7303_v11 }
0x3229   :  { %6035 = vmatprep.subr.mxu0 %v6526_v44  ;;  %6070 = vmatprep.subr.mxu1 %v6526_v44 }
0x322a   :  { %6036 = vmatpush3.msra.mxu0 %v7308_v14  ;;  %6071 = vmatpush3.msra.mxu1 %v7313_v16 }
0x322b   :  { %6037 = vmatprep.subr.mxu0 %v6526_v44  ;;  %6072 = vmatprep.subr.mxu1 %v6526_v44 }
0x322c   :  { %6038 = vmatpush3.msra.mxu0 %v7318_v1  ;;  %6073 = vmatpush3.msra.mxu1 %v7323_v19 }
0x322d   :  { %6039 = vmatprep.subr.mxu0 %v6526_v44  ;;  %6074 = vmatprep.subr.mxu1 %v6526_v44 }
0x322e   :  { %6040 = vmatpush3.msra.mxu0 %v7328_v24  ;;  %6075 = vmatpush3.msra.mxu1 %v7333_v25 }
0x322f   :  { %6041 = vmatprep.subr.mxu0 %v6526_v44  ;;  %6076 = vmatprep.subr.mxu1 %v6526_v44 }
0x3230   :  { %6042 = vmatpush3.msra.mxu0 %v7338_v28  ;;  %6077 = vmatpush3.msra.mxu1 %v7343_v10 }
0x3231   :  { %6043 = vmatprep.subr.mxu0 %v6526_v44  ;;  %6078 = vmatprep.subr.mxu1 %v6526_v44 }
0x3232   :  { %6044 = vmatpush3.msra.mxu0 %v7348_v41  ;;  %6079 = vmatpush3.msra.mxu1 %v7353_v30 }
0x3233   :  { %6045 = vmatprep.subr.mxu0 %v6526_v44  ;;  %6080 = vmatprep.subr.mxu1 %v6526_v44 }
0x3234   :  { %6046 = vmatpush3.msra.mxu0 %v7357_v52  ;;  %6081 = vmatpush3.msra.mxu1 %v7362_v32 }
0x3235   :  { %6047 = vmatprep.subr.mxu0 %v6526_v44  ;;  %6082 = vmatprep.subr.mxu1 %v6526_v44 }
0x3236   :  { %6048 = vmatpush3.msra.mxu0 %v7367_v36  ;;  %6083 = vmatpush3.msra.mxu1 %v7371_v4 }
0x3237   :  { %6049 = vmatprep.subr.mxu0 %v6526_v44  ;;  %6084 = vmatprep.subr.mxu1 %v6526_v44 }
0x3238   :  { %6050 = vmatpush3.msra.mxu0 %v7375_v38  ;;  %6085 = vmatpush3.msra.mxu1 %v7379_v39 }
0x3239   :  { %6051 = vmatprep.subr.mxu0 %v6526_v44  ;;  %6086 = vmatprep.subr.mxu1 %v6526_v44 }
0x323a   :  { %6052 = vmatpush3.msra.mxu0 %v7383_v40  ;;  %6087 = vmatpush3.msra.mxu1 %v7387_v5 }
0x323b   :  { %6053 = vmatprep.subr.mxu0 %v6526_v44  ;;  %6088 = vmatprep.subr.mxu1 %v6526_v44 }
0x323c   :  { %6054 = vmatpush3.msra.mxu0 %v7391_v21  ;;  %6089 = vmatpush3.msra.mxu1 %v7395_v18 }
0x323d   :  { %6055 = vmatprep.subr.mxu0 %v6526_v44  ;;  %6090 = vmatprep.subr.mxu1 %v6526_v44 }
0x323e   :  { %6056 = vmatpush3.msra.mxu0 %v7399_v2  ;;  %6091 = vmatpush3.msra.mxu1 %v7403_v43 }
0x323f   :  { %6057 = vmatprep.subr.mxu0 %v6526_v44  ;;  %6092 = vmatprep.subr.mxu1 %v6526_v44 }
0x3240   :  { %6058 = vmatpush3.msra.mxu0 %v7407_v47  ;;  %6093 = vmatpush3.msra.mxu1 %v7411_v48 }
0x3241   :  { %6059 = vmatprep.subr.mxu0 %v6526_v44  ;;  %6094 = vmatprep.subr.mxu1 %v6526_v44 }
0x3242   :  { %6060 = vmatpush3.msra.mxu0 %v7415_v49  ;;  %6095 = vmatpush3.msra.mxu1 %v7419_v50 }
0x3243   :  { %6061 = vmatprep.subr.mxu0 %v6526_v44  ;;  %6096 = vmatprep.subr.mxu1 %v6526_v44 }
0x3244   :  { %6062 = vmatpush3.msra.mxu0 %v7425_v51  ;;  %6063 = vmatprep.mubr.msk.f32.mxu0 %vm6527_vm3, %v6526_v44 }
0x3245   :  { %6097 = vmatpush3.msra.mxu1 %v7429_v54  ;;  %6098 = vmatprep.mubr.msk.f32.mxu1 %vm6527_vm3, %v6526_v44 }
0x3246   :  { %6101 = vmatprep.subr.mxu0 %v6526_v44  ;;  %6136 = vmatprep.subr.mxu1 %v6526_v44 }
0x32e5   :  { %v4217_v45 = vpop.f32.mrf.mxu0  ;;  %v4287_v62 = vpop.f32.mrf.mxu1 }
0x32e6   :  { %v4291_v35 = vsel %vm2050_vm5, %v4217_v45, %v4287_v62 }
0x32e7   :  { %v4292_v55 = vmax.f32 %v4291_v35, 1e-30  ;;  %v5995_v53 = vpop.f32.mrf.mxu0  ;;  %v6030_v22 = vpop.f32.mrf.mxu1 }
0x32e9   :  { %6482 = vlog2.f32 %v4292_v55 }
0x32f6   :  { %v6483_v57 = vpop.eup %6482 }
0x32f7   :  { %v4294_v60 = vmul.f32 0.6931472, %v6483_v57 }
0x32f9   :  { %v4295_v34 = vadd.f32 %v4294_v60, %v7770_v23  ;;  %v4463_v60 = vrot.slane %v7454_v42, 2 }
0x32fb   :  { %v4300_v61 = vadd.f32 %v4299_v6, %v4295_v34  ;;  %v4474_v34 = vpop.permute.xlu1 %4473 }
0x32fc   :  { %vm4475_vm1 = vcmp.eq.s32.totalorder %v4474_v34, 1 }
0x32fd   :  { %v7849_v37 = vsel %vm4309_vm0, %v4300_v61, %v7760_v15  ;;  %v4465_v61 = vsel %vm2056_vm4, %v4463_v60, %v7456_v56 }
0x32fe   :  { %v4311_v13 = vsel %vm3006_vm7, %v7849_v37, -inf }
0x32ff   :  { %4312 = vmax.xlane.f32.xlu0 %v4311_v13 }
0x3388   :  { %v7853_v17 = vpop.xlane.xlu0 %4312 }
0x3389   :  { %v4314_v45 = vsub.f32 %v7849_v37, %v7853_v17 }
0x338b   :  { %v4315_v62 = vmul.f32 1.442695, %v4314_v45 }
0x338d   :  { %6484 = vpow2.f32 %v4315_v62 }
0x339a   :  { %v6485_v23 = vpop.eup %6484 }
0x339b   :  { %6064 = vmatmul.mubr.f32.vlgmr.msra.gmra.mxu0 %v6485_v23  ;;  %6099 = vmatmul.mubr.f32.vlgmr.msra.gmra.mxu1 %v6485_v23  ;;  %v4634_v23 = vrot.slane %v7579_v46, 4 }
0x339c   :  { %6102 = vmatpush3.msra.mxu0 %v7292_v0  ;;  %6137 = vmatpush3.msra.mxu1 %v7296_v26 }
0x339d   :  { %6103 = vmatprep.subr.mxu0 %v6526_v44  ;;  %6138 = vmatprep.subr.mxu1 %v6526_v44 }
0x339e   :  { %6104 = vmatpush3.msra.mxu0 %v7300_v9  ;;  %6139 = vmatpush3.msra.mxu1 %v7303_v11 }
0x339f   :  { %6105 = vmatprep.subr.mxu0 %v6526_v44  ;;  %6140 = vmatprep.subr.mxu1 %v6526_v44 }
0x33a0   :  { %6106 = vmatpush3.msra.mxu0 %v7308_v14  ;;  %6141 = vmatpush3.msra.mxu1 %v7313_v16 }
0x33a1   :  { %6107 = vmatprep.subr.mxu0 %v6526_v44  ;;  %6142 = vmatprep.subr.mxu1 %v6526_v44 }
0x33a2   :  { %6108 = vmatpush3.msra.mxu0 %v7318_v1  ;;  %6143 = vmatpush3.msra.mxu1 %v7323_v19 }
0x33a3   :  { %6109 = vmatprep.subr.mxu0 %v6526_v44  ;;  %6144 = vmatprep.subr.mxu1 %v6526_v44 }
0x33a4   :  { %6110 = vmatpush3.msra.mxu0 %v7328_v24  ;;  %6145 = vmatpush3.msra.mxu1 %v7333_v25 }
0x33a5   :  { %6111 = vmatprep.subr.mxu0 %v6526_v44  ;;  %6146 = vmatprep.subr.mxu1 %v6526_v44 }
0x33a6   :  { %6112 = vmatpush3.msra.mxu0 %v7338_v28  ;;  %6147 = vmatpush3.msra.mxu1 %v7343_v10 }
0x33a7   :  { %6113 = vmatprep.subr.mxu0 %v6526_v44  ;;  %6148 = vmatprep.subr.mxu1 %v6526_v44 }
0x33a8   :  { %6114 = vmatpush3.msra.mxu0 %v7348_v41  ;;  %6149 = vmatpush3.msra.mxu1 %v7353_v30 }
0x33a9   :  { %6115 = vmatprep.subr.mxu0 %v6526_v44  ;;  %6150 = vmatprep.subr.mxu1 %v6526_v44 }
0x33aa   :  { %6116 = vmatpush3.msra.mxu0 %v7357_v52  ;;  %6151 = vmatpush3.msra.mxu1 %v7362_v32 }
0x33ab   :  { %6117 = vmatprep.subr.mxu0 %v6526_v44  ;;  %6152 = vmatprep.subr.mxu1 %v6526_v44 }
0x33ac   :  { %6118 = vmatpush3.msra.mxu0 %v7367_v36  ;;  %6153 = vmatpush3.msra.mxu1 %v7371_v4 }
0x33ad   :  { %6119 = vmatprep.subr.mxu0 %v6526_v44  ;;  %6154 = vmatprep.subr.mxu1 %v6526_v44 }
0x33ae   :  { %6120 = vmatpush3.msra.mxu0 %v7375_v38  ;;  %6155 = vmatpush3.msra.mxu1 %v7379_v39 }
0x33af   :  { %6121 = vmatprep.subr.mxu0 %v6526_v44  ;;  %6156 = vmatprep.subr.mxu1 %v6526_v44 }
0x33b0   :  { %6122 = vmatpush3.msra.mxu0 %v7383_v40  ;;  %6157 = vmatpush3.msra.mxu1 %v7387_v5 }
0x33b1   :  { %6123 = vmatprep.subr.mxu0 %v6526_v44  ;;  %6158 = vmatprep.subr.mxu1 %v6526_v44 }
0x33b2   :  { %6124 = vmatpush3.msra.mxu0 %v7391_v21  ;;  %6159 = vmatpush3.msra.mxu1 %v7395_v18 }
0x33b3   :  { %6125 = vmatprep.subr.mxu0 %v6526_v44  ;;  %6160 = vmatprep.subr.mxu1 %v6526_v44 }
0x33b4   :  { %6126 = vmatpush3.msra.mxu0 %v7399_v2  ;;  %6161 = vmatpush3.msra.mxu1 %v7403_v43 }
0x33b5   :  { %6127 = vmatprep.subr.mxu0 %v6526_v44  ;;  %6162 = vmatprep.subr.mxu1 %v6526_v44 }
0x33b6   :  { %6128 = vmatpush3.msra.mxu0 %v7407_v47  ;;  %6163 = vmatpush3.msra.mxu1 %v7411_v48 }
0x33b7   :  { %6129 = vmatprep.subr.mxu0 %v6526_v44  ;;  %6164 = vmatprep.subr.mxu1 %v6526_v44 }
0x33b8   :  { %6130 = vmatpush3.msra.mxu0 %v7415_v49  ;;  %6165 = vmatpush3.msra.mxu1 %v7419_v50 }
0x33b9   :  { %6131 = vmatprep.subr.mxu0 %v6526_v44  ;;  %6166 = vmatprep.subr.mxu1 %v6526_v44 }
0x33ba   :  { %6132 = vmatpush3.msra.mxu0 %v7425_v51  ;;  %6133 = vmatprep.mubr.msk.f32.mxu0 %vm6527_vm3, %v6526_v44 }
0x33bb   :  { %6167 = vmatpush3.msra.mxu1 %v7429_v54  ;;  %6168 = vmatprep.mubr.msk.f32.mxu1 %vm6527_vm3, %v6526_v44 }
0x33bc   :  { %6171 = vmatprep.subr.mxu0 %v6526_v44  ;;  %6206 = vmatprep.subr.mxu1 %v6526_v44 }
0x345b   :  { %v4383_v15 = vpop.f32.mrf.mxu0  ;;  %v4453_v35 = vpop.f32.mrf.mxu1 }
0x345c   :  { %v4457_v55 = vsel %vm2050_vm5, %v4383_v15, %v4453_v35  ;;  %v4636_v15 = vsel %vm2056_vm4, %v4634_v23, %v4467_v63 }
0x345d   :  { %v4458_v53 = vmax.f32 %v4457_v55, 1e-30  ;;  %v6065_v22 = vpop.f32.mrf.mxu0  ;;  %v6100_v57 = vpop.f32.mrf.mxu1  ;;  %vm4637_vm2 = vcmp.gt.f32.partialorder %v4636_v15, 0.5 }
0x345e   :  { %v4638_v35 = vsel %vm4637_vm2, 1, %v6538_v7  ;;  %v3449_v57 = vsub.s32 2, %v6899_v12 }
0x345f   :  { %6486 = vlog2.f32 %v4458_v53 }
0x346c   :  { %v6487_v58 = vpop.eup %6486 }
0x346d   :  { %v4460_v8 = vmul.f32 0.6931472, %v6487_v58 }
0x346f   :  { %v4461_v6 = vadd.f32 %v4460_v8, %v7853_v17  ;;  %v4801_v17 = vsel %vm2056_vm4, %v4301_v31, %v4634_v23  ;;  %v3272_v31 = vsub.s32 0, %v6899_v12  ;;  %v8077_v8 = vld [vmem:[%s4899_s25] sm:$0xff] }
0x3470   :  { %vm4802_vm6 = vcmp.gt.f32.partialorder %v4801_v17, 0.5 }
0x3471   :  { %v4466_v13 = vadd.f32 %v4465_v61, %v4461_v6 }
0x3473   :  { %v7932_v45 = vsel %vm4475_vm1, %v4466_v13, %v7849_v37  ;;  %v4803_v37 = vsel %vm4802_vm6, 1, %v6538_v7 }
0x3474   :  { %v4477_v62 = vsel %vm3006_vm7, %v7932_v45, -inf }
0x3475   :  { %4478 = vmax.xlane.f32.xlu0 %v4477_v62 }
0x348b   :  { %4640 = vperm.xlu0 %6283, %v4638_v35  }
0x348f   :  { %4805 = vperm.xlu0 %6283, %v4803_v37  }
0x34fe   :  { %v7945_v55 = vpop.xlane.xlu0 %4478 }
0x34ff   :  { %v4480_v53 = vsub.f32 %v7932_v45, %v7945_v55 }
0x3501   :  { %v4481_v22 = vmul.f32 1.442695, %v4480_v53  ;;  %v4795_v53 = vrot.slane %v7454_v42, 6 }
0x3503   :  { %6488 = vpow2.f32 %v4481_v22  ;;  %v4797_v22 = vrot.slane %v7456_v56, 4 }
0x3510   :  { %v6489_v63 = vpop.eup %6488 }
0x3511   :  { %6134 = vmatmul.mubr.f32.vlgmr.msra.gmra.mxu0 %v6489_v63  ;;  %6169 = vmatmul.mubr.f32.vlgmr.msra.gmra.mxu1 %v6489_v63 }
0x3512   :  { %6172 = vmatpush3.msra.mxu0 %v7292_v0  ;;  %6207 = vmatpush3.msra.mxu1 %v7296_v26 }
0x3513   :  { %6173 = vmatprep.subr.mxu0 %v6526_v44  ;;  %6208 = vmatprep.subr.mxu1 %v6526_v44 }
0x3514   :  { %6174 = vmatpush3.msra.mxu0 %v7300_v9  ;;  %6209 = vmatpush3.msra.mxu1 %v7303_v11 }
0x3515   :  { %6175 = vmatprep.subr.mxu0 %v6526_v44  ;;  %6210 = vmatprep.subr.mxu1 %v6526_v44 }
0x3516   :  { %6176 = vmatpush3.msra.mxu0 %v7308_v14  ;;  %6211 = vmatpush3.msra.mxu1 %v7313_v16 }
0x3517   :  { %6177 = vmatprep.subr.mxu0 %v6526_v44  ;;  %6212 = vmatprep.subr.mxu1 %v6526_v44 }
0x3518   :  { %6178 = vmatpush3.msra.mxu0 %v7318_v1  ;;  %6213 = vmatpush3.msra.mxu1 %v7323_v19  ;;  %v4628_v19 = vrot.slane %v7454_v42, 4 }
0x3519   :  { %6179 = vmatprep.subr.mxu0 %v6526_v44  ;;  %6214 = vmatprep.subr.mxu1 %v6526_v44 }
0x351a   :  { %6180 = vmatpush3.msra.mxu0 %v7328_v24  ;;  %6215 = vmatpush3.msra.mxu1 %v7333_v25  ;;  %v4630_v24 = vrot.slane %v7456_v56, 2 }
0x351b   :  { %6181 = vmatprep.subr.mxu0 %v6526_v44  ;;  %6216 = vmatprep.subr.mxu1 %v6526_v44 }
0x351c   :  { %6182 = vmatpush3.msra.mxu0 %v7338_v28  ;;  %6217 = vmatpush3.msra.mxu1 %v7343_v10  ;;  %v4641_v28 = vpop.permute.xlu0 %4640 }
0x351d   :  { %6183 = vmatprep.subr.mxu0 %v6526_v44  ;;  %6218 = vmatprep.subr.mxu1 %v6526_v44 }
0x351e   :  { %6184 = vmatpush3.msra.mxu0 %v7348_v41  ;;  %6219 = vmatpush3.msra.mxu1 %v7353_v30 }
0x351f   :  { %6185 = vmatprep.subr.mxu0 %v6526_v44  ;;  %6220 = vmatprep.subr.mxu1 %v6526_v44 }
0x3520   :  { %6186 = vmatpush3.msra.mxu0 %v7357_v52  ;;  %6221 = vmatpush3.msra.mxu1 %v7362_v32  ;;  %v8032_v32 = vld [vmem:[%s7474_s6] sm:$0xff] }
0x3521   :  { %6187 = vmatprep.subr.mxu0 %v6526_v44  ;;  %6222 = vmatprep.subr.mxu1 %v6526_v44 }
0x3522   :  { %6188 = vmatpush3.msra.mxu0 %v7367_v36  ;;  %6223 = vmatpush3.msra.mxu1 %v7371_v4  ;;  %v3208_v36 = vld [vmem:[%s8029_s14 + $0x8] sm:$0xff]  ;;  %v3209_v4 = vld [vmem:[%s4898_s22] sm:$0xff] }
0x3523   :  { %6189 = vmatprep.subr.mxu0 %v6526_v44  ;;  %6224 = vmatprep.subr.mxu1 %v6526_v44 }
0x3524   :  { %6190 = vmatpush3.msra.mxu0 %v7375_v38  ;;  %6225 = vmatpush3.msra.mxu1 %v7379_v39  ;;  %v3210_v38 = vld [vmem:[%s4898_s22 + $0x8] sm:$0xff] }
0x3525   :  { %6191 = vmatprep.subr.mxu0 %v6526_v44  ;;  %6226 = vmatprep.subr.mxu1 %v6526_v44 }
0x3526   :  { %6192 = vmatpush3.msra.mxu0 %v7383_v40  ;;  %6227 = vmatpush3.msra.mxu1 %v7387_v5 }
0x3527   :  { %6193 = vmatprep.subr.mxu0 %v6526_v44  ;;  %6228 = vmatprep.subr.mxu1 %v6526_v44 }
0x3528   :  { %6194 = vmatpush3.msra.mxu0 %v7391_v21  ;;  %6229 = vmatpush3.msra.mxu1 %v7395_v18  ;;  %v8055_v18 = vld [vmem:[%s8043_s10] sm:$0xff] }
0x3529   :  { %6195 = vmatprep.subr.mxu0 %v6526_v44  ;;  %6230 = vmatprep.subr.mxu1 %v6526_v44 }
0x352a   :  { %6196 = vmatpush3.msra.mxu0 %v7399_v2  ;;  %6231 = vmatpush3.msra.mxu1 %v7403_v43 }
0x352b   :  { %6197 = vmatprep.subr.mxu0 %v6526_v44  ;;  %6232 = vmatprep.subr.mxu1 %v6526_v44 }
0x352c   :  { %6198 = vmatpush3.msra.mxu0 %v7407_v47  ;;  %6233 = vmatpush3.msra.mxu1 %v7411_v48 }
0x352d   :  { %6199 = vmatprep.subr.mxu0 %v6526_v44  ;;  %6234 = vmatprep.subr.mxu1 %v6526_v44 }
0x352e   :  { %6200 = vmatpush3.msra.mxu0 %v7415_v49  ;;  %6235 = vmatpush3.msra.mxu1 %v7419_v50  ;;  %v3214_v49 = vld [vmem:[%s4899_s25 + $0x8] sm:$0xff] }
0x352f   :  { %6201 = vmatprep.subr.mxu0 %v6526_v44  ;;  %6236 = vmatprep.subr.mxu1 %v6526_v44 }
0x3530   :  { %6202 = vmatpush3.msra.mxu0 %v7425_v51  ;;  %6203 = vmatprep.mubr.msk.f32.mxu0 %vm6527_vm3, %v6526_v44 }
0x3531   :  { %6237 = vmatpush3.msra.mxu1 %v7429_v54  ;;  %6238 = vmatprep.mubr.msk.f32.mxu1 %vm6527_vm3, %v6526_v44  ;;  %v4632_v44 = vsel %vm2056_vm4, %v4628_v19, %v4630_v24  ;;  %vm4642_vm3 = vcmp.eq.s32.totalorder %v4641_v28, 1  ;;  %v6503_v19 = vld [vmem:[%s7452_s8] sm:$0xf] }
0x3532   :  { %v3273_v24 = vrot.slane %v6503_v19, %v3272_v31 }
0x35d1   :  { %v4549_v0 = vpop.f32.mrf.mxu0  ;;  %v4619_v26 = vpop.f32.mrf.mxu1 }
0x35d2   :  { %v4623_v9 = vsel %vm2050_vm5, %v4549_v0, %v4619_v26  ;;  %v4806_v0 = vpop.permute.xlu0 %4805 }
0x35d3   :  { %v4624_v11 = vmax.f32 %v4623_v9, 1e-30  ;;  %v6135_v14 = vpop.f32.mrf.mxu0  ;;  %v6170_v16 = vpop.f32.mrf.mxu1  ;;  %v4799_v9 = vsel %vm2056_vm4, %v4795_v53, %v4797_v22  ;;  %vm4807_vm8 = vcmp.eq.s32.totalorder %v4806_v0, 1 }
0x35d5   :  { %6490 = vlog2.f32 %v4624_v11 }
0x35e2   :  { %v6491_v1 = vpop.eup %6490 }
0x35e3   :  { %v4626_v25 = vmul.f32 0.6931472, %v6491_v1  ;;  %v3207_v1 = vld [vmem:[%s8029_s14] sm:$0xff] }
0x35e5   :  { %v4627_v10 = vadd.f32 %v4626_v25, %v7945_v55 }
0x35e7   :  { %v4633_v41 = vadd.f32 %v4632_v44, %v4627_v10 }
0x35e9   :  { %v8022_v30 = vsel %vm4642_vm3, %v4633_v41, %v7932_v45  ;;  %v3410_v41 = vld [vmem:[%s8043_s10 + $0x8] sm:$0xff] }
0x35ea   :  { %v4644_v52 = vsel %vm3006_vm7, %v8022_v30, -inf }
0x35eb   :  { %4645 = vmax.xlane.f32.xlu1 %v4644_v52 }
0x35fc   :  { %3235 = vperm.xlu1 %6282, %v8032_v32  }
0x3600   :  { %3240 = vperm.xlu1 %6282, %v7579_v46  }
0x3604   :  { %3265 = vperm.xlu1 %6282, %v3208_v36  }
0x3608   :  { %3289 = vperm.xlu1 %6282, %v3209_v4  }
0x360c   :  { %3294 = vperm.xlu1 %6282, %v3210_v38  }
0x3674   :  { %v4646_v39 = vpop.xlane.xlu1 %4645 }
0x3675   :  { %v4647_v40 = vsub.f32 %v8022_v30, %v4646_v39 }
0x3677   :  { %v4648_v5 = vmul.f32 1.442695, %v4647_v40 }
0x3678   :  { %v8049_v21 = vpop.permute.xlu1 %3235 }
0x3679   :  { %6492 = vpow2.f32 %v4648_v5  ;;  %v3430_v2 = vmul.f32 %v8049_v21, %v7458_v59  ;;  %v3558_v43 = vmul.f32 %v7564_v29, %v8049_v21  ;;  %v3212_v29 = vld [vmem:[%s4894_s29] sm:$0xf] }
0x367a   :  { %v3302_v58 = vrot.slane %v3212_v29, %v3272_v31  ;;  %v3469_v60 = vrot.slane %v3212_v29, %v3449_v57  ;;  %v3391_v31 = vmul.f32 %v7562_v33, %v8049_v21 }
0x367b   :  { %v8062_v47 = vmul.f32 %v3430_v2, %v8055_v18  ;;  %v8067_v50 = vmul.f32 %v3558_v43, %v8055_v18 }
0x367c   :  { %v8064_v48 = vpop.permute.xlu1 %3240 }
0x367d   :  { %v3244_v51 = vmul.f32 %v8064_v48, %v7454_v42  ;;  %v3392_v54 = vmul.f32 %v7558_v27, %v8064_v48  ;;  %v3243_v42 = vmul.f32 %v8049_v21, %v7460_v3  ;;  %v3431_v10 = vmul.f32 %v8064_v48, %v7456_v56 }
0x367e   :  { %v3559_v2 = vmul.f32 %v7560_v20, %v8064_v48 }
0x367f   :  { %v3246_v7 = vmul.f32 %v3244_v51, %v3214_v49  ;;  %v8073_v59 = vmul.f32 %v3392_v54, %v3214_v49  ;;  %v3245_v28 = vmul.f32 %v3243_v42, %v8077_v8  ;;  %v3433_v36 = vmul.f32 %v3431_v10, %v3410_v41 }
0x3680   :  { %v3266_v46 = vpop.permute.xlu1 %3265  ;;  %v3561_v56 = vmul.f32 %v3559_v2, %v3410_v41 }
0x3681   :  { %3249 = vadd.xlane.f32.xlu1 %v3246_v7  ;;  %v3269_v25 = vmul.f32 %v3266_v46, %v3214_v49  ;;  %v3446_v52 = vmul.f32 %v3410_v41, %v3266_v46 }
0x3683   :  { %v3275_v44 = vmul.f32 %v3273_v24, %v3269_v25 }
0x3684   :  { %v3290_v34 = vpop.permute.xlu1 %3289 }
0x3685   :  { %v3297_v6 = vmul.f32 %v3290_v34, %v8077_v8  ;;  %v3464_v61 = vmul.f32 %v8055_v18, %v3290_v34 }
0x3686   :  { %v6493_v27 = vpop.eup %6492 }
0x3687   :  { %v8081_v13 = vmul.f32 %v3302_v58, %v3297_v6  ;;  %v8083_v45 = vmul.f32 %v3469_v60, %v3464_v61  ;;  %6204 = vmatmul.mubr.f32.vlgmr.msra.gmra.mxu0 %v6493_v27  ;;  %6239 = vmatmul.mubr.f32.vlgmr.msra.gmra.mxu1 %v6493_v27  ;;  %v6504_v6 = vld [vmem:[%s7474_s6 + $0x8] sm:$0xff] }
0x3688   :  { %v3295_v4 = vpop.permute.xlu1 %3294 }
0x3689   :  { %v3465_v40 = vmul.f32 %v3410_v41, %v3295_v4 }
0x368b   :  { %v3471_v5 = vmul.f32 %v3469_v60, %v3465_v40 }
0x3747   :  { %v4716_v62 = vpop.f32.mrf.mxu0  ;;  %v4786_v23 = vpop.f32.mrf.mxu1 }
0x3748   :  { %v4790_v15 = vsel %vm2050_vm5, %v4716_v62, %v4786_v23  ;;  %vm4842_vm5 = vcmask 7168  }
0x3749   :  { %v4791_v17 = vmax.f32 %v4790_v15, 1e-30  ;;  %v6205_v35 = vpop.f32.mrf.mxu0  ;;  %v6240_v37 = vpop.f32.mrf.mxu1  ;;  %v4843_v34 = vsel %vm4842_vm5, %v8032_v32, 0.0  ;;  %v4844_v61 = vsel %vm4842_vm5, %v6504_v6, 0.0 }
0x374b   :  { %6494 = vlog2.f32 %v4791_v17 }
0x3758   :  { %v6495_v55 = vpop.eup %6494 }
0x3759   :  { %v4793_v63 = vmul.f32 0.6931472, %v6495_v55 }
0x375b   :  { %v4794_v26 = vadd.f32 %v4793_v63, %v4646_v39  ;;  %v3298_v39 = vmul.f32 %v3295_v4, %v3214_v49 }
0x375d   :  { %v4800_v11 = vadd.f32 %v4799_v9, %v4794_v26  ;;  %v3304_v3 = vmul.f32 %v3302_v58, %v3298_v39  ;;  %v3250_v58 = vpop.xlane.xlu1 %3249 }
0x375f   :  { %v4808_v12 = vsel %vm4807_vm8, %v4800_v11, %v8022_v30  ;;  %v3450_v30 = vrot.slane %v6503_v19, %v3449_v57  ;;  %v3393_v57 = vmul.f32 %v3391_v31, %v8077_v8 }
0x3760   :  { %v4809_v14 = vadd.f32 %v4808_v12, %v3212_v29 }
0x3761   :  { %v3452_v38 = vmul.f32 %v3450_v30, %v3446_v52 }
0x3762   :  { %v4810_v16 = vsel %vm3006_vm7, %v4809_v14, -inf }
0x3763   :  { %4811 = vmax.xlane.f32.xlu0 %v4810_v16 }
0x3779   :  { %3260 = vperm.xlu0 %6283, %v3207_v1  }
0x3798   :  { %3247 = vadd.xlane.f32.xlu0 %v3245_v28 }
0x379c   :  { %3278 = vadd.xlane.f32.xlu0 %v3275_v44 }
0x37a0   :  { %3436 = vadd.xlane.f32.xlu0 %v3433_v36 }
0x37a4   :  { %3455 = vadd.xlane.f32.xlu0 %v3452_v38 }
0x37a8   :  { %3307 = vadd.xlane.f32.xlu0 %v3304_v3 }
0x37ac   :  { %3474 = vadd.xlane.f32.xlu0 %v3471_v5 }
0x37b0   :  { %3397 = vadd.xlane.f32.xlu0 %v8073_v59 }
0x37b4   :  { %3564 = vadd.xlane.f32.xlu0 %v3561_v56 }
0x37ec   :  { %v8103_v43 = vpop.xlane.xlu0 %4811 }
0x37ed   :  { %v4813_v51 = vsub.f32 %v4809_v14, %v8103_v43 }
0x37ef   :  { %v4814_v54 = vmul.f32 1.442695, %v4813_v51 }
0x37f1   :  { %6496 = vpow2.f32 %v4814_v54 }
0x37f4   :  { %v3261_v49 = vpop.permute.xlu0 %3260 }
0x37f5   :  { %v3268_v7 = vmul.f32 %v3261_v49, %v8077_v8  ;;  %v3445_v20 = vmul.f32 %v8055_v18, %v3261_v49 }
0x37f7   :  { %v3274_v46 = vmul.f32 %v3273_v24, %v3268_v7  ;;  %v3451_v59 = vmul.f32 %v3450_v30, %v3445_v20 }
0x37f9   :  { %3276 = vadd.xlane.f32.xlu1 %v3274_v46 }
0x37fd   :  { %3434 = vadd.xlane.f32.xlu1 %v8062_v47 }
0x37fe   :  { %v6497_v29 = vpop.eup %6496 }
0x37ff   :  { %v4816_v48 = vsel %vm3006_vm7, %v6497_v29, 0.0 }
0x3801   :  { %4817 = vadd.xlane.f32.xlu1 %v4816_v48 }
0x3805   :  { %3453 = vadd.xlane.f32.xlu1 %v3451_v59 }
0x3809   :  { %3305 = vadd.xlane.f32.xlu1 %v8081_v13  ;;  %v4845_v13 = vadd.f32 %v4844_v61, %v4843_v34 }
0x380d   :  { %3472 = vadd.xlane.f32.xlu1 %v8083_v45  ;;  %v4846_v45 = vrot.slane %v4845_v13, 4 }
0x380f   :  { %v4847_v17 = vadd.f32 %v4846_v45, %v4845_v13 }
0x3811   :  { %3395 = vadd.xlane.f32.xlu1 %v3393_v57  ;;  %v4848_v32 = vrot.slane %v4847_v17, 2 }
0x3813   :  { %v4849_v16 = vadd.f32 %v4848_v32, %v4847_v17 }
0x3815   :  { %3562 = vadd.xlane.f32.xlu1 %v8067_v50  ;;  %v4850_v52 = vrot.slane %v4849_v16, 1 }
0x3817   :  { %v4851_v49 = vadd.f32 %v4850_v52, %v4849_v16 }
0x3821   :  { %v3248_v47 = vpop.xlane.xlu0 %3247 }
0x3822   :  { %v3251_v21 = vadd.f32 %v3250_v58, %v3248_v47 }
0x3824   :  { %v3252_v15 = vrot.slane %v3251_v21, 4 }
0x3825   :  { %v3279_v18 = vpop.xlane.xlu0 %3278 }
0x3826   :  { %v3253_v22 = vadd.f32 %v3252_v15, %v3251_v21 }
0x3828   :  { %v3254_v14 = vrot.slane %v3253_v22, 2 }
0x3829   :  { %v3437_v60 = vpop.xlane.xlu0 %3436 }
0x382a   :  { %v3255_v41 = vadd.f32 %v3254_v14, %v3253_v22 }
0x382c   :  { %v3256_v7 = vrot.slane %v3255_v41, 1 }
0x382d   :  { %v3456_v62 = vpop.xlane.xlu0 %3455 }
0x382e   :  { %v3257_v15 = vadd.f32 %v3256_v7, %v3255_v41 }
0x3831   :  { %v3308_v50 = vpop.xlane.xlu0 %3307 }
0x3835   :  { %v3475_v0 = vpop.xlane.xlu0 %3474 }
0x3839   :  { %v3398_v30 = vpop.xlane.xlu0 %3397 }
0x383d   :  { %v3565_v48 = vpop.xlane.xlu0 %3564 }
0x3882   :  { %v3277_v27 = vpop.xlane.xlu1 %3276 }
0x3883   :  { %v3280_v23 = vadd.f32 %v3279_v18, %v3277_v27 }
0x3885   :  { %v3281_v35 = vrot.slane %v3280_v23, 4 }
0x3886   :  { %v3435_v33 = vpop.xlane.xlu1 %3434 }
0x3887   :  { %v3438_v55 = vadd.f32 %v3437_v60, %v3435_v33  ;;  %v3282_v26 = vadd.f32 %v3281_v35, %v3280_v23 }
0x3889   :  { %v3439_v11 = vrot.slane %v3438_v55, 4  ;;  %v3283_v19 = vrot.slane %v3282_v26, 2 }
0x388a   :  { %v4818_v8 = vpop.xlane.xlu1 %4817 }
0x388b   :  { %6498 = vlog2.f32 %v4818_v8  ;;  %v3440_v25 = vadd.f32 %v3439_v11, %v3438_v55  ;;  %v3284_v3 = vadd.f32 %v3283_v19, %v3282_v26 }
0x388c   :  { %6500 = vrcp.f32 %v4851_v49 }
0x388d   :  { %v3441_v5 = vrot.slane %v3440_v25, 2  ;;  %v3285_v59 = vrot.slane %v3284_v3, 1 }
0x388e   :  { %v3454_v37 = vpop.xlane.xlu1 %3453 }
0x388f   :  { %v3457_v53 = vadd.f32 %v3456_v62, %v3454_v37  ;;  %v3442_v58 = vadd.f32 %v3441_v5, %v3440_v25  ;;  %v3286_v21 = vadd.f32 %v3285_v59, %v3284_v3 }
0x3891   :  { %v3458_v63 = vrot.slane %v3457_v53, 4 }
0x3892   :  { %v3306_v9 = vpop.xlane.xlu1 %3305 }
0x3893   :  { %v3309_v12 = vadd.f32 %v3308_v50, %v3306_v9  ;;  %v3459_v1 = vadd.f32 %v3458_v63, %v3457_v53  ;;  %v3443_v50 = vrot.slane %v3442_v58, 1 }
0x3895   :  { %v3310_v42 = vrot.slane %v3309_v12, 4  ;;  %v3460_v4 = vrot.slane %v3459_v1, 2 }
0x3896   :  { %v3473_v24 = vpop.xlane.xlu1 %3472 }
0x3897   :  { %v3311_v28 = vadd.f32 %v3310_v42, %v3309_v12  ;;  %v3476_v10 = vadd.f32 %v3475_v0, %v3473_v24  ;;  %v3461_v20 = vadd.f32 %v3460_v4, %v3459_v1  ;;  %v3406_v0 = vadd.f32 %v3286_v21, %v3257_v15 }
0x3898   :  { %v6499_v44 = vpop.eup %6498  ;;  %v3444_v12 = vadd.f32 %v3443_v50, %v3442_v58 }
0x3899   :  { %v4820_v36 = vmul.f32 0.6931472, %v6499_v44  ;;  %v3312_v38 = vrot.slane %v3311_v28, 2  ;;  %v3477_v39 = vrot.slane %v3476_v10, 4  ;;  %v3462_v62 = vrot.slane %v3461_v20, 1  ;;  %v6501_v4 = vpop.eup %6500 }
0x389a   :  { %v3396_v40 = vpop.xlane.xlu1 %3395 }
0x389b   :  { %v4821_v2 = vadd.f32 %v4820_v36, %v8103_v43  ;;  %v3313_v56 = vadd.f32 %v3312_v38, %v3311_v28  ;;  %v3478_v51 = vadd.f32 %v3477_v39, %v3476_v10  ;;  %v3399_v54 = vadd.f32 %v3398_v30, %v3396_v40 }
0x389c   :  { %v3463_v32 = vadd.f32 %v3462_v62, %v3461_v20 }
0x389d   :  { %v4823_v46 = vsel %vm2056_vm4, %v4821_v2, 0.0  ;;  %v4831_v29 = vrot.slane %v4821_v2, 2  ;;  %v3479_v57 = vrot.slane %v3478_v51, 2  ;;  %v3400_v47 = vrot.slane %v3399_v54, 4 }
0x389e   :  { %v4824_v31 = vrot.slane %v4823_v46, 4  ;;  %v3563_v18 = vpop.xlane.xlu1 %3562  ;;  %v3314_v34 = vrot.slane %v3313_v56, 1  ;;  %v3573_v24 = vadd.f32 %v3463_v32, %v3444_v12 }
0x389f   :  { %v4833_v60 = vsel %vm2056_vm4, %v4831_v29, 0.0  ;;  %v3566_v43 = vadd.f32 %v3565_v48, %v3563_v18  ;;  %v3480_v27 = vadd.f32 %v3479_v57, %v3478_v51  ;;  %v3401_v13 = vadd.f32 %v3400_v47, %v3399_v54 }
0x38a0   :  { %v4825_v6 = vadd.f32 %v4824_v31, %v4823_v46  ;;  %v4834_v61 = vrot.slane %v4833_v60, 4  ;;  %v3315_v53 = vadd.f32 %v3314_v34, %v3313_v56 }
0x38a1   :  { %v3567_v33 = vrot.slane %v3566_v43, 4  ;;  %v3402_v8 = vrot.slane %v3401_v13, 2  ;;  %v3481_v17 = vrot.slane %v3480_v27, 1 }
0x38a2   :  { %v4826_v45 = vrot.slane %v4825_v6, 2  ;;  %v4835_v23 = vadd.f32 %v4834_v61, %v4833_v60  ;;  %v3407_v1 = vadd.f32 %v3406_v0, %v3315_v53 }
0x38a3   :  { %v3568_v35 = vadd.f32 %v3567_v33, %v3566_v43  ;;  %v3403_v22 = vadd.f32 %v3402_v8, %v3401_v13  ;;  %v3482_v14 = vadd.f32 %v3481_v17, %v3480_v27 }
0x38a4   :  { %v4827_v37 = vadd.f32 %v4826_v45, %v4825_v6  ;;  %v4836_v55 = vrot.slane %v4835_v23, 2 }
0x38a5   :  { %v3569_v63 = vrot.slane %v3568_v35, 2  ;;  %v3404_v11 = vrot.slane %v3403_v22, 1  ;;  %v3574_v44 = vadd.f32 %v3573_v24, %v3482_v14 }
0x38a6   :  { %v4828_v26 = vrot.slane %v4827_v37, 1  ;;  %v4837_v9 = vadd.f32 %v4836_v55, %v4835_v23 }
0x38a7   :  { %v3570_v16 = vadd.f32 %v3569_v63, %v3568_v35  ;;  %v3405_v19 = vadd.f32 %v3404_v11, %v3403_v22 }
0x38a8   :  { %v4829_v42 = vadd.f32 %v4828_v26, %v4827_v37  ;;  %v4838_v25 = vrot.slane %v4837_v9, 1 }
0x38a9   :  { %v3571_v28 = vrot.slane %v3570_v16, 1  ;;  %v3408_v10 = vadd.f32 %v3407_v1, %v3405_v19 }
0x38aa   :  { %v4839_v52 = vadd.f32 %v4838_v25, %v4837_v9 }
0x38ab   :  { %v3572_v41 = vadd.f32 %v3571_v28, %v3570_v16  ;;  %v4852_v30 = vsub.f32 %v3408_v10, %v4829_v42 }
0x38ad   :  { %v3575_v36 = vadd.f32 %v3574_v44, %v3572_v41  ;;  %v4853_v38 = vsub.f32 0.0, %v4852_v30 }
0x38af   :  { %v4856_v39 = vsub.f32 %v3575_v36, %v4839_v52  ;;  %v4855_v40 = vmul.f32 %v6501_v4, %v4853_v38 }
0x38b1   :  { %v4857_v3 = vsub.f32 0.0, %v4856_v39 }
0x38b3   :  { %v4858_v5 = vmul.f32 %v6501_v4, %v4857_v3 }
0x38b5   :  { %v4859_v2 = vadd.f32 %v4858_v5, %v4855_v40 }
0x38b7   :  { %v4860_v56 = vmul.f32 0.5, %v4859_v2 }
0x38b9   :  { %4863 = vperm.xlu1 %6282, %v4860_v56  }
0x3934   :  { %v4864_v51 = vpop.permute.xlu1 %4863 }
0x3935   :  { %4866 = vst [vmem:[%s4903_s4] sm:$0xff] %v4864_v51 }

</bundles_post_ra>
